<compile_context>
chip_gen: v7x
topology: tpu7x:2x2x1
jax: 0.10.0
libtpu: 0.0.40
codegen_flags: <defaults>
</compile_context>

<pallas_src>
import functools
import math

import jax
import jax.numpy as jnp
from jax.experimental import pallas as pl
from jax.experimental.pallas import tpu as pltpu


# ----------------------------- shared math helpers -----------------------------

def _layernorm(x, gamma, beta, eps=1e-5):
    mu = jnp.mean(x, axis=-1, keepdims=True)
    var = jnp.mean((x - mu) ** 2, axis=-1, keepdims=True)
    return (x - mu) * jax.lax.rsqrt(var + eps) * gamma + beta


def _gelu_new(x):
    # GPT2 "gelu_new"
    return 0.5 * x * (1.0 + jnp.tanh(math.sqrt(2.0 / math.pi) * (x + 0.044715 * x ** 3)))


# --------------------------------- the kernel ----------------------------------

def dt_kernel(states_ref, actions_ref, returns_ref, time_ref, bias_ref,
              vecs_ref, wpe_ref, w_state_ref, w_act_ref,
              attn_w_ref, attn_b_ref, proj_w_ref,
              fc_w_ref, fc_b_ref, mp_w_ref,
              w_ha_ref, w_hs_ref, b_h_ref,
              p_int_ref, sel_ref,
              out_ref,
              *, n_layer, n_head, seq_len, hidden, block_b):
    T, H, bb = seq_len, hidden, block_b
    L = 3 * T
    hd = H // n_head
    scale = 1.0 / math.sqrt(hd)

    # packed small vectors: rows 0..7 = [w_ret, emb_b(ret,state,act), ln_emb g/b, ln_f g/b]
    # rows 8+6l .. 8+6l+5 = [ln1 g/b, ln2 g/b, proj_b, mp_b] of layer l
    V = vecs_ref[...]
    w_ret = V[0]
    b_ret, b_state, b_act = V[1], V[2], V[3]
    g_emb, be_emb = V[4], V[5]
    g_f, be_f = V[6], V[7]

    s = states_ref[...].reshape(bb * T, -1)
    a = actions_ref[...].reshape(bb * T, -1)
    r = returns_ref[...].reshape(bb * T, 1)
    t_emb = time_ref[...].reshape(bb * T, H)

    # embedding projections (+ time embedding), all flattened over (bb*T)
    ret_e = r * w_ret + b_ret + t_emb
    st_e = jnp.dot(s, w_state_ref[...], preferred_element_type=jnp.float32) + b_state + t_emb
    ac_e = jnp.dot(a, w_act_ref[...], preferred_element_type=jnp.float32) + b_act + t_emb

    # interleave (return_t, state_t, action_t) per example via one block-structured
    # one-hot matmul -> (bb*L, H)
    blocks = jnp.concatenate([ret_e, st_e, ac_e], axis=0)                    # (3*bb*T, H)
    x = jnp.dot(p_int_ref[...], blocks, preferred_element_type=jnp.float32)  # (bb*L, H)

    # embed_ln then GPT2 position embeddings (wpe already tiled to (bb*L, H))
    x = _layernorm(x, g_emb, be_emb) + wpe_ref[...]

    bias = bias_ref[...]                                                     # (bb, L, L) finite

    for l in range(n_layer):
        base = 8 + 6 * l
        g1, b1 = V[base + 0], V[base + 1]
        g2, b2 = V[base + 2], V[base + 3]
        proj_b = V[base + 4]
        mp_b = V[base + 5]

        # --- attention block ---
        h1 = _layernorm(x, g1, b1)
        qkv = jnp.dot(h1, attn_w_ref[l], preferred_element_type=jnp.float32) + attn_b_ref[l]
        qkv3 = qkv.reshape(bb, L, 3 * H)
        proj_w = proj_w_ref[l]                                               # (H, H)

        attn = jnp.zeros((bb * L, H), jnp.float32)
        for h in range(n_head):
            lo = h * hd
            qh = qkv3[:, :, lo:lo + hd]                                      # (bb, L, hd)
            kh = qkv3[:, :, H + lo:H + lo + hd]
            vh = qkv3[:, :, 2 * H + lo:2 * H + lo + hd]
            sc = jnp.einsum('bqd,bkd->bqk', qh, kh,
                            preferred_element_type=jnp.float32) * scale + bias
            sc = sc - jnp.max(sc, axis=-1, keepdims=True)
            p = jnp.exp(sc)
            p = p * pl.reciprocal(jnp.sum(p, axis=-1, keepdims=True), approx=True)
            ctx = jnp.einsum('bqk,bkd->bqd', p, vh,
                             preferred_element_type=jnp.float32)             # (bb, L, hd)
            # fold the output projection into the per-head accumulation (no concat)
            attn = attn + jnp.dot(ctx.reshape(bb * L, hd), proj_w[lo:lo + hd, :],
                                  preferred_element_type=jnp.float32)
        x = x + attn + proj_b

        # --- MLP block ---
        h2 = _layernorm(x, g2, b2)
        mh = _gelu_new(jnp.dot(h2, fc_w_ref[l], preferred_element_type=jnp.float32)
                       + fc_b_ref[l])
        x = x + jnp.dot(mh, mp_w_ref[l], preferred_element_type=jnp.float32) + mp_b

    x = _layernorm(x, g_f, be_f)

    # de-interleave: one selection matmul -> [state tokens ; action tokens]
    x_sel = jnp.dot(sel_ref[...], x, preferred_element_type=jnp.float32)     # (2*bb*T, H)
    x_state = x_sel[:bb * T]
    x_act = x_sel[bb * T:]

    # packed lane-dense prediction heads: cols [0:S]=state, [S:S+A]=action, [S+A]=return
    packed = (jnp.dot(x_act, w_ha_ref[...], preferred_element_type=jnp.float32)
              + jnp.dot(x_state, w_hs_ref[...], preferred_element_type=jnp.float32)
              + b_h_ref[...])
    out_ref[...] = packed.reshape(bb, T, packed.shape[-1])


# --------------------------------- wrapper --------------------------------------

def decision_transformer_pallas(params, cfg, states, actions, returns_to_go,
                                timesteps, batch_size, attention_mask=None,
                                block_b=None):
    S, A, H = cfg['state_dim'], cfg['act_dim'], cfg['hidden']
    nl, nh = cfg['n_layer'], cfg['n_head']
    B = batch_size
    states = states.reshape(B, -1, S).astype(jnp.float32)
    actions = actions.reshape(B, -1, A).astype(jnp.float32)
    timesteps = timesteps.reshape(B, -1)
    returns = returns_to_go.reshape(B, -1, 1).astype(jnp.float32)
    T = states.shape[1]
    L = 3 * T

    if attention_mask is None:
        attention_mask = jnp.ones((B, T), dtype=jnp.int32)

    if block_b is None:
        block_b = next(c for c in (8, 4, 2, 1) if B % c == 0)
    bb = block_b
    assert B % bb == 0
    n_blocks = B // bb

    # glue: timestep-embedding gather + ONE finite additive attention bias
    time_emb = jnp.take(params['wte_time'], timesteps, axis=0)                    # (B,T,H)
    sm = jnp.repeat(attention_mask.astype(jnp.float32), 3, axis=1)                # (B,L)
    causal = jnp.tril(jnp.ones((L, L), jnp.float32))
    attn_bias = jnp.where(causal[None] * sm[:, None, :] > 0.5, 0.0, -1e30)        # (B,L,L)

    # block-structured interleave / selection one-hot matrices (static constants)
    rows = jnp.arange(bb * L)
    rb, rt, rj = rows // L, (rows % L) // 3, rows % 3
    p_int = jax.nn.one_hot(rj * (bb * T) + rb * T + rt, 3 * bb * T,
                           dtype=jnp.float32)                                     # (bbL, 3bbT)
    srows = jnp.arange(bb * T)
    sb, st = srows // T, srows % T
    sel_idx = jnp.concatenate([sb * L + 3 * st + 1, sb * L + 3 * st + 2])
    sel = jax.nn.one_hot(sel_idx, bb * L, dtype=jnp.float32)                      # (2bbT, bbL)

    wpe_tiled = jnp.tile(params['wpe'], (bb, 1))                                  # (bbL, H)

    # coalesce all H-wide parameter vectors into one packed array
    vec_rows = [params['w_ret'][0],
                params['emb_b'][0], params['emb_b'][1], params['emb_b'][2],
                params['ln_emb'][0], params['ln_emb'][1],
                params['ln_f'][0], params['ln_f'][1]]
    for l in range(nl):
        vec_rows += [params['ln1'][l, 0], params['ln1'][l, 1],
                     params['ln2'][l, 0], params['ln2'][l, 1],
                     params['proj_b'][l], params['mp_b'][l]]
    vecs = jnp.stack(vec_rows, axis=0)                                            # (8+6nl, H)

    # lane-dense packed prediction heads (pad last dim to a multiple of 128)
    P = S + A + 1
    Pp = ((P + 127) // 128) * 128
    w_ha = (jnp.zeros((H, Pp), jnp.float32)
            .at[:, :S].set(params['w_ps'])
            .at[:, S + A:S + A + 1].set(params['w_pr']))
    w_hs = jnp.zeros((H, Pp), jnp.float32).at[:, S:S + A].set(params['w_pa'])
    b_h = (jnp.zeros((1, Pp), jnp.float32)
           .at[:, :S].set(params['b_ps'])
           .at[:, S:S + A].set(params['b_pa'])
           .at[:, S + A:S + A + 1].set(params['b_pr']))

    per_batch = [states, actions, returns, time_emb, attn_bias]
    weights = [vecs, wpe_tiled, params['w_state'], params['w_act'],
               params['attn_w'], params['attn_b'], params['proj_w'],
               params['fc_w'], params['fc_b'], params['mp_w'],
               w_ha, w_hs, b_h, p_int, sel]

    def batch_spec(arr):
        return pl.BlockSpec((bb,) + arr.shape[1:],
                            lambda g, _nd=arr.ndim: (g,) + (0,) * (_nd - 1))

    def full_spec(arr):
        return pl.BlockSpec(arr.shape, lambda g, _nd=arr.ndim: (0,) * _nd)

    in_specs = [batch_spec(a) for a in per_batch] + [full_spec(w) for w in weights]

    kernel = functools.partial(dt_kernel, n_layer=nl, n_head=nh, seq_len=T,
                               hidden=H, block_b=bb)

    packed = pl.pallas_call(
        kernel,
        out_shape=jax.ShapeDtypeStruct((B, T, Pp), jnp.float32),
        grid=(n_blocks,),
        in_specs=in_specs,
        out_specs=pl.BlockSpec((bb, T, Pp), lambda g: (g, 0, 0)),
        compiler_params=pltpu.CompilerParams(dimension_semantics=("parallel",)),
    )(*(per_batch + weights))

    state_preds = packed[..., :S]
    action_preds = packed[..., S:S + A]
    return_preds = packed[..., S + A:S + A + 1]
    return state_preds, action_preds, return_preds


# -------------------------- pure-JAX reference (for checking) -------------------

def reference_forward(params, cfg, states, actions, returns, timesteps, attention_mask):
    B, T, _ = states.shape
    H, nl, nh = cfg['hidden'], cfg['n_layer'], cfg['n_head']
    hd = H // nh
    L = 3 * T

    time_emb = params['wte_time'][timesteps]
    ret_e = returns @ params['w_ret'] + params['emb_b'][0] + time_emb
    st_e = states @ params['w_state'] + params['emb_b'][1] + time_emb
    ac_e = actions @ params['w_act'] + params['emb_b'][2] + time_emb

    stacked = jnp.stack([ret_e, st_e, ac_e], axis=1)                 # (B,3,T,H)
    stacked = jnp.transpose(stacked, (0, 2, 1, 3)).reshape(B, L, H)  # (B,3T,H)
    x = _layernorm(stacked, params['ln_emb'][0], params['ln_emb'][1])
    x = x + params['wpe'][None]

    sm = jnp.repeat(attention_mask.astype(jnp.float32), 3, axis=1)
    causal = jnp.tril(jnp.ones((L, L), jnp.float32))
    bias = jnp.where(causal[None] * sm[:, None, :] > 0.5, 0.0, -1e30)

    for l in range(nl):
        h1 = _layernorm(x, params['ln1'][l, 0], params['ln1'][l, 1])
        qkv = h1 @ params['attn_w'][l] + params['attn_b'][l]
        q, k, v = jnp.split(qkv, 3, axis=-1)

        def sh(z):
            return jnp.transpose(z.reshape(B, L, nh, hd), (0, 2, 1, 3))

        q, k, v = sh(q), sh(k), sh(v)
        sc = jnp.einsum('bhqd,bhkd->bhqk', q, k) / math.sqrt(hd) + bias[:, None]
        p = jax.nn.softmax(sc, axis=-1)
        ctx = jnp.einsum('bhqk,bhkd->bhqd', p, v)
        ctx = jnp.transpose(ctx, (0, 2, 1, 3)).reshape(B, L, H)
        x = x + ctx @ params['proj_w'][l] + params['proj_b'][l]

        h2 = _layernorm(x, params['ln2'][l, 0], params['ln2'][l, 1])
        x = x + _gelu_new(h2 @ params['fc_w'][l] + params['fc_b'][l]) @ params['mp_w'][l] \
            + params['mp_b'][l]

    x = _layernorm(x, params['ln_f'][0], params['ln_f'][1])
    x3 = x.reshape(B, T, 3, H)
    x_state, x_act = x3[:, :, 1], x3[:, :, 2]
    state_preds = x_act @ params['w_ps'] + params['b_ps'][0]
    action_preds = x_state @ params['w_pa'] + params['b_pa'][0]
    return_preds = x_act @ params['w_pr'] + params['b_pr'][0]
    return state_preds, action_preds, return_preds


# ------------------------------ parameter init -----------------------------------

def init_params(key, cfg):
    S, A, H = cfg['state_dim'], cfg['act_dim'], cfg['hidden']
    nl, T, max_ep = cfg['n_layer'], cfg['seq_len'], cfg['max_ep_len']
    L = 3 * T
    inner = 4 * H
    keys = iter(jax.random.split(key, 64))

    def w(shape, scale=0.02):
        return scale * jax.random.normal(next(keys), shape, dtype=jnp.float32)

    def ln_pair(*lead):
        g = 1.0 + 0.1 * jax.random.normal(next(keys), (*lead, H), dtype=jnp.float32)
        b = 0.1 * jax.random.normal(next(keys), (*lead, H), dtype=jnp.float32)
        return jnp.stack([g, b], axis=len(lead))

    return dict(
        wte_time=w((max_ep, H)),
        w_ret=w((1, H)), w_state=w((S, H)), w_act=w((A, H)),
        emb_b=w((3, H)),
        wpe=w((L, H)),
        ln_emb=ln_pair(),
        ln1=ln_pair(nl), ln2=ln_pair(nl),
        attn_w=w((nl, H, 3 * H)), attn_b=w((nl, 3 * H)),
        proj_w=w((nl, H, H)), proj_b=w((nl, H)),
        fc_w=w((nl, H, inner)), fc_b=w((nl, inner)),
        mp_w=w((nl, inner, H)), mp_b=w((nl, H)),
        ln_f=ln_pair(),
        w_pr=w((H, 1)), b_pr=w((1, 1)),
        w_ps=w((H, S)), b_ps=w((1, S)),
        w_pa=w((H, A)), b_pa=w((1, A)),
    )


# ------------------------------------ main ----------------------------------------

if __name__ == "__main__":
    cfg = dict(state_dim=8, act_dim=4, hidden=32, n_layer=2, n_head=2,
               max_ep_len=20, seq_len=8)
    B, T = 2, cfg['seq_len']

    key = jax.random.PRNGKey(0)
    pkey, k1, k2, k3, k4 = jax.random.split(key, 5)
    params = init_params(pkey, cfg)

    states = jax.random.normal(k1, (B, T, cfg['state_dim']), dtype=jnp.float32)
    actions = jax.random.normal(k2, (B, T, cfg['act_dim']), dtype=jnp.float32)
    returns_to_go = jax.random.normal(k3, (B, T, 1), dtype=jnp.float32)
    timesteps = jax.random.randint(k4, (B, T), 0, cfg['max_ep_len'])
    rewards = None  # unused by forward()

    state_preds, action_preds, return_preds = decision_transformer_pallas(
        params, cfg, states, actions, returns_to_go, timesteps, batch_size=B)
    jax.block_until_ready((state_preds, action_preds, return_preds))

    assert state_preds.shape == (B, T, cfg['state_dim'])
    assert action_preds.shape == (B, T, cfg['act_dim'])
    assert return_preds.shape == (B, T, 1)

    attn_mask = jnp.ones((B, T), dtype=jnp.int32)
    sp_r, ap_r, rp_r = reference_forward(params, cfg, states, actions,
                                         returns_to_go, timesteps, attn_mask)
    for got, want in ((state_preds, sp_r), (action_preds, ap_r), (return_preds, rp_r)):
        err = float(jnp.max(jnp.abs(got - want)))
        assert jnp.allclose(got, want, rtol=5e-3, atol=5e-3), err

    print("KERNEL_OK")
</pallas_src>

<mosaic_0001>
module attributes {stable_mosaic.version = 11 : i64} {
  func.func @dt_kernel(%arg0: i32, %arg1: memref<2x8x8xf32, #tpu.memory_space<vmem>>, %arg2: memref<2x8x4xf32, #tpu.memory_space<vmem>>, %arg3: memref<2x8x1xf32, #tpu.memory_space<vmem>>, %arg4: memref<2x8x32xf32, #tpu.memory_space<vmem>>, %arg5: memref<2x24x24xf32, #tpu.memory_space<vmem>>, %arg6: memref<20x32xf32, #tpu.memory_space<vmem>>, %arg7: memref<48x32xf32, #tpu.memory_space<vmem>>, %arg8: memref<8x32xf32, #tpu.memory_space<vmem>>, %arg9: memref<4x32xf32, #tpu.memory_space<vmem>>, %arg10: memref<2x32x96xf32, #tpu.memory_space<vmem>>, %arg11: memref<2x96xf32, #tpu.memory_space<vmem>>, %arg12: memref<2x32x32xf32, #tpu.memory_space<vmem>>, %arg13: memref<2x32x128xf32, #tpu.memory_space<vmem>>, %arg14: memref<2x128xf32, #tpu.memory_space<vmem>>, %arg15: memref<2x128x32xf32, #tpu.memory_space<vmem>>, %arg16: memref<32x128xf32, #tpu.memory_space<vmem>>, %arg17: memref<32x128xf32, #tpu.memory_space<vmem>>, %arg18: memref<1x128xf32, #tpu.memory_space<vmem>>, %arg19: memref<48x48xf32, #tpu.memory_space<vmem>>, %arg20: memref<32x48xf32, #tpu.memory_space<vmem>>, %arg21: memref<2x8x128xf32, #tpu.memory_space<vmem>>) attributes {dimension_semantics = [#tpu.dimension_semantics<parallel>], iteration_bounds = array<i64: 1>, scalar_prefetch = 0 : i64, scratch_operands = 0 : i64, tpu.core_type = #tpu.core_type<tc>, window_params = [{transform_indices = @transform_0, window_bounds = array<i64: 2, 8, 8>}, {transform_indices = @transform_1, window_bounds = array<i64: 2, 8, 4>}, {transform_indices = @transform_2, window_bounds = array<i64: 2, 8, 1>}, {transform_indices = @transform_3, window_bounds = array<i64: 2, 8, 32>}, {transform_indices = @transform_4, window_bounds = array<i64: 2, 24, 24>}, {pipeline_mode = #tpu.pipeline_mode<synchronous>, transform_indices = @transform_5, window_bounds = array<i64: 20, 32>}, {pipeline_mode = #tpu.pipeline_mode<synchronous>, transform_indices = @transform_6, window_bounds = array<i64: 48, 32>}, {pipeline_mode = #tpu.pipeline_mode<synchronous>, transform_indices = @transform_7, window_bounds = array<i64: 8, 32>}, {pipeline_mode = #tpu.pipeline_mode<synchronous>, transform_indices = @transform_8, window_bounds = array<i64: 4, 32>}, {pipeline_mode = #tpu.pipeline_mode<synchronous>, transform_indices = @transform_9, window_bounds = array<i64: 2, 32, 96>}, {pipeline_mode = #tpu.pipeline_mode<synchronous>, transform_indices = @transform_10, window_bounds = array<i64: 2, 96>}, {pipeline_mode = #tpu.pipeline_mode<synchronous>, transform_indices = @transform_11, window_bounds = array<i64: 2, 32, 32>}, {pipeline_mode = #tpu.pipeline_mode<synchronous>, transform_indices = @transform_12, window_bounds = array<i64: 2, 32, 128>}, {pipeline_mode = #tpu.pipeline_mode<synchronous>, transform_indices = @transform_13, window_bounds = array<i64: 2, 128>}, {pipeline_mode = #tpu.pipeline_mode<synchronous>, transform_indices = @transform_14, window_bounds = array<i64: 2, 128, 32>}, {pipeline_mode = #tpu.pipeline_mode<synchronous>, transform_indices = @transform_15, window_bounds = array<i64: 32, 128>}, {pipeline_mode = #tpu.pipeline_mode<synchronous>, transform_indices = @transform_16, window_bounds = array<i64: 32, 128>}, {pipeline_mode = #tpu.pipeline_mode<synchronous>, transform_indices = @transform_17, window_bounds = array<i64: 1, 128>}, {pipeline_mode = #tpu.pipeline_mode<synchronous>, transform_indices = @transform_18, window_bounds = array<i64: 48, 48>}, {pipeline_mode = #tpu.pipeline_mode<synchronous>, transform_indices = @transform_19, window_bounds = array<i64: 32, 48>}, {transform_indices = @transform_20, window_bounds = array<i64: 2, 8, 128>}]} {
    %c0 = arith.constant 0 : index
    %c0_0 = arith.constant 0 : index
    %0 = vector.load %arg6[%c0, %c0_0] : memref<20x32xf32, #tpu.memory_space<vmem>>, vector<20x32xf32>
    %1 = vector.extract_strided_slice %0 {offsets = [0, 0], sizes = [1, 32], strides = [1, 1]} : vector<20x32xf32> to vector<1x32xf32>
    %2 = vector.shape_cast %1 : vector<1x32xf32> to vector<32xf32>
    %3 = vector.extract_strided_slice %0 {offsets = [1, 0], sizes = [1, 32], strides = [1, 1]} : vector<20x32xf32> to vector<1x32xf32>
    %4 = vector.shape_cast %3 : vector<1x32xf32> to vector<32xf32>
    %5 = vector.extract_strided_slice %0 {offsets = [2, 0], sizes = [1, 32], strides = [1, 1]} : vector<20x32xf32> to vector<1x32xf32>
    %6 = vector.shape_cast %5 : vector<1x32xf32> to vector<32xf32>
    %7 = vector.extract_strided_slice %0 {offsets = [3, 0], sizes = [1, 32], strides = [1, 1]} : vector<20x32xf32> to vector<1x32xf32>
    %8 = vector.shape_cast %7 : vector<1x32xf32> to vector<32xf32>
    %9 = vector.extract_strided_slice %0 {offsets = [4, 0], sizes = [1, 32], strides = [1, 1]} : vector<20x32xf32> to vector<1x32xf32>
    %10 = vector.shape_cast %9 : vector<1x32xf32> to vector<32xf32>
    %11 = vector.extract_strided_slice %0 {offsets = [5, 0], sizes = [1, 32], strides = [1, 1]} : vector<20x32xf32> to vector<1x32xf32>
    %12 = vector.shape_cast %11 : vector<1x32xf32> to vector<32xf32>
    %13 = vector.extract_strided_slice %0 {offsets = [6, 0], sizes = [1, 32], strides = [1, 1]} : vector<20x32xf32> to vector<1x32xf32>
    %14 = vector.shape_cast %13 : vector<1x32xf32> to vector<32xf32>
    %15 = vector.extract_strided_slice %0 {offsets = [7, 0], sizes = [1, 32], strides = [1, 1]} : vector<20x32xf32> to vector<1x32xf32>
    %16 = vector.shape_cast %15 : vector<1x32xf32> to vector<32xf32>
    %c0_1 = arith.constant 0 : index
    %c0_2 = arith.constant 0 : index
    %c0_3 = arith.constant 0 : index
    %17 = vector.load %arg1[%c0_1, %c0_2, %c0_3] : memref<2x8x8xf32, #tpu.memory_space<vmem>>, vector<2x8x8xf32>
    %18 = vector.shape_cast %17 : vector<2x8x8xf32> to vector<16x8xf32>
    %c0_4 = arith.constant 0 : index
    %c0_5 = arith.constant 0 : index
    %c0_6 = arith.constant 0 : index
    %19 = vector.load %arg2[%c0_4, %c0_5, %c0_6] : memref<2x8x4xf32, #tpu.memory_space<vmem>>, vector<2x8x4xf32>
    %20 = vector.shape_cast %19 : vector<2x8x4xf32> to vector<16x4xf32>
    %c0_7 = arith.constant 0 : index
    %c0_8 = arith.constant 0 : index
    %c0_9 = arith.constant 0 : index
    %21 = vector.load %arg3[%c0_7, %c0_8, %c0_9] : memref<2x8x1xf32, #tpu.memory_space<vmem>>, vector<2x8x1xf32>
    %22 = vector.shape_cast %21 : vector<2x8x1xf32> to vector<16x1xf32>
    %c0_10 = arith.constant 0 : index
    %c0_11 = arith.constant 0 : index
    %c0_12 = arith.constant 0 : index
    %23 = vector.load %arg4[%c0_10, %c0_11, %c0_12] : memref<2x8x32xf32, #tpu.memory_space<vmem>>, vector<2x8x32xf32>
    %24 = vector.shape_cast %23 : vector<2x8x32xf32> to vector<16x32xf32>
    %25 = vector.shape_cast %2 : vector<32xf32> to vector<1x32xf32>
    %26 = vector.broadcast %22 : vector<16x1xf32> to vector<16x32xf32>
    %27 = vector.broadcast %25 : vector<1x32xf32> to vector<16x32xf32>
    %28 = arith.mulf %26, %27 : vector<16x32xf32>
    %29 = vector.shape_cast %4 : vector<32xf32> to vector<1x32xf32>
    %30 = vector.broadcast %29 : vector<1x32xf32> to vector<16x32xf32>
    %31 = arith.addf %28, %30 : vector<16x32xf32>
    %32 = arith.addf %31, %24 : vector<16x32xf32>
    %c0_13 = arith.constant 0 : index
    %c0_14 = arith.constant 0 : index
    %33 = vector.load %arg8[%c0_13, %c0_14] : memref<8x32xf32, #tpu.memory_space<vmem>>, vector<8x32xf32>
    %cst = arith.constant dense<0.000000e+00> : vector<16x32xf32>
    %34 = tpu.matmul %18, %33, %cst {dimension_numbers = #tpu.dot_dimension_numbers<[1], [0], [0], [1], [0, 0, 1, 1], [], []>} : vector<16x8xf32>, vector<8x32xf32>, vector<16x32xf32> -> vector<16x32xf32>
    %35 = vector.shape_cast %6 : vector<32xf32> to vector<1x32xf32>
    %36 = vector.broadcast %35 : vector<1x32xf32> to vector<16x32xf32>
    %37 = arith.addf %34, %36 : vector<16x32xf32>
    %38 = arith.addf %37, %24 : vector<16x32xf32>
    %c0_15 = arith.constant 0 : index
    %c0_16 = arith.constant 0 : index
    %39 = vector.load %arg9[%c0_15, %c0_16] : memref<4x32xf32, #tpu.memory_space<vmem>>, vector<4x32xf32>
    %cst_17 = arith.constant dense<0.000000e+00> : vector<16x32xf32>
    %40 = tpu.matmul %20, %39, %cst_17 {dimension_numbers = #tpu.dot_dimension_numbers<[1], [0], [0], [1], [0, 0, 1, 1], [], []>} : vector<16x4xf32>, vector<4x32xf32>, vector<16x32xf32> -> vector<16x32xf32>
    %41 = vector.shape_cast %8 : vector<32xf32> to vector<1x32xf32>
    %42 = vector.broadcast %41 : vector<1x32xf32> to vector<16x32xf32>
    %43 = arith.addf %40, %42 : vector<16x32xf32>
    %44 = arith.addf %43, %24 : vector<16x32xf32>
    %45 = tpu.concatenate %32, %38, %44 in 0 : vector<16x32xf32>, vector<16x32xf32>, vector<16x32xf32> -> vector<48x32xf32>
    %c0_18 = arith.constant 0 : index
    %c0_19 = arith.constant 0 : index
    %46 = vector.load %arg19[%c0_18, %c0_19] : memref<48x48xf32, #tpu.memory_space<vmem>>, vector<48x48xf32>
    %cst_20 = arith.constant dense<0.000000e+00> : vector<48x32xf32>
    %47 = tpu.matmul %46, %45, %cst_20 {dimension_numbers = #tpu.dot_dimension_numbers<[1], [0], [0], [1], [0, 0, 1, 1], [], []>} : vector<48x48xf32>, vector<48x32xf32>, vector<48x32xf32> -> vector<48x32xf32>
    %cst_21 = arith.constant dense<0.000000e+00> : vector<48xf32>
    %48 = vector.multi_reduction <add>, %47, %cst_21 [1] : vector<48x32xf32> to vector<48xf32>
    %49 = vector.shape_cast %48 : vector<48xf32> to vector<48x1xf32>
    %cst_22 = arith.constant 3.200000e+01 : f32
    %50 = vector.broadcast %cst_22 : f32 to vector<48x1xf32>
    %51 = arith.divf %49, %50 : vector<48x1xf32>
    %52 = vector.broadcast %51 : vector<48x1xf32> to vector<48x32xf32>
    %53 = arith.subf %47, %52 : vector<48x32xf32>
    %54 = arith.mulf %53, %53 : vector<48x32xf32>
    %cst_23 = arith.constant dense<0.000000e+00> : vector<48xf32>
    %55 = vector.multi_reduction <add>, %54, %cst_23 [1] : vector<48x32xf32> to vector<48xf32>
    %56 = vector.shape_cast %55 : vector<48xf32> to vector<48x1xf32>
    %cst_24 = arith.constant 3.200000e+01 : f32
    %57 = vector.broadcast %cst_24 : f32 to vector<48x1xf32>
    %58 = arith.divf %56, %57 : vector<48x1xf32>
    %59 = vector.broadcast %51 : vector<48x1xf32> to vector<48x32xf32>
    %60 = arith.subf %47, %59 : vector<48x32xf32>
    %cst_25 = arith.constant 9.99999974E-6 : f32
    %61 = vector.broadcast %cst_25 : f32 to vector<48x1xf32>
    %62 = arith.addf %58, %61 : vector<48x1xf32>
    %63 = math.rsqrt %62 : vector<48x1xf32>
    %64 = vector.broadcast %63 : vector<48x1xf32> to vector<48x32xf32>
    %65 = arith.mulf %60, %64 : vector<48x32xf32>
    %66 = vector.shape_cast %10 : vector<32xf32> to vector<1x32xf32>
    %67 = vector.broadcast %66 : vector<1x32xf32> to vector<48x32xf32>
    %68 = arith.mulf %65, %67 : vector<48x32xf32>
    %69 = vector.shape_cast %12 : vector<32xf32> to vector<1x32xf32>
    %70 = vector.broadcast %69 : vector<1x32xf32> to vector<48x32xf32>
    %71 = arith.addf %68, %70 : vector<48x32xf32>
    %c0_26 = arith.constant 0 : index
    %c0_27 = arith.constant 0 : index
    %72 = vector.load %arg7[%c0_26, %c0_27] : memref<48x32xf32, #tpu.memory_space<vmem>>, vector<48x32xf32>
    %73 = arith.addf %71, %72 : vector<48x32xf32>
    %c0_28 = arith.constant 0 : index
    %c0_29 = arith.constant 0 : index
    %c0_30 = arith.constant 0 : index
    %74 = vector.load %arg5[%c0_28, %c0_29, %c0_30] : memref<2x24x24xf32, #tpu.memory_space<vmem>>, vector<2x24x24xf32>
    %75 = vector.extract_strided_slice %0 {offsets = [8, 0], sizes = [1, 32], strides = [1, 1]} : vector<20x32xf32> to vector<1x32xf32>
    %76 = vector.shape_cast %75 : vector<1x32xf32> to vector<32xf32>
    %77 = vector.extract_strided_slice %0 {offsets = [9, 0], sizes = [1, 32], strides = [1, 1]} : vector<20x32xf32> to vector<1x32xf32>
    %78 = vector.shape_cast %77 : vector<1x32xf32> to vector<32xf32>
    %79 = vector.extract_strided_slice %0 {offsets = [10, 0], sizes = [1, 32], strides = [1, 1]} : vector<20x32xf32> to vector<1x32xf32>
    %80 = vector.shape_cast %79 : vector<1x32xf32> to vector<32xf32>
    %81 = vector.extract_strided_slice %0 {offsets = [11, 0], sizes = [1, 32], strides = [1, 1]} : vector<20x32xf32> to vector<1x32xf32>
    %82 = vector.shape_cast %81 : vector<1x32xf32> to vector<32xf32>
    %83 = vector.extract_strided_slice %0 {offsets = [12, 0], sizes = [1, 32], strides = [1, 1]} : vector<20x32xf32> to vector<1x32xf32>
    %84 = vector.shape_cast %83 : vector<1x32xf32> to vector<32xf32>
    %85 = vector.extract_strided_slice %0 {offsets = [13, 0], sizes = [1, 32], strides = [1, 1]} : vector<20x32xf32> to vector<1x32xf32>
    %86 = vector.shape_cast %85 : vector<1x32xf32> to vector<32xf32>
    %cst_31 = arith.constant dense<0.000000e+00> : vector<48xf32>
    %87 = vector.multi_reduction <add>, %73, %cst_31 [1] : vector<48x32xf32> to vector<48xf32>
    %88 = vector.shape_cast %87 : vector<48xf32> to vector<48x1xf32>
    %cst_32 = arith.constant 3.200000e+01 : f32
    %89 = vector.broadcast %cst_32 : f32 to vector<48x1xf32>
    %90 = arith.divf %88, %89 : vector<48x1xf32>
    %91 = vector.broadcast %90 : vector<48x1xf32> to vector<48x32xf32>
    %92 = arith.subf %73, %91 : vector<48x32xf32>
    %93 = arith.mulf %92, %92 : vector<48x32xf32>
    %cst_33 = arith.constant dense<0.000000e+00> : vector<48xf32>
    %94 = vector.multi_reduction <add>, %93, %cst_33 [1] : vector<48x32xf32> to vector<48xf32>
    %95 = vector.shape_cast %94 : vector<48xf32> to vector<48x1xf32>
    %cst_34 = arith.constant 3.200000e+01 : f32
    %96 = vector.broadcast %cst_34 : f32 to vector<48x1xf32>
    %97 = arith.divf %95, %96 : vector<48x1xf32>
    %98 = vector.broadcast %90 : vector<48x1xf32> to vector<48x32xf32>
    %99 = arith.subf %73, %98 : vector<48x32xf32>
    %cst_35 = arith.constant 9.99999974E-6 : f32
    %100 = vector.broadcast %cst_35 : f32 to vector<48x1xf32>
    %101 = arith.addf %97, %100 : vector<48x1xf32>
    %102 = math.rsqrt %101 : vector<48x1xf32>
    %103 = vector.broadcast %102 : vector<48x1xf32> to vector<48x32xf32>
    %104 = arith.mulf %99, %103 : vector<48x32xf32>
    %105 = vector.shape_cast %76 : vector<32xf32> to vector<1x32xf32>
    %106 = vector.broadcast %105 : vector<1x32xf32> to vector<48x32xf32>
    %107 = arith.mulf %104, %106 : vector<48x32xf32>
    %108 = vector.shape_cast %78 : vector<32xf32> to vector<1x32xf32>
    %109 = vector.broadcast %108 : vector<1x32xf32> to vector<48x32xf32>
    %110 = arith.addf %107, %109 : vector<48x32xf32>
    %c0_36 = arith.constant 0 : index
    %c0_37 = arith.constant 0 : index
    %c0_38 = arith.constant 0 : index
    %111 = vector.load %arg10[%c0_36, %c0_37, %c0_38] : memref<2x32x96xf32, #tpu.memory_space<vmem>>, vector<1x32x96xf32>
    %112 = vector.shape_cast %111 : vector<1x32x96xf32> to vector<32x96xf32>
    %cst_39 = arith.constant dense<0.000000e+00> : vector<48x96xf32>
    %113 = tpu.matmul %110, %112, %cst_39 {dimension_numbers = #tpu.dot_dimension_numbers<[1], [0], [0], [1], [0, 0, 1, 1], [], []>} : vector<48x32xf32>, vector<32x96xf32>, vector<48x96xf32> -> vector<48x96xf32>
    %c0_40 = arith.constant 0 : index
    %c0_41 = arith.constant 0 : index
    %114 = vector.load %arg11[%c0_40, %c0_41] : memref<2x96xf32, #tpu.memory_space<vmem>>, vector<1x96xf32>
    %115 = vector.shape_cast %114 : vector<1x96xf32> to vector<96xf32>
    %116 = vector.shape_cast %115 : vector<96xf32> to vector<1x96xf32>
    %117 = vector.broadcast %116 : vector<1x96xf32> to vector<48x96xf32>
    %118 = arith.addf %113, %117 : vector<48x96xf32>
    %119 = vector.shape_cast %118 : vector<48x96xf32> to vector<2x24x96xf32>
    %c0_42 = arith.constant 0 : index
    %c0_43 = arith.constant 0 : index
    %c0_44 = arith.constant 0 : index
    %120 = vector.load %arg12[%c0_42, %c0_43, %c0_44] : memref<2x32x32xf32, #tpu.memory_space<vmem>>, vector<1x32x32xf32>
    %121 = vector.shape_cast %120 : vector<1x32x32xf32> to vector<32x32xf32>
    %cst_45 = arith.constant 0.000000e+00 : f32
    %122 = vector.broadcast %cst_45 : f32 to vector<48x32xf32>
    %123 = vector.extract_strided_slice %119 {offsets = [0, 0, 0], sizes = [2, 24, 16], strides = [1, 1, 1]} : vector<2x24x96xf32> to vector<2x24x16xf32>
    %124 = vector.extract_strided_slice %119 {offsets = [0, 0, 32], sizes = [2, 24, 16], strides = [1, 1, 1]} : vector<2x24x96xf32> to vector<2x24x16xf32>
    %125 = vector.extract_strided_slice %119 {offsets = [0, 0, 64], sizes = [2, 24, 16], strides = [1, 1, 1]} : vector<2x24x96xf32> to vector<2x24x16xf32>
    "tpu.trace_start"() <{level = 10 : i32, message = "bqd,bkd->bqk"}> : () -> ()
    %cst_46 = arith.constant dense<0.000000e+00> : vector<2x24x24xf32>
    %126 = tpu.matmul %123, %124, %cst_46 {dimension_numbers = #tpu.dot_dimension_numbers<[2], [2], [1], [1], [0, 0, 0, 1, 1, 1], [0], [0]>} : vector<2x24x16xf32>, vector<2x24x16xf32>, vector<2x24x24xf32> -> vector<2x24x24xf32>
    "tpu.trace_stop"() : () -> ()
    %cst_47 = arith.constant 2.500000e-01 : f32
    %127 = vector.broadcast %cst_47 : f32 to vector<2x24x24xf32>
    %128 = arith.mulf %126, %127 : vector<2x24x24xf32>
    %129 = arith.addf %128, %74 : vector<2x24x24xf32>
    %cst_48 = arith.constant dense<0xFF800000> : vector<2x24xf32>
    %130 = vector.multi_reduction <maximumf>, %129, %cst_48 [2] : vector<2x24x24xf32> to vector<2x24xf32>
    %131 = vector.shape_cast %130 : vector<2x24xf32> to vector<2x24x1xf32>
    %132 = vector.broadcast %131 : vector<2x24x1xf32> to vector<2x24x24xf32>
    %133 = arith.subf %129, %132 : vector<2x24x24xf32>
    %134 = math.exp %133 : vector<2x24x24xf32>
    %cst_49 = arith.constant dense<0.000000e+00> : vector<2x24xf32>
    %135 = vector.multi_reduction <add>, %134, %cst_49 [2] : vector<2x24x24xf32> to vector<2x24xf32>
    %136 = vector.shape_cast %135 : vector<2x24xf32> to vector<2x24x1xf32>
    %137 = tpu.reciprocal %136 {approx = true} : vector<2x24x1xf32> -> vector<2x24x1xf32>
    %138 = vector.broadcast %137 : vector<2x24x1xf32> to vector<2x24x24xf32>
    %139 = arith.mulf %134, %138 : vector<2x24x24xf32>
    "tpu.trace_start"() <{level = 10 : i32, message = "bqk,bkd->bqd"}> : () -> ()
    %cst_50 = arith.constant dense<0.000000e+00> : vector<2x24x16xf32>
    %140 = tpu.matmul %139, %125, %cst_50 {dimension_numbers = #tpu.dot_dimension_numbers<[2], [1], [1], [2], [0, 0, 0, 1, 1, 2], [0], [0]>} : vector<2x24x24xf32>, vector<2x24x16xf32>, vector<2x24x16xf32> -> vector<2x24x16xf32>
    "tpu.trace_stop"() : () -> ()
    %141 = vector.shape_cast %140 : vector<2x24x16xf32> to vector<48x16xf32>
    %142 = vector.extract_strided_slice %121 {offsets = [0, 0], sizes = [16, 32], strides = [1, 1]} : vector<32x32xf32> to vector<16x32xf32>
    %cst_51 = arith.constant dense<0.000000e+00> : vector<48x32xf32>
    %143 = tpu.matmul %141, %142, %cst_51 {dimension_numbers = #tpu.dot_dimension_numbers<[1], [0], [0], [1], [0, 0, 1, 1], [], []>} : vector<48x16xf32>, vector<16x32xf32>, vector<48x32xf32> -> vector<48x32xf32>
    %144 = arith.addf %122, %143 : vector<48x32xf32>
    %145 = vector.extract_strided_slice %119 {offsets = [0, 0, 16], sizes = [2, 24, 16], strides = [1, 1, 1]} : vector<2x24x96xf32> to vector<2x24x16xf32>
    %146 = vector.extract_strided_slice %119 {offsets = [0, 0, 48], sizes = [2, 24, 16], strides = [1, 1, 1]} : vector<2x24x96xf32> to vector<2x24x16xf32>
    %147 = vector.extract_strided_slice %119 {offsets = [0, 0, 80], sizes = [2, 24, 16], strides = [1, 1, 1]} : vector<2x24x96xf32> to vector<2x24x16xf32>
    "tpu.trace_start"() <{level = 10 : i32, message = "bqd,bkd->bqk"}> : () -> ()
    %cst_52 = arith.constant dense<0.000000e+00> : vector<2x24x24xf32>
    %148 = tpu.matmul %145, %146, %cst_52 {dimension_numbers = #tpu.dot_dimension_numbers<[2], [2], [1], [1], [0, 0, 0, 1, 1, 1], [0], [0]>} : vector<2x24x16xf32>, vector<2x24x16xf32>, vector<2x24x24xf32> -> vector<2x24x24xf32>
    "tpu.trace_stop"() : () -> ()
    %cst_53 = arith.constant 2.500000e-01 : f32
    %149 = vector.broadcast %cst_53 : f32 to vector<2x24x24xf32>
    %150 = arith.mulf %148, %149 : vector<2x24x24xf32>
    %151 = arith.addf %150, %74 : vector<2x24x24xf32>
    %cst_54 = arith.constant dense<0xFF800000> : vector<2x24xf32>
    %152 = vector.multi_reduction <maximumf>, %151, %cst_54 [2] : vector<2x24x24xf32> to vector<2x24xf32>
    %153 = vector.shape_cast %152 : vector<2x24xf32> to vector<2x24x1xf32>
    %154 = vector.broadcast %153 : vector<2x24x1xf32> to vector<2x24x24xf32>
    %155 = arith.subf %151, %154 : vector<2x24x24xf32>
    %156 = math.exp %155 : vector<2x24x24xf32>
    %cst_55 = arith.constant dense<0.000000e+00> : vector<2x24xf32>
    %157 = vector.multi_reduction <add>, %156, %cst_55 [2] : vector<2x24x24xf32> to vector<2x24xf32>
    %158 = vector.shape_cast %157 : vector<2x24xf32> to vector<2x24x1xf32>
    %159 = tpu.reciprocal %158 {approx = true} : vector<2x24x1xf32> -> vector<2x24x1xf32>
    %160 = vector.broadcast %159 : vector<2x24x1xf32> to vector<2x24x24xf32>
    %161 = arith.mulf %156, %160 : vector<2x24x24xf32>
    "tpu.trace_start"() <{level = 10 : i32, message = "bqk,bkd->bqd"}> : () -> ()
    %cst_56 = arith.constant dense<0.000000e+00> : vector<2x24x16xf32>
    %162 = tpu.matmul %161, %147, %cst_56 {dimension_numbers = #tpu.dot_dimension_numbers<[2], [1], [1], [2], [0, 0, 0, 1, 1, 2], [0], [0]>} : vector<2x24x24xf32>, vector<2x24x16xf32>, vector<2x24x16xf32> -> vector<2x24x16xf32>
    "tpu.trace_stop"() : () -> ()
    %163 = vector.shape_cast %162 : vector<2x24x16xf32> to vector<48x16xf32>
    %164 = vector.extract_strided_slice %121 {offsets = [16, 0], sizes = [16, 32], strides = [1, 1]} : vector<32x32xf32> to vector<16x32xf32>
    %cst_57 = arith.constant dense<0.000000e+00> : vector<48x32xf32>
    %165 = tpu.matmul %163, %164, %cst_57 {dimension_numbers = #tpu.dot_dimension_numbers<[1], [0], [0], [1], [0, 0, 1, 1], [], []>} : vector<48x16xf32>, vector<16x32xf32>, vector<48x32xf32> -> vector<48x32xf32>
    %166 = arith.addf %144, %165 : vector<48x32xf32>
    %167 = arith.addf %73, %166 : vector<48x32xf32>
    %168 = vector.shape_cast %84 : vector<32xf32> to vector<1x32xf32>
    %169 = vector.broadcast %168 : vector<1x32xf32> to vector<48x32xf32>
    %170 = arith.addf %167, %169 : vector<48x32xf32>
    %cst_58 = arith.constant dense<0.000000e+00> : vector<48xf32>
    %171 = vector.multi_reduction <add>, %170, %cst_58 [1] : vector<48x32xf32> to vector<48xf32>
    %172 = vector.shape_cast %171 : vector<48xf32> to vector<48x1xf32>
    %cst_59 = arith.constant 3.200000e+01 : f32
    %173 = vector.broadcast %cst_59 : f32 to vector<48x1xf32>
    %174 = arith.divf %172, %173 : vector<48x1xf32>
    %175 = vector.broadcast %174 : vector<48x1xf32> to vector<48x32xf32>
    %176 = arith.subf %170, %175 : vector<48x32xf32>
    %177 = arith.mulf %176, %176 : vector<48x32xf32>
    %cst_60 = arith.constant dense<0.000000e+00> : vector<48xf32>
    %178 = vector.multi_reduction <add>, %177, %cst_60 [1] : vector<48x32xf32> to vector<48xf32>
    %179 = vector.shape_cast %178 : vector<48xf32> to vector<48x1xf32>
    %cst_61 = arith.constant 3.200000e+01 : f32
    %180 = vector.broadcast %cst_61 : f32 to vector<48x1xf32>
    %181 = arith.divf %179, %180 : vector<48x1xf32>
    %182 = vector.broadcast %174 : vector<48x1xf32> to vector<48x32xf32>
    %183 = arith.subf %170, %182 : vector<48x32xf32>
    %cst_62 = arith.constant 9.99999974E-6 : f32
    %184 = vector.broadcast %cst_62 : f32 to vector<48x1xf32>
    %185 = arith.addf %181, %184 : vector<48x1xf32>
    %186 = math.rsqrt %185 : vector<48x1xf32>
    %187 = vector.broadcast %186 : vector<48x1xf32> to vector<48x32xf32>
    %188 = arith.mulf %183, %187 : vector<48x32xf32>
    %189 = vector.shape_cast %80 : vector<32xf32> to vector<1x32xf32>
    %190 = vector.broadcast %189 : vector<1x32xf32> to vector<48x32xf32>
    %191 = arith.mulf %188, %190 : vector<48x32xf32>
    %192 = vector.shape_cast %82 : vector<32xf32> to vector<1x32xf32>
    %193 = vector.broadcast %192 : vector<1x32xf32> to vector<48x32xf32>
    %194 = arith.addf %191, %193 : vector<48x32xf32>
    %c0_63 = arith.constant 0 : index
    %c0_64 = arith.constant 0 : index
    %c0_65 = arith.constant 0 : index
    %195 = vector.load %arg13[%c0_63, %c0_64, %c0_65] : memref<2x32x128xf32, #tpu.memory_space<vmem>>, vector<1x32x128xf32>
    %196 = vector.shape_cast %195 : vector<1x32x128xf32> to vector<32x128xf32>
    %cst_66 = arith.constant dense<0.000000e+00> : vector<48x128xf32>
    %197 = tpu.matmul %194, %196, %cst_66 {dimension_numbers = #tpu.dot_dimension_numbers<[1], [0], [0], [1], [0, 0, 1, 1], [], []>} : vector<48x32xf32>, vector<32x128xf32>, vector<48x128xf32> -> vector<48x128xf32>
    %c0_67 = arith.constant 0 : index
    %c0_68 = arith.constant 0 : index
    %198 = vector.load %arg14[%c0_67, %c0_68] : memref<2x128xf32, #tpu.memory_space<vmem>>, vector<1x128xf32>
    %199 = vector.shape_cast %198 : vector<1x128xf32> to vector<128xf32>
    %200 = vector.shape_cast %199 : vector<128xf32> to vector<1x128xf32>
    %201 = vector.broadcast %200 : vector<1x128xf32> to vector<48x128xf32>
    %202 = arith.addf %197, %201 : vector<48x128xf32>
    %cst_69 = arith.constant 5.000000e-01 : f32
    %203 = vector.broadcast %cst_69 : f32 to vector<48x128xf32>
    %204 = arith.mulf %203, %202 : vector<48x128xf32>
    %205 = arith.mulf %202, %202 : vector<48x128xf32>
    %206 = arith.mulf %202, %205 : vector<48x128xf32>
    %cst_70 = arith.constant 4.471500e-02 : f32
    %207 = vector.broadcast %cst_70 : f32 to vector<48x128xf32>
    %208 = arith.mulf %207, %206 : vector<48x128xf32>
    %209 = arith.addf %202, %208 : vector<48x128xf32>
    %cst_71 = arith.constant 0.797884583 : f32
    %210 = vector.broadcast %cst_71 : f32 to vector<48x128xf32>
    %211 = arith.mulf %210, %209 : vector<48x128xf32>
    %212 = math.tanh %211 : vector<48x128xf32>
    %cst_72 = arith.constant 1.000000e+00 : f32
    %213 = vector.broadcast %cst_72 : f32 to vector<48x128xf32>
    %214 = arith.addf %213, %212 : vector<48x128xf32>
    %215 = arith.mulf %204, %214 : vector<48x128xf32>
    %c0_73 = arith.constant 0 : index
    %c0_74 = arith.constant 0 : index
    %c0_75 = arith.constant 0 : index
    %216 = vector.load %arg15[%c0_73, %c0_74, %c0_75] : memref<2x128x32xf32, #tpu.memory_space<vmem>>, vector<1x128x32xf32>
    %217 = vector.shape_cast %216 : vector<1x128x32xf32> to vector<128x32xf32>
    %cst_76 = arith.constant dense<0.000000e+00> : vector<48x32xf32>
    %218 = tpu.matmul %215, %217, %cst_76 {dimension_numbers = #tpu.dot_dimension_numbers<[1], [0], [0], [1], [0, 0, 1, 1], [], []>} : vector<48x128xf32>, vector<128x32xf32>, vector<48x32xf32> -> vector<48x32xf32>
    %219 = arith.addf %170, %218 : vector<48x32xf32>
    %220 = vector.shape_cast %86 : vector<32xf32> to vector<1x32xf32>
    %221 = vector.broadcast %220 : vector<1x32xf32> to vector<48x32xf32>
    %222 = arith.addf %219, %221 : vector<48x32xf32>
    %223 = vector.extract_strided_slice %0 {offsets = [14, 0], sizes = [1, 32], strides = [1, 1]} : vector<20x32xf32> to vector<1x32xf32>
    %224 = vector.shape_cast %223 : vector<1x32xf32> to vector<32xf32>
    %225 = vector.extract_strided_slice %0 {offsets = [15, 0], sizes = [1, 32], strides = [1, 1]} : vector<20x32xf32> to vector<1x32xf32>
    %226 = vector.shape_cast %225 : vector<1x32xf32> to vector<32xf32>
    %227 = vector.extract_strided_slice %0 {offsets = [16, 0], sizes = [1, 32], strides = [1, 1]} : vector<20x32xf32> to vector<1x32xf32>
    %228 = vector.shape_cast %227 : vector<1x32xf32> to vector<32xf32>
    %229 = vector.extract_strided_slice %0 {offsets = [17, 0], sizes = [1, 32], strides = [1, 1]} : vector<20x32xf32> to vector<1x32xf32>
    %230 = vector.shape_cast %229 : vector<1x32xf32> to vector<32xf32>
    %231 = vector.extract_strided_slice %0 {offsets = [18, 0], sizes = [1, 32], strides = [1, 1]} : vector<20x32xf32> to vector<1x32xf32>
    %232 = vector.shape_cast %231 : vector<1x32xf32> to vector<32xf32>
    %233 = vector.extract_strided_slice %0 {offsets = [19, 0], sizes = [1, 32], strides = [1, 1]} : vector<20x32xf32> to vector<1x32xf32>
    %234 = vector.shape_cast %233 : vector<1x32xf32> to vector<32xf32>
    %cst_77 = arith.constant dense<0.000000e+00> : vector<48xf32>
    %235 = vector.multi_reduction <add>, %222, %cst_77 [1] : vector<48x32xf32> to vector<48xf32>
    %236 = vector.shape_cast %235 : vector<48xf32> to vector<48x1xf32>
    %cst_78 = arith.constant 3.200000e+01 : f32
    %237 = vector.broadcast %cst_78 : f32 to vector<48x1xf32>
    %238 = arith.divf %236, %237 : vector<48x1xf32>
    %239 = vector.broadcast %238 : vector<48x1xf32> to vector<48x32xf32>
    %240 = arith.subf %222, %239 : vector<48x32xf32>
    %241 = arith.mulf %240, %240 : vector<48x32xf32>
    %cst_79 = arith.constant dense<0.000000e+00> : vector<48xf32>
    %242 = vector.multi_reduction <add>, %241, %cst_79 [1] : vector<48x32xf32> to vector<48xf32>
    %243 = vector.shape_cast %242 : vector<48xf32> to vector<48x1xf32>
    %cst_80 = arith.constant 3.200000e+01 : f32
    %244 = vector.broadcast %cst_80 : f32 to vector<48x1xf32>
    %245 = arith.divf %243, %244 : vector<48x1xf32>
    %246 = vector.broadcast %238 : vector<48x1xf32> to vector<48x32xf32>
    %247 = arith.subf %222, %246 : vector<48x32xf32>
    %cst_81 = arith.constant 9.99999974E-6 : f32
    %248 = vector.broadcast %cst_81 : f32 to vector<48x1xf32>
    %249 = arith.addf %245, %248 : vector<48x1xf32>
    %250 = math.rsqrt %249 : vector<48x1xf32>
    %251 = vector.broadcast %250 : vector<48x1xf32> to vector<48x32xf32>
    %252 = arith.mulf %247, %251 : vector<48x32xf32>
    %253 = vector.shape_cast %224 : vector<32xf32> to vector<1x32xf32>
    %254 = vector.broadcast %253 : vector<1x32xf32> to vector<48x32xf32>
    %255 = arith.mulf %252, %254 : vector<48x32xf32>
    %256 = vector.shape_cast %226 : vector<32xf32> to vector<1x32xf32>
    %257 = vector.broadcast %256 : vector<1x32xf32> to vector<48x32xf32>
    %258 = arith.addf %255, %257 : vector<48x32xf32>
    %c1 = arith.constant 1 : index
    %c0_82 = arith.constant 0 : index
    %c0_83 = arith.constant 0 : index
    %259 = vector.load %arg10[%c1, %c0_82, %c0_83] : memref<2x32x96xf32, #tpu.memory_space<vmem>>, vector<1x32x96xf32>
    %260 = vector.shape_cast %259 : vector<1x32x96xf32> to vector<32x96xf32>
    %cst_84 = arith.constant dense<0.000000e+00> : vector<48x96xf32>
    %261 = tpu.matmul %258, %260, %cst_84 {dimension_numbers = #tpu.dot_dimension_numbers<[1], [0], [0], [1], [0, 0, 1, 1], [], []>} : vector<48x32xf32>, vector<32x96xf32>, vector<48x96xf32> -> vector<48x96xf32>
    %c1_85 = arith.constant 1 : index
    %c0_86 = arith.constant 0 : index
    %262 = vector.load %arg11[%c1_85, %c0_86] : memref<2x96xf32, #tpu.memory_space<vmem>>, vector<1x96xf32>
    %263 = vector.shape_cast %262 : vector<1x96xf32> to vector<96xf32>
    %264 = vector.shape_cast %263 : vector<96xf32> to vector<1x96xf32>
    %265 = vector.broadcast %264 : vector<1x96xf32> to vector<48x96xf32>
    %266 = arith.addf %261, %265 : vector<48x96xf32>
    %267 = vector.shape_cast %266 : vector<48x96xf32> to vector<2x24x96xf32>
    %c1_87 = arith.constant 1 : index
    %c0_88 = arith.constant 0 : index
    %c0_89 = arith.constant 0 : index
    %268 = vector.load %arg12[%c1_87, %c0_88, %c0_89] : memref<2x32x32xf32, #tpu.memory_space<vmem>>, vector<1x32x32xf32>
    %269 = vector.shape_cast %268 : vector<1x32x32xf32> to vector<32x32xf32>
    %cst_90 = arith.constant 0.000000e+00 : f32
    %270 = vector.broadcast %cst_90 : f32 to vector<48x32xf32>
    %271 = vector.extract_strided_slice %267 {offsets = [0, 0, 0], sizes = [2, 24, 16], strides = [1, 1, 1]} : vector<2x24x96xf32> to vector<2x24x16xf32>
    %272 = vector.extract_strided_slice %267 {offsets = [0, 0, 32], sizes = [2, 24, 16], strides = [1, 1, 1]} : vector<2x24x96xf32> to vector<2x24x16xf32>
    %273 = vector.extract_strided_slice %267 {offsets = [0, 0, 64], sizes = [2, 24, 16], strides = [1, 1, 1]} : vector<2x24x96xf32> to vector<2x24x16xf32>
    "tpu.trace_start"() <{level = 10 : i32, message = "bqd,bkd->bqk"}> : () -> ()
    %cst_91 = arith.constant dense<0.000000e+00> : vector<2x24x24xf32>
    %274 = tpu.matmul %271, %272, %cst_91 {dimension_numbers = #tpu.dot_dimension_numbers<[2], [2], [1], [1], [0, 0, 0, 1, 1, 1], [0], [0]>} : vector<2x24x16xf32>, vector<2x24x16xf32>, vector<2x24x24xf32> -> vector<2x24x24xf32>
    "tpu.trace_stop"() : () -> ()
    %cst_92 = arith.constant 2.500000e-01 : f32
    %275 = vector.broadcast %cst_92 : f32 to vector<2x24x24xf32>
    %276 = arith.mulf %274, %275 : vector<2x24x24xf32>
    %277 = arith.addf %276, %74 : vector<2x24x24xf32>
    %cst_93 = arith.constant dense<0xFF800000> : vector<2x24xf32>
    %278 = vector.multi_reduction <maximumf>, %277, %cst_93 [2] : vector<2x24x24xf32> to vector<2x24xf32>
    %279 = vector.shape_cast %278 : vector<2x24xf32> to vector<2x24x1xf32>
    %280 = vector.broadcast %279 : vector<2x24x1xf32> to vector<2x24x24xf32>
    %281 = arith.subf %277, %280 : vector<2x24x24xf32>
    %282 = math.exp %281 : vector<2x24x24xf32>
    %cst_94 = arith.constant dense<0.000000e+00> : vector<2x24xf32>
    %283 = vector.multi_reduction <add>, %282, %cst_94 [2] : vector<2x24x24xf32> to vector<2x24xf32>
    %284 = vector.shape_cast %283 : vector<2x24xf32> to vector<2x24x1xf32>
    %285 = tpu.reciprocal %284 {approx = true} : vector<2x24x1xf32> -> vector<2x24x1xf32>
    %286 = vector.broadcast %285 : vector<2x24x1xf32> to vector<2x24x24xf32>
    %287 = arith.mulf %282, %286 : vector<2x24x24xf32>
    "tpu.trace_start"() <{level = 10 : i32, message = "bqk,bkd->bqd"}> : () -> ()
    %cst_95 = arith.constant dense<0.000000e+00> : vector<2x24x16xf32>
    %288 = tpu.matmul %287, %273, %cst_95 {dimension_numbers = #tpu.dot_dimension_numbers<[2], [1], [1], [2], [0, 0, 0, 1, 1, 2], [0], [0]>} : vector<2x24x24xf32>, vector<2x24x16xf32>, vector<2x24x16xf32> -> vector<2x24x16xf32>
    "tpu.trace_stop"() : () -> ()
    %289 = vector.shape_cast %288 : vector<2x24x16xf32> to vector<48x16xf32>
    %290 = vector.extract_strided_slice %269 {offsets = [0, 0], sizes = [16, 32], strides = [1, 1]} : vector<32x32xf32> to vector<16x32xf32>
    %cst_96 = arith.constant dense<0.000000e+00> : vector<48x32xf32>
    %291 = tpu.matmul %289, %290, %cst_96 {dimension_numbers = #tpu.dot_dimension_numbers<[1], [0], [0], [1], [0, 0, 1, 1], [], []>} : vector<48x16xf32>, vector<16x32xf32>, vector<48x32xf32> -> vector<48x32xf32>
    %292 = arith.addf %270, %291 : vector<48x32xf32>
    %293 = vector.extract_strided_slice %267 {offsets = [0, 0, 16], sizes = [2, 24, 16], strides = [1, 1, 1]} : vector<2x24x96xf32> to vector<2x24x16xf32>
    %294 = vector.extract_strided_slice %267 {offsets = [0, 0, 48], sizes = [2, 24, 16], strides = [1, 1, 1]} : vector<2x24x96xf32> to vector<2x24x16xf32>
    %295 = vector.extract_strided_slice %267 {offsets = [0, 0, 80], sizes = [2, 24, 16], strides = [1, 1, 1]} : vector<2x24x96xf32> to vector<2x24x16xf32>
    "tpu.trace_start"() <{level = 10 : i32, message = "bqd,bkd->bqk"}> : () -> ()
    %cst_97 = arith.constant dense<0.000000e+00> : vector<2x24x24xf32>
    %296 = tpu.matmul %293, %294, %cst_97 {dimension_numbers = #tpu.dot_dimension_numbers<[2], [2], [1], [1], [0, 0, 0, 1, 1, 1], [0], [0]>} : vector<2x24x16xf32>, vector<2x24x16xf32>, vector<2x24x24xf32> -> vector<2x24x24xf32>
    "tpu.trace_stop"() : () -> ()
    %cst_98 = arith.constant 2.500000e-01 : f32
    %297 = vector.broadcast %cst_98 : f32 to vector<2x24x24xf32>
    %298 = arith.mulf %296, %297 : vector<2x24x24xf32>
    %299 = arith.addf %298, %74 : vector<2x24x24xf32>
    %cst_99 = arith.constant dense<0xFF800000> : vector<2x24xf32>
    %300 = vector.multi_reduction <maximumf>, %299, %cst_99 [2] : vector<2x24x24xf32> to vector<2x24xf32>
    %301 = vector.shape_cast %300 : vector<2x24xf32> to vector<2x24x1xf32>
    %302 = vector.broadcast %301 : vector<2x24x1xf32> to vector<2x24x24xf32>
    %303 = arith.subf %299, %302 : vector<2x24x24xf32>
    %304 = math.exp %303 : vector<2x24x24xf32>
    %cst_100 = arith.constant dense<0.000000e+00> : vector<2x24xf32>
    %305 = vector.multi_reduction <add>, %304, %cst_100 [2] : vector<2x24x24xf32> to vector<2x24xf32>
    %306 = vector.shape_cast %305 : vector<2x24xf32> to vector<2x24x1xf32>
    %307 = tpu.reciprocal %306 {approx = true} : vector<2x24x1xf32> -> vector<2x24x1xf32>
    %308 = vector.broadcast %307 : vector<2x24x1xf32> to vector<2x24x24xf32>
    %309 = arith.mulf %304, %308 : vector<2x24x24xf32>
    "tpu.trace_start"() <{level = 10 : i32, message = "bqk,bkd->bqd"}> : () -> ()
    %cst_101 = arith.constant dense<0.000000e+00> : vector<2x24x16xf32>
    %310 = tpu.matmul %309, %295, %cst_101 {dimension_numbers = #tpu.dot_dimension_numbers<[2], [1], [1], [2], [0, 0, 0, 1, 1, 2], [0], [0]>} : vector<2x24x24xf32>, vector<2x24x16xf32>, vector<2x24x16xf32> -> vector<2x24x16xf32>
    "tpu.trace_stop"() : () -> ()
    %311 = vector.shape_cast %310 : vector<2x24x16xf32> to vector<48x16xf32>
    %312 = vector.extract_strided_slice %269 {offsets = [16, 0], sizes = [16, 32], strides = [1, 1]} : vector<32x32xf32> to vector<16x32xf32>
    %cst_102 = arith.constant dense<0.000000e+00> : vector<48x32xf32>
    %313 = tpu.matmul %311, %312, %cst_102 {dimension_numbers = #tpu.dot_dimension_numbers<[1], [0], [0], [1], [0, 0, 1, 1], [], []>} : vector<48x16xf32>, vector<16x32xf32>, vector<48x32xf32> -> vector<48x32xf32>
    %314 = arith.addf %292, %313 : vector<48x32xf32>
    %315 = arith.addf %222, %314 : vector<48x32xf32>
    %316 = vector.shape_cast %232 : vector<32xf32> to vector<1x32xf32>
    %317 = vector.broadcast %316 : vector<1x32xf32> to vector<48x32xf32>
    %318 = arith.addf %315, %317 : vector<48x32xf32>
    %cst_103 = arith.constant dense<0.000000e+00> : vector<48xf32>
    %319 = vector.multi_reduction <add>, %318, %cst_103 [1] : vector<48x32xf32> to vector<48xf32>
    %320 = vector.shape_cast %319 : vector<48xf32> to vector<48x1xf32>
    %cst_104 = arith.constant 3.200000e+01 : f32
    %321 = vector.broadcast %cst_104 : f32 to vector<48x1xf32>
    %322 = arith.divf %320, %321 : vector<48x1xf32>
    %323 = vector.broadcast %322 : vector<48x1xf32> to vector<48x32xf32>
    %324 = arith.subf %318, %323 : vector<48x32xf32>
    %325 = arith.mulf %324, %324 : vector<48x32xf32>
    %cst_105 = arith.constant dense<0.000000e+00> : vector<48xf32>
    %326 = vector.multi_reduction <add>, %325, %cst_105 [1] : vector<48x32xf32> to vector<48xf32>
    %327 = vector.shape_cast %326 : vector<48xf32> to vector<48x1xf32>
    %cst_106 = arith.constant 3.200000e+01 : f32
    %328 = vector.broadcast %cst_106 : f32 to vector<48x1xf32>
    %329 = arith.divf %327, %328 : vector<48x1xf32>
    %330 = vector.broadcast %322 : vector<48x1xf32> to vector<48x32xf32>
    %331 = arith.subf %318, %330 : vector<48x32xf32>
    %cst_107 = arith.constant 9.99999974E-6 : f32
    %332 = vector.broadcast %cst_107 : f32 to vector<48x1xf32>
    %333 = arith.addf %329, %332 : vector<48x1xf32>
    %334 = math.rsqrt %333 : vector<48x1xf32>
    %335 = vector.broadcast %334 : vector<48x1xf32> to vector<48x32xf32>
    %336 = arith.mulf %331, %335 : vector<48x32xf32>
    %337 = vector.shape_cast %228 : vector<32xf32> to vector<1x32xf32>
    %338 = vector.broadcast %337 : vector<1x32xf32> to vector<48x32xf32>
    %339 = arith.mulf %336, %338 : vector<48x32xf32>
    %340 = vector.shape_cast %230 : vector<32xf32> to vector<1x32xf32>
    %341 = vector.broadcast %340 : vector<1x32xf32> to vector<48x32xf32>
    %342 = arith.addf %339, %341 : vector<48x32xf32>
    %c1_108 = arith.constant 1 : index
    %c0_109 = arith.constant 0 : index
    %c0_110 = arith.constant 0 : index
    %343 = vector.load %arg13[%c1_108, %c0_109, %c0_110] : memref<2x32x128xf32, #tpu.memory_space<vmem>>, vector<1x32x128xf32>
    %344 = vector.shape_cast %343 : vector<1x32x128xf32> to vector<32x128xf32>
    %cst_111 = arith.constant dense<0.000000e+00> : vector<48x128xf32>
    %345 = tpu.matmul %342, %344, %cst_111 {dimension_numbers = #tpu.dot_dimension_numbers<[1], [0], [0], [1], [0, 0, 1, 1], [], []>} : vector<48x32xf32>, vector<32x128xf32>, vector<48x128xf32> -> vector<48x128xf32>
    %c1_112 = arith.constant 1 : index
    %c0_113 = arith.constant 0 : index
    %346 = vector.load %arg14[%c1_112, %c0_113] : memref<2x128xf32, #tpu.memory_space<vmem>>, vector<1x128xf32>
    %347 = vector.shape_cast %346 : vector<1x128xf32> to vector<128xf32>
    %348 = vector.shape_cast %347 : vector<128xf32> to vector<1x128xf32>
    %349 = vector.broadcast %348 : vector<1x128xf32> to vector<48x128xf32>
    %350 = arith.addf %345, %349 : vector<48x128xf32>
    %cst_114 = arith.constant 5.000000e-01 : f32
    %351 = vector.broadcast %cst_114 : f32 to vector<48x128xf32>
    %352 = arith.mulf %351, %350 : vector<48x128xf32>
    %353 = arith.mulf %350, %350 : vector<48x128xf32>
    %354 = arith.mulf %350, %353 : vector<48x128xf32>
    %cst_115 = arith.constant 4.471500e-02 : f32
    %355 = vector.broadcast %cst_115 : f32 to vector<48x128xf32>
    %356 = arith.mulf %355, %354 : vector<48x128xf32>
    %357 = arith.addf %350, %356 : vector<48x128xf32>
    %cst_116 = arith.constant 0.797884583 : f32
    %358 = vector.broadcast %cst_116 : f32 to vector<48x128xf32>
    %359 = arith.mulf %358, %357 : vector<48x128xf32>
    %360 = math.tanh %359 : vector<48x128xf32>
    %cst_117 = arith.constant 1.000000e+00 : f32
    %361 = vector.broadcast %cst_117 : f32 to vector<48x128xf32>
    %362 = arith.addf %361, %360 : vector<48x128xf32>
    %363 = arith.mulf %352, %362 : vector<48x128xf32>
    %c1_118 = arith.constant 1 : index
    %c0_119 = arith.constant 0 : index
    %c0_120 = arith.constant 0 : index
    %364 = vector.load %arg15[%c1_118, %c0_119, %c0_120] : memref<2x128x32xf32, #tpu.memory_space<vmem>>, vector<1x128x32xf32>
    %365 = vector.shape_cast %364 : vector<1x128x32xf32> to vector<128x32xf32>
    %cst_121 = arith.constant dense<0.000000e+00> : vector<48x32xf32>
    %366 = tpu.matmul %363, %365, %cst_121 {dimension_numbers = #tpu.dot_dimension_numbers<[1], [0], [0], [1], [0, 0, 1, 1], [], []>} : vector<48x128xf32>, vector<128x32xf32>, vector<48x32xf32> -> vector<48x32xf32>
    %367 = arith.addf %318, %366 : vector<48x32xf32>
    %368 = vector.shape_cast %234 : vector<32xf32> to vector<1x32xf32>
    %369 = vector.broadcast %368 : vector<1x32xf32> to vector<48x32xf32>
    %370 = arith.addf %367, %369 : vector<48x32xf32>
    %cst_122 = arith.constant dense<0.000000e+00> : vector<48xf32>
    %371 = vector.multi_reduction <add>, %370, %cst_122 [1] : vector<48x32xf32> to vector<48xf32>
    %372 = vector.shape_cast %371 : vector<48xf32> to vector<48x1xf32>
    %cst_123 = arith.constant 3.200000e+01 : f32
    %373 = vector.broadcast %cst_123 : f32 to vector<48x1xf32>
    %374 = arith.divf %372, %373 : vector<48x1xf32>
    %375 = vector.broadcast %374 : vector<48x1xf32> to vector<48x32xf32>
    %376 = arith.subf %370, %375 : vector<48x32xf32>
    %377 = arith.mulf %376, %376 : vector<48x32xf32>
    %cst_124 = arith.constant dense<0.000000e+00> : vector<48xf32>
    %378 = vector.multi_reduction <add>, %377, %cst_124 [1] : vector<48x32xf32> to vector<48xf32>
    %379 = vector.shape_cast %378 : vector<48xf32> to vector<48x1xf32>
    %cst_125 = arith.constant 3.200000e+01 : f32
    %380 = vector.broadcast %cst_125 : f32 to vector<48x1xf32>
    %381 = arith.divf %379, %380 : vector<48x1xf32>
    %382 = vector.broadcast %374 : vector<48x1xf32> to vector<48x32xf32>
    %383 = arith.subf %370, %382 : vector<48x32xf32>
    %cst_126 = arith.constant 9.99999974E-6 : f32
    %384 = vector.broadcast %cst_126 : f32 to vector<48x1xf32>
    %385 = arith.addf %381, %384 : vector<48x1xf32>
    %386 = math.rsqrt %385 : vector<48x1xf32>
    %387 = vector.broadcast %386 : vector<48x1xf32> to vector<48x32xf32>
    %388 = arith.mulf %383, %387 : vector<48x32xf32>
    %389 = vector.shape_cast %14 : vector<32xf32> to vector<1x32xf32>
    %390 = vector.broadcast %389 : vector<1x32xf32> to vector<48x32xf32>
    %391 = arith.mulf %388, %390 : vector<48x32xf32>
    %392 = vector.shape_cast %16 : vector<32xf32> to vector<1x32xf32>
    %393 = vector.broadcast %392 : vector<1x32xf32> to vector<48x32xf32>
    %394 = arith.addf %391, %393 : vector<48x32xf32>
    %c0_127 = arith.constant 0 : index
    %c0_128 = arith.constant 0 : index
    %395 = vector.load %arg20[%c0_127, %c0_128] : memref<32x48xf32, #tpu.memory_space<vmem>>, vector<32x48xf32>
    %cst_129 = arith.constant dense<0.000000e+00> : vector<32x32xf32>
    %396 = tpu.matmul %395, %394, %cst_129 {dimension_numbers = #tpu.dot_dimension_numbers<[1], [0], [0], [1], [0, 0, 1, 1], [], []>} : vector<32x48xf32>, vector<48x32xf32>, vector<32x32xf32> -> vector<32x32xf32>
    %397 = vector.extract_strided_slice %396 {offsets = [0, 0], sizes = [16, 32], strides = [1, 1]} : vector<32x32xf32> to vector<16x32xf32>
    %398 = vector.extract_strided_slice %396 {offsets = [16, 0], sizes = [16, 32], strides = [1, 1]} : vector<32x32xf32> to vector<16x32xf32>
    %c0_130 = arith.constant 0 : index
    %c0_131 = arith.constant 0 : index
    %399 = vector.load %arg16[%c0_130, %c0_131] : memref<32x128xf32, #tpu.memory_space<vmem>>, vector<32x128xf32>
    %cst_132 = arith.constant dense<0.000000e+00> : vector<16x128xf32>
    %400 = tpu.matmul %398, %399, %cst_132 {dimension_numbers = #tpu.dot_dimension_numbers<[1], [0], [0], [1], [0, 0, 1, 1], [], []>} : vector<16x32xf32>, vector<32x128xf32>, vector<16x128xf32> -> vector<16x128xf32>
    %c0_133 = arith.constant 0 : index
    %c0_134 = arith.constant 0 : index
    %401 = vector.load %arg17[%c0_133, %c0_134] : memref<32x128xf32, #tpu.memory_space<vmem>>, vector<32x128xf32>
    %cst_135 = arith.constant dense<0.000000e+00> : vector<16x128xf32>
    %402 = tpu.matmul %397, %401, %cst_135 {dimension_numbers = #tpu.dot_dimension_numbers<[1], [0], [0], [1], [0, 0, 1, 1], [], []>} : vector<16x32xf32>, vector<32x128xf32>, vector<16x128xf32> -> vector<16x128xf32>
    %403 = arith.addf %400, %402 : vector<16x128xf32>
    %c0_136 = arith.constant 0 : index
    %c0_137 = arith.constant 0 : index
    %404 = vector.load %arg18[%c0_136, %c0_137] : memref<1x128xf32, #tpu.memory_space<vmem>>, vector<1x128xf32>
    %405 = vector.broadcast %404 : vector<1x128xf32> to vector<16x128xf32>
    %406 = arith.addf %403, %405 : vector<16x128xf32>
    %407 = vector.shape_cast %406 : vector<16x128xf32> to vector<2x8x128xf32>
    %c0_138 = arith.constant 0 : index
    %c0_139 = arith.constant 0 : index
    %c0_140 = arith.constant 0 : index
    %408 = vector.load %arg21[%c0_138, %c0_139, %c0_140] : memref<2x8x128xf32, #tpu.memory_space<vmem>>, vector<2x8x128xf32>
    tpu.vector_store %arg21[%c0_138, %c0_139, %c0_140], %407 {strides = array<i32>} : memref<2x8x128xf32, #tpu.memory_space<vmem>>, vector<2x8x128xf32>,
    return
  }
  func.func @transform_0(%arg0: i32) -> (i32, i32, i32) {
    %c0_i32 = arith.constant 0 : i32
    %c0_i32_0 = arith.constant 0 : i32
    %c0_i32_1 = arith.constant 0 : i32
    return %arg0, %c0_i32, %c0_i32_0 : i32, i32, i32
  }
  func.func @transform_1(%arg0: i32) -> (i32, i32, i32) {
    %c0_i32 = arith.constant 0 : i32
    %c0_i32_0 = arith.constant 0 : i32
    %c0_i32_1 = arith.constant 0 : i32
    return %arg0, %c0_i32, %c0_i32_0 : i32, i32, i32
  }
  func.func @transform_2(%arg0: i32) -> (i32, i32, i32) {
    %c0_i32 = arith.constant 0 : i32
    %c0_i32_0 = arith.constant 0 : i32
    %c0_i32_1 = arith.constant 0 : i32
    return %arg0, %c0_i32, %c0_i32_0 : i32, i32, i32
  }
  func.func @transform_3(%arg0: i32) -> (i32, i32, i32) {
    %c0_i32 = arith.constant 0 : i32
    %c0_i32_0 = arith.constant 0 : i32
    %c0_i32_1 = arith.constant 0 : i32
    return %arg0, %c0_i32, %c0_i32_0 : i32, i32, i32
  }
  func.func @transform_4(%arg0: i32) -> (i32, i32, i32) {
    %c0_i32 = arith.constant 0 : i32
    %c0_i32_0 = arith.constant 0 : i32
    %c0_i32_1 = arith.constant 0 : i32
    return %arg0, %c0_i32, %c0_i32_0 : i32, i32, i32
  }
  func.func @transform_5(%arg0: i32) -> (i32, i32) {
    %c0_i32 = arith.constant 0 : i32
    %c0_i32_0 = arith.constant 0 : i32
    %c0_i32_1 = arith.constant 0 : i32
    return %c0_i32, %c0_i32_0 : i32, i32
  }
  func.func @transform_6(%arg0: i32) -> (i32, i32) {
    %c0_i32 = arith.constant 0 : i32
    %c0_i32_0 = arith.constant 0 : i32
    %c0_i32_1 = arith.constant 0 : i32
    return %c0_i32, %c0_i32_0 : i32, i32
  }
  func.func @transform_7(%arg0: i32) -> (i32, i32) {
    %c0_i32 = arith.constant 0 : i32
    %c0_i32_0 = arith.constant 0 : i32
    %c0_i32_1 = arith.constant 0 : i32
    return %c0_i32, %c0_i32_0 : i32, i32
  }
  func.func @transform_8(%arg0: i32) -> (i32, i32) {
    %c0_i32 = arith.constant 0 : i32
    %c0_i32_0 = arith.constant 0 : i32
    %c0_i32_1 = arith.constant 0 : i32
    return %c0_i32, %c0_i32_0 : i32, i32
  }
  func.func @transform_9(%arg0: i32) -> (i32, i32, i32) {
    %c0_i32 = arith.constant 0 : i32
    %c0_i32_0 = arith.constant 0 : i32
    %c0_i32_1 = arith.constant 0 : i32
    %c0_i32_2 = arith.constant 0 : i32
    return %c0_i32, %c0_i32_0, %c0_i32_1 : i32, i32, i32
  }
  func.func @transform_10(%arg0: i32) -> (i32, i32) {
    %c0_i32 = arith.constant 0 : i32
    %c0_i32_0 = arith.constant 0 : i32
    %c0_i32_1 = arith.constant 0 : i32
    return %c0_i32, %c0_i32_0 : i32, i32
  }
  func.func @transform_11(%arg0: i32) -> (i32, i32, i32) {
    %c0_i32 = arith.constant 0 : i32
    %c0_i32_0 = arith.constant 0 : i32
    %c0_i32_1 = arith.constant 0 : i32
    %c0_i32_2 = arith.constant 0 : i32
    return %c0_i32, %c0_i32_0, %c0_i32_1 : i32, i32, i32
  }
  func.func @transform_12(%arg0: i32) -> (i32, i32, i32) {
    %c0_i32 = arith.constant 0 : i32
    %c0_i32_0 = arith.constant 0 : i32
    %c0_i32_1 = arith.constant 0 : i32
    %c0_i32_2 = arith.constant 0 : i32
    return %c0_i32, %c0_i32_0, %c0_i32_1 : i32, i32, i32
  }
  func.func @transform_13(%arg0: i32) -> (i32, i32) {
    %c0_i32 = arith.constant 0 : i32
    %c0_i32_0 = arith.constant 0 : i32
    %c0_i32_1 = arith.constant 0 : i32
    return %c0_i32, %c0_i32_0 : i32, i32
  }
  func.func @transform_14(%arg0: i32) -> (i32, i32, i32) {
    %c0_i32 = arith.constant 0 : i32
    %c0_i32_0 = arith.constant 0 : i32
    %c0_i32_1 = arith.constant 0 : i32
    %c0_i32_2 = arith.constant 0 : i32
    return %c0_i32, %c0_i32_0, %c0_i32_1 : i32, i32, i32
  }
  func.func @transform_15(%arg0: i32) -> (i32, i32) {
    %c0_i32 = arith.constant 0 : i32
    %c0_i32_0 = arith.constant 0 : i32
    %c0_i32_1 = arith.constant 0 : i32
    return %c0_i32, %c0_i32_0 : i32, i32
  }
  func.func @transform_16(%arg0: i32) -> (i32, i32) {
    %c0_i32 = arith.constant 0 : i32
    %c0_i32_0 = arith.constant 0 : i32
    %c0_i32_1 = arith.constant 0 : i32
    return %c0_i32, %c0_i32_0 : i32, i32
  }
  func.func @transform_17(%arg0: i32) -> (i32, i32) {
    %c0_i32 = arith.constant 0 : i32
    %c0_i32_0 = arith.constant 0 : i32
    %c0_i32_1 = arith.constant 0 : i32
    return %c0_i32, %c0_i32_0 : i32, i32
  }
  func.func @transform_18(%arg0: i32) -> (i32, i32) {
    %c0_i32 = arith.constant 0 : i32
    %c0_i32_0 = arith.constant 0 : i32
    %c0_i32_1 = arith.constant 0 : i32
    return %c0_i32, %c0_i32_0 : i32, i32
  }
  func.func @transform_19(%arg0: i32) -> (i32, i32) {
    %c0_i32 = arith.constant 0 : i32
    %c0_i32_0 = arith.constant 0 : i32
    %c0_i32_1 = arith.constant 0 : i32
    return %c0_i32, %c0_i32_0 : i32, i32
  }
  func.func @transform_20(%arg0: i32) -> (i32, i32, i32) {
    %c0_i32 = arith.constant 0 : i32
    %c0_i32_0 = arith.constant 0 : i32
    %c0_i32_1 = arith.constant 0 : i32
    return %arg0, %c0_i32, %c0_i32_0 : i32, i32, i32
  }
}

</mosaic_0001>

<bundles_post_ra>
// kernel: tpu_custom_call.1
= control target key start
LH: loop header
LB: loop body
LE: loop exit
PB: predicated region body
PF: predicated region fallthrough
CT: control target
= control target key end

     0   :  { %s7646_s0 = inlined_call_operand.hbm [shape: f32[2,8,8], index: 0, kind: input, shape index: {}]   ;;  %s7647_s1 = inlined_call_operand.vmem [shape: f32[2,8,4], index: 1, kind: input, shape index: {}]   ;;  %s7648_s2 = inlined_call_operand.vmem [shape: f32[2,8,1], index: 2, kind: input, shape index: {}]   ;;  %s7649_s3 = inlined_call_operand.hbm [shape: f32[2,8,32], index: 3, kind: input, shape index: {}]   ;;  %s7650_s4 = inlined_call_operand.vmem [shape: f32[2,24,24], index: 4, kind: input, shape index: {}]   ;;  %s7651_s5 = inlined_call_operand.hbm [shape: f32[20,32], index: 5, kind: input, shape index: {}]   ;;  %s7652_s6 = inlined_call_operand.vmem [shape: f32[48,32], index: 6, kind: input, shape index: {}]   ;;  %s7653_s7 = inlined_call_operand.vmem [shape: f32[8,32], index: 7, kind: input, shape index: {}]   ;;  %s7654_s8 = inlined_call_operand.vmem [shape: f32[4,32], index: 8, kind: input, shape index: {}]   ;;  %s7655_s9 = inlined_call_operand.vmem [shape: f32[2,32,96], index: 9, kind: input, shape index: {}]   ;;  %s7656_s10 = inlined_call_operand.vmem [shape: f32[2,96], index: 10, kind: input, shape index: {}]   ;;  %s7657_s11 = inlined_call_operand.vmem [shape: f32[2,32,32], index: 11, kind: input, shape index: {}]   ;;  %s7658_s12 = inlined_call_operand.vmem [shape: f32[2,32,128], index: 12, kind: input, shape index: {}]   ;;  %s7659_s13 = inlined_call_operand.vmem [shape: f32[2,128], index: 13, kind: input, shape index: {}]   ;;  %s7660_s14 = inlined_call_operand.vmem [shape: f32[2,128,32], index: 14, kind: input, shape index: {}]   ;;  %s7661_s15 = inlined_call_operand.vmem [shape: f32[32,128], index: 15, kind: input, shape index: {}]   ;;  %s7662_s16 = inlined_call_operand.vmem [shape: f32[32,128], index: 16, kind: input, shape index: {}]   ;;  %s7663_s17 = inlined_call_operand.vmem [shape: f32[1,128], index: 17, kind: input, shape index: {}]   ;;  %s7664_s18 = inlined_call_operand.vmem [shape: f32[48,48], index: 18, kind: input, shape index: {}]   ;;  %s7665_s19 = inlined_call_operand.vmem [shape: f32[32,48], index: 19, kind: input, shape index: {}]   ;;  %s7666_s20 = inlined_call_operand.hbm [shape: f32[2,8,128], index: 20, kind: output, shape index: {}]  }
   0x1   :  { %7673 = sst [smem:[#allocation12_spill]] %s7646_s0 }
   0x2   :  { %7674 = sst [smem:[#allocation13_spill]] %s7647_s1 }
   0x3   :  { %7675 = sst [smem:[#allocation14_spill]] %s7648_s2 }
   0x4   :  { %7676 = sst [smem:[#allocation15_spill]] %s7649_s3 }
   0x5   :  { %7677 = sst [smem:[#allocation16_spill]] %s7650_s4 }
   0x6   :  { %7678 = sst [smem:[#allocation17_spill]] %s7666_s20 }
   0x7   :  { %25 = vsyncpa [#allocation3], 0 }
   0x8   :  { %26 = vsyncpa [#allocation6], 0 }
   0x9   :  { %27 = vsyncpa [#allocation4], 0  ;;  %s6169_s1 = smov [#allocation5]   ;;  %s6170_s23 = smov [#allocation2]  }
   0xa   :  { %s49_s22 = sshll.u32 %s6169_s1, 4  ;;  %s33_s24 = sshll.u32 %s6170_s23, 4  ;;  %s50_s22 = int_to_ptr.vmem [resolvable:$true] %s49_s22  ;;  %s6289_s24 = int_to_ptr.vmem [resolvable:$true] %s33_s24 }
   0xb   :  { %s7679_s3 = sld [smem:[#allocation15_spill]] }
  0x11   :  { %s6075_s26 = scalar_lea.hbm %s7679_s3, 256 }
  0x12   :  { %p6076_p0 = scmp.ne.s32.totalorder %s7679_s3, %s6075_s26  ;;  %p6079_p1 = scmp.lt.u32.totalorder %s6075_s26, %s7679_s3 }
  0x14   :  { %p6081_p2 = pnand %p6079_p1, %p6076_p0 }
  0x16   :  { %6084 = shalt.err (!%p6081_p2)
}
  0x17   :  { %s6085_s30 = scalar_lea.vmem %s50_s22, 256  ;;  %p6090_p4 = scmp.lt.s32.totalorder %s50_s22, %s50_s22 }
  0x18   :  { %p6086_p3 = scmp.ne.s32.totalorder %s50_s22, %s6085_s30  ;;  %p6091_p5 = scmp.lt.s32.totalorder %s6085_s30, %s6085_s30 }
  0x1a   :  { %p6092_p6 = por %p6091_p5, %p6090_p4 }
  0x1c   :  { %p6093_p7 = pnand %p6092_p6, %p6086_p3 }
  0x1e   :  { %6096 = shalt.err (!%p6093_p7)
}
  0x1f   :  { %s6171_s0 = smov 128   ;;  %s6172_s21 = smov 8  }
  0x20   :  { %55 = dma.hbm_to_vmem [thread:$0]  %s7679_s3, 256, %s50_s22, [#allocation6], %s6171_s0, %s6171_s0, %s6172_s21  }
  0x21   :  { %s7680_s26 = sld [smem:[#allocation12_spill]] }
  0x27   :  { %s6097_s27 = scalar_lea.hbm %s7680_s26, 256 }
  0x28   :  { %p6098_p8 = scmp.ne.s32.totalorder %s7680_s26, %s6097_s27  ;;  %p6101_p9 = scmp.lt.u32.totalorder %s6097_s27, %s7680_s26 }
  0x2a   :  { %p6103_p10 = pnand %p6101_p9, %p6098_p8 }
  0x2c   :  { %6106 = shalt.err (!%p6103_p10)
}
  0x2d   :  { %s6107_s20 = scalar_lea.vmem %s6289_s24, 256  ;;  %p6112_p12 = scmp.lt.s32.totalorder %s6289_s24, %s6289_s24 }
  0x2e   :  { %p6108_p11 = scmp.ne.s32.totalorder %s6289_s24, %s6107_s20  ;;  %p6113_p13 = scmp.lt.s32.totalorder %s6107_s20, %s6107_s20 }
  0x30   :  { %p6114_p0 = por %p6113_p13, %p6112_p12 }
  0x32   :  { %p6115_p1 = pnand %p6114_p0, %p6108_p11 }
  0x34   :  { %6118 = shalt.err (!%p6115_p1)
}
  0x35   :  { %39 = dma.hbm_to_vmem [thread:$0]  %s7680_s26, 256, %s6289_s24, [#allocation3], %s6171_s0, %s6171_s0, %s6172_s21  }
  0x36   :  { %s6173_s1 = smov [#allocation7]   ;;  %s6119_s27 = scalar_lea.hbm %s7651_s5, 384 }
  0x37   :  { %s63_s23 = sshll.u32 %s6173_s1, 4  ;;  %p6120_p2 = scmp.ne.s32.totalorder %s7651_s5, %s6119_s27  ;;  %s64_s23 = int_to_ptr.vmem [resolvable:$true] %s63_s23 }
  0x38   :  { %p6123_p3 = scmp.lt.u32.totalorder %s6119_s27, %s7651_s5 }
  0x3a   :  { %p6125_p4 = pnand %p6123_p3, %p6120_p2 }
  0x3c   :  { %6128 = shalt.err (!%p6125_p4)
}
  0x3d   :  { %s6129_s30 = scalar_lea.vmem %s64_s23, 384  ;;  %p6134_p6 = scmp.lt.s32.totalorder %s64_s23, %s64_s23 }
  0x3e   :  { %p6130_p5 = scmp.ne.s32.totalorder %s64_s23, %s6129_s30  ;;  %p6135_p7 = scmp.lt.s32.totalorder %s6129_s30, %s6129_s30 }
  0x40   :  { %p6136_p8 = por %p6135_p7, %p6134_p6 }
  0x42   :  { %p6137_p9 = pnand %p6136_p8, %p6130_p5 }
  0x44   :  { %6140 = shalt.err (!%p6137_p9)
}
  0x45   :  { %69 = dma.hbm_to_vmem [thread:$0]  %s7651_s5, 384, %s64_s23, [#allocation6], %s6171_s0, %s6171_s0, %s6172_s21  }
  0x46   :  { %6163 = dma.done.wait [#allocation3], 256  }
  0x47   :  { %6164 = vsyncadd [#allocation3], 4294967040 }
  0x48   :  { %6165 = dma.done.wait [#allocation6], 640  }
  0x49   :  { %6166 = vsyncadd [#allocation6], 4294966656  ;;  %v6174_v0 = vmov 0   ;;  %vm147_vm0 = vcmask 64512   ;;  %vm243_vm1 = vcmask 1043456   ;;  %v142_v1 = vld [vmem:[%s7653_s7] sm:$0xff]  ;;  %v128_v10 = vlaneseq }
  0x4a   :  { %5794 = vset.pattern.permute.xlu0 %v6174_v0  ;;  %v110_v2 = vld [vmem:[#allocation2] sm:$0xff]  ;;  %v111_v3 = vld [vmem:[#allocation2 + $0x8] sm:$0xff]  ;;  %5040 = vmatprep.subr.mxu0 %v142_v1  ;;  %s7681_s25 = sld [smem:[#allocation13_spill]]  ;;  %vm236_vm2 = vcmask 31744   ;;  %s7682_s4 = sld [smem:[#allocation14_spill]]  ;;  %vm330_vm3 = vcmask 392192  }
  0x4b   :  { %5042 = vmatprep.mubr.msk.f32.mxu0 %vm147_vm0, %v110_v2  ;;  %v231_v4 = vld [vmem:[%s7654_s8] sm:$0xf]  ;;  %5041 = vmatpush3.msra.mxu0 %v142_v1  ;;  %v6363_v11 = vshrl.u32 %v128_v10, 7  ;;  %v116_v20 = vld [vmem:[#allocation5] sm:$0xff]  ;;  %v117_v23 = vld [vmem:[#allocation5 + $0x8] sm:$0xff]  ;;  %vm444_vm4 = vcmask 261120  }
  0x4c   :  { %5045 = vmatprep.subr.msk.mxu1 %vm243_vm1, %v231_v4  ;;  %5043 = vmatmul.mubr.msk.f32.vlgmr.msra.gmra.mrb[0].mxu0 %vm147_vm0, %v111_v3  ;;  %v324_v9 = vld [vmem:[%s7664_s18] sm:$0xff]  ;;  %v325_v46 = vld [vmem:[%s7664_s18 + $0x8] sm:$0xff]  ;;  %v326_v47 = vld [vmem:[%s7664_s18 + $0x10] sm:$0xff]  ;;  %vm6177_vm5 = vmmov 0   ;;  %vm795_vm6 = vcmask 130048   ;;  %s7685_s30 = sld [smem:[#allocation16_spill]] }
  0x4d   :  { %5046 = vmatpush3.msk.msra.mxu1 %vm243_vm1, %v231_v4  ;;  %5062 = vmatprep.mubr.msk.f32.mxu0 %vm330_vm3, %v324_v9  ;;  %v6366_v12 = vsub.s32 0, %v6363_v11  ;;  %v6368_v13 = vld [vmem:[#allocation7] sm:$0xff]  ;;  %v6371_v14 = vsub.s32 1, %v6363_v11  ;;  %v6378_v28 = vsub.s32 2, %v6363_v11  ;;  %v6381_v29 = vsub.s32 3, %v6363_v11  ;;  %v327_v48 = vld [vmem:[%s7664_s18 + $0x18] sm:$0xff]  ;;  %vm6589_vm7 = vmpackc.low %vm795_vm6, %vm795_vm6 }
  0x4e   :  { %v328_v49 = vld [vmem:[%s7664_s18 + $0x20] sm:$0xff]  ;;  %v329_v50 = vld [vmem:[%s7664_s18 + $0x28] sm:$0xff]  ;;  %vm1001_vm8 = vcmask 195584   ;;  %s6179_s23 = smov 64   ;;  %s6181_s27 = smov 112  }
  0x4f   :  { %v131_v15 = vrot.slane %v6368_v13, %v6366_v12  ;;  %v137_v16 = vrot.slane %v6368_v13, %v6371_v14  ;;  %v146_v30 = vrot.slane %v6368_v13, %v6378_v28  ;;  %v235_v31 = vrot.slane %v6368_v13, %v6381_v29  ;;  %s6182_s7 = smov 48  }
  0x50   :  { %v112_v5 = vld [vmem:[%s7681_s25] sm:$0xff]  ;;  %v113_v6 = vld [vmem:[%s7681_s25 + $0x8] sm:$0xff]  ;;  %s6180_s25 = smov 80  }
  0x51   :  { %v114_v7 = vld [vmem:[%s7682_s4] sm:$0xff]  ;;  %5047 = vmatprep.mubr.msk.f32.mxu1 %vm236_vm2, %v112_v5  ;;  %v115_v8 = vld [vmem:[%s7682_s4 + $0x8] sm:$0xff]  ;;  %s6176_s4 = smov 96  }
  0x52   :  { %120 = vperm.xlu0 %5794, %v114_v7   ;;  %5048 = vmatmul.mubr.msk.f32.vlgmr.msra.gmra.mrb[0].mxu1 %vm236_vm2, %v113_v6 }
  0x56   :  { %125 = vperm.xlu0 %5794, %v115_v8  }
  0xd1   :  { %v121_v17 = vpop.permute.xlu0 %120 }
  0xd2   :  { %v132_v18 = vmul.f32 %v131_v15, %v121_v17 }
  0xd4   :  { %v138_v19 = vadd.f32 %v137_v16, %v132_v18 }
  0xd5   :  { %v126_v21 = vpop.permute.xlu0 %125 }
  0xd6   :  { %v133_v22 = vmul.f32 %v131_v15, %v126_v21  ;;  %v140_v24 = vadd.f32 %v138_v19, %v116_v20 }
  0xd8   :  { %v139_v25 = vadd.f32 %v137_v16, %v133_v22 }
  0xda   :  { %v141_v26 = vadd.f32 %v139_v25, %v117_v23 }
  0xdc   :  { %v5553_v27 = vpack.c.bf16 %v141_v26, %v140_v24 }
  0xde   :  { %5554 = vmatprep.subr.bf16.mxu0 %v5553_v27 }
  0xdf   :  { %5556 = vmatpush3.bf16.msra.mxu0 %v5553_v27 }
 0x11f   :  { %v5044_v32 = vpop.f32.mrb[0].mxu0 }
 0x120   :  { %v226_v33 = vadd.f32 %v5044_v32, %v146_v30  ;;  %v220_v34 = vpop.f32.mrb[1].mxu0 }
 0x121   :  { %v221_v35 = vadd.f32 %v220_v34, %v146_v30 }
 0x122   :  { %v230_v37 = vadd.f32 %v226_v33, %v117_v23 }
 0x123   :  { %v229_v40 = vadd.f32 %v221_v35, %v116_v20 }
 0x125   :  { %v5049_v36 = vpop.f32.mrb[0].mxu1  ;;  %v5557_v44 = vpack.c.bf16 %v230_v37, %v229_v40 }
 0x126   :  { %v319_v38 = vadd.f32 %v5049_v36, %v235_v31  ;;  %v313_v39 = vpop.f32.mrb[1].mxu1 }
 0x127   :  { %v314_v41 = vadd.f32 %v313_v39, %v235_v31  ;;  %5558 = vmatprep.subr.bf16.mxu0 %v5557_v44 }
 0x128   :  { %v323_v42 = vadd.f32 %v319_v38, %v117_v23  ;;  %5560 = vmatpush3.bf16.msra.mxu0 %v5557_v44 }
 0x129   :  { %v322_v43 = vadd.f32 %v314_v41, %v116_v20 }
 0x12b   :  { %v5561_v45 = vpack.c.bf16 %v323_v42, %v322_v43  ;;  %v526_v43 = vsub.s32 4, %v6363_v11 }
 0x12d   :  { %5562 = vmatprep.subr.bf16.mxu0 %v5561_v45 }
 0x12e   :  { %5564 = vmatpush3.bf16.msra.mxu0 %v5561_v45 }
 0x131   :  { %5063 = vmatmul.mubr.msk.f32.vlgmr.msra.gmra.mrb[2].mxu0 %vm330_vm3, %v325_v46  ;;  %v536_v46 = vsub.s32 5, %v6363_v11 }
 0x132   :  { %5065 = vmatprep.mubr.msk.f32.mxu0 %vm330_vm3, %v326_v47 }
 0x135   :  { %5066 = vmatmul.mubr.msk.f32.gmra.mrb[4].mxu0 %vm330_vm3, %v327_v48  ;;  %v527_v48 = vrot.slane %v6368_v13, %v526_v43 }
 0x136   :  { %5068 = vmatprep.mubr.msk.f32.mxu0 %vm330_vm3, %v328_v49 }
 0x139   :  { %5069 = vmatmul.mubr.msk.f32.gmra.mrb[6].mxu0 %vm330_vm3, %v329_v50 }
 0x204   :  { %v5064_v51 = vpop.f32.mrb[2].mxu0 }
 0x205   :  { %v415_v52 = vpop.f32.mrb[3].mxu0  ;;  %v448_v53 = vsel %vm444_vm4, %v5064_v51, 0.0 }
 0x206   :  { %449 = vadd.xlane.f32.xlu1 %v448_v53  ;;  %v445_v56 = vsel %vm444_vm4, %v415_v52, 0.0 }
 0x208   :  { %v5067_v54 = vpop.f32.mrb[4].mxu0 }
 0x209   :  { %v425_v55 = vpop.f32.mrb[5].mxu0  ;;  %v454_v58 = vsel %vm444_vm4, %v5067_v54, 0.0 }
 0x20a   :  { %446 = vadd.xlane.f32.xlu1 %v445_v56  ;;  %v451_v57 = vsel %vm444_vm4, %v425_v55, 0.0 }
 0x20b   :  { %452 = vadd.xlane.f32.xlu0 %v451_v57 }
 0x20c   :  { %v5070_v59 = vpop.f32.mrb[6].mxu0 }
 0x20d   :  { %v435_v60 = vpop.f32.mrb[7].mxu0  ;;  %v460_v62 = vsel %vm444_vm4, %v5070_v59, 0.0 }
 0x20e   :  { %455 = vadd.xlane.f32.xlu1 %v454_v58  ;;  %v457_v61 = vsel %vm444_vm4, %v435_v60, 0.0 }
 0x212   :  { %458 = vadd.xlane.f32.xlu1 %v457_v61  ;;  %v545_v61 = vld [vmem:[%s7652_s6 + $0x8] sm:$0xff] }
 0x216   :  { %461 = vadd.xlane.f32.xlu1 %v460_v62 }
 0x293   :  { %v450_v63 = vpop.xlane.xlu1 %449 }
 0x294   :  { %v465_v0 = vmul.f32 0.03125, %v450_v63 }
 0x296   :  { %v471_v1 = vsub.f32 %v5064_v51, %v465_v0 }
 0x297   :  { %v447_v2 = vpop.xlane.xlu1 %446 }
 0x298   :  { %v464_v3 = vmul.f32 0.03125, %v447_v2  ;;  %v453_v4 = vpop.xlane.xlu0 %452  ;;  %v477_v5 = vmul.f32 %v471_v1, %v471_v1 }
 0x299   :  { %v466_v7 = vmul.f32 0.03125, %v453_v4 }
 0x29a   :  { %v470_v6 = vsub.f32 %v415_v52, %v464_v3  ;;  %v485_v8 = vsel %vm444_vm4, %v477_v5, 0.0 }
 0x29b   :  { %v456_v9 = vpop.xlane.xlu1 %455  ;;  %486 = vadd.xlane.f32.xlu1 %v485_v8  ;;  %v6414_v16 = vsub.f32 %v425_v55, %v466_v7 }
 0x29c   :  { %v467_v10 = vmul.f32 0.03125, %v456_v9  ;;  %v476_v15 = vmul.f32 %v470_v6, %v470_v6  ;;  %v547_v9 = vld [vmem:[%s7652_s6 + $0x18] sm:$0xff] }
 0x29d   :  { %v478_v24 = vmul.f32 %v6414_v16, %v6414_v16 }
 0x29e   :  { %v473_v17 = vsub.f32 %v5067_v54, %v467_v10  ;;  %v482_v18 = vsel %vm444_vm4, %v476_v15, 0.0  ;;  %v537_v54 = vrot.slane %v6368_v13, %v536_v46  ;;  %v544_v13 = vld [vmem:[%s7652_s6] sm:$0xff] }
 0x29f   :  { %483 = vadd.xlane.f32.xlu1 %v482_v18  ;;  %v459_v19 = vpop.xlane.xlu1 %458  ;;  %v488_v30 = vsel %vm444_vm4, %v478_v24, 0.0 }
 0x2a0   :  { %v468_v20 = vmul.f32 0.03125, %v459_v19  ;;  %v479_v21 = vmul.f32 %v473_v17, %v473_v17 }
 0x2a2   :  { %v6417_v22 = vsub.f32 %v435_v60, %v468_v20  ;;  %v491_v23 = vsel %vm444_vm4, %v479_v21, 0.0  ;;  %v546_v21 = vld [vmem:[%s7652_s6 + $0x10] sm:$0xff] }
 0x2a3   :  { %492 = vadd.xlane.f32.xlu1 %v491_v23  ;;  %v462_v25 = vpop.xlane.xlu1 %461 }
 0x2a4   :  { %v469_v26 = vmul.f32 0.03125, %v462_v25  ;;  %v480_v31 = vmul.f32 %v6417_v22, %v6417_v22 }
 0x2a6   :  { %v6422_v27 = vsub.f32 %v5070_v59, %v469_v26  ;;  %v494_v33 = vsel %vm444_vm4, %v480_v31, 0.0 }
 0x2a7   :  { %489 = vadd.xlane.f32.xlu1 %v488_v30 }
 0x2a8   :  { %v481_v32 = vmul.f32 %v6422_v27, %v6422_v27 }
 0x2aa   :  { %v497_v34 = vsel %vm444_vm4, %v481_v32, 0.0  ;;  %v549_v32 = vld [vmem:[%s7652_s6 + $0x28] sm:$0xff] }
 0x2ab   :  { %495 = vadd.xlane.f32.xlu1 %v494_v33  ;;  %498 = vadd.xlane.f32.xlu0 %v497_v34 }
 0x328   :  { %v487_v35 = vpop.xlane.xlu1 %486 }
 0x329   :  { %v501_v36 = vmul.f32 0.03125, %v487_v35 }
 0x32b   :  { %v507_v37 = vadd.f32 1e-05, %v501_v36  ;;  %v548_v36 = vld [vmem:[%s7652_s6 + $0x20] sm:$0xff] }
 0x32c   :  { %v484_v38 = vpop.xlane.xlu1 %483 }
 0x32d   :  { %5875 = vrsqrt.f32 %v507_v37  ;;  %v500_v39 = vmul.f32 0.03125, %v484_v38 }
 0x32f   :  { %v506_v40 = vadd.f32 1e-05, %v500_v39 }
 0x330   :  { %v493_v41 = vpop.xlane.xlu1 %492 }
 0x331   :  { %5877 = vrsqrt.f32 %v506_v40  ;;  %v503_v42 = vmul.f32 0.03125, %v493_v41 }
 0x333   :  { %v509_v44 = vadd.f32 1e-05, %v503_v42 }
 0x334   :  { %v490_v45 = vpop.xlane.xlu1 %489 }
 0x335   :  { %5879 = vrsqrt.f32 %v509_v44  ;;  %v502_v47 = vmul.f32 0.03125, %v490_v45 }
 0x337   :  { %v5876_v49 = vpop.eup %5875  ;;  %v508_v50 = vadd.f32 1e-05, %v502_v47 }
 0x338   :  { %v499_v51 = vpop.xlane.xlu0 %498  ;;  %v496_v52 = vpop.xlane.xlu1 %495  ;;  %v519_v53 = vmul.f32 %v5876_v49, %v471_v1 }
 0x339   :  { %5881 = vrsqrt.f32 %v508_v50  ;;  %v505_v55 = vmul.f32 0.03125, %v499_v51  ;;  %v504_v56 = vmul.f32 0.03125, %v496_v52 }
 0x33a   :  { %v529_v57 = vmul.f32 %v527_v48, %v519_v53 }
 0x33b   :  { %v5878_v58 = vpop.eup %5877  ;;  %v511_v59 = vadd.f32 1e-05, %v505_v55  ;;  %v510_v60 = vadd.f32 1e-05, %v504_v56 }
 0x33c   :  { %v539_v62 = vadd.f32 %v537_v54, %v529_v57  ;;  %v518_v63 = vmul.f32 %v5878_v58, %v470_v6 }
 0x33d   :  { %5883 = vrsqrt.f32 %v511_v59 }
 0x33e   :  { %5885 = vrsqrt.f32 %v510_v60  ;;  %v6442_v0 = vadd.f32 %v545_v61, %v539_v62  ;;  %v528_v1 = vmul.f32 %v527_v48, %v518_v63 }
 0x33f   :  { %v5880_v2 = vpop.eup %5879 }
 0x340   :  { %v565_v3 = vsel %vm444_vm4, %v6442_v0, 0.0  ;;  %v538_v4 = vadd.f32 %v537_v54, %v528_v1  ;;  %v521_v5 = vmul.f32 %v5880_v2, %v473_v17 }
 0x341   :  { %566 = vadd.xlane.f32.xlu0 %v565_v3 }
 0x342   :  { %v6449_v7 = vadd.f32 %v544_v13, %v538_v4  ;;  %v531_v8 = vmul.f32 %v527_v48, %v521_v5 }
 0x343   :  { %v5882_v6 = vpop.eup %5881 }
 0x344   :  { %v562_v10 = vsel %vm444_vm4, %v6449_v7, 0.0  ;;  %v541_v15 = vadd.f32 %v537_v54, %v531_v8  ;;  %v520_v18 = vmul.f32 %v5882_v6, %v6414_v16 }
 0x345   :  { %563 = vadd.xlane.f32.xlu1 %v562_v10  ;;  %v661_v10 = vld [vmem:[%s7655_s9 + $0x8] sm:$0xff] }
 0x346   :  { %v6457_v19 = vadd.f32 %v547_v9, %v541_v15  ;;  %v530_v20 = vmul.f32 %v527_v48, %v520_v18  ;;  %v660_v9 = vld [vmem:[%s7655_s9] sm:$0xff]  ;;  %v662_v18 = vld [vmem:[%s7655_s9 + $0x10] sm:$0xff] }
 0x347   :  { %v5884_v17 = vpop.eup %5883  ;;  %v5565_v15 = vpack.c.bf16 %v661_v10, %v660_v9 }
 0x348   :  { %v5886_v23 = vpop.eup %5885  ;;  %v571_v24 = vsel %vm444_vm4, %v6457_v19, 0.0  ;;  %v540_v25 = vadd.f32 %v537_v54, %v530_v20  ;;  %v523_v26 = vmul.f32 %v5884_v17, %v6422_v27  ;;  %v663_v20 = vld [vmem:[%s7655_s9 + $0x18] sm:$0xff] }
 0x349   :  { %572 = vadd.xlane.f32.xlu0 %v571_v24  ;;  %v522_v30 = vmul.f32 %v5886_v23, %v6417_v22  ;;  %5566 = vmatprep.subr.bf16.mxu1 %v5565_v15  ;;  %v5569_v17 = vpack.c.bf16 %v663_v20, %v662_v18 }
 0x34a   :  { %v6466_v16 = vadd.f32 %v546_v21, %v540_v25  ;;  %v533_v31 = vmul.f32 %v527_v48, %v523_v26  ;;  %5568 = vmatpush3.bf16.msra.mxu1 %v5565_v15 }
 0x34b   :  { %v532_v33 = vmul.f32 %v527_v48, %v522_v30  ;;  %5570 = vmatprep.subr.bf16.mxu1 %v5569_v17 }
 0x34c   :  { %v568_v34 = vsel %vm444_vm4, %v6466_v16, 0.0  ;;  %v543_v35 = vadd.f32 %v537_v54, %v533_v31 }
 0x34d   :  { %569 = vadd.xlane.f32.xlu1 %v568_v34  ;;  %v542_v27 = vadd.f32 %v537_v54, %v532_v33  ;;  %v6532_v33 = vld [vmem:[#allocation7 + $0x8] sm:$0xff] }
 0x34e   :  { %v6476_v37 = vadd.f32 %v549_v32, %v543_v35  ;;  %5572 = vmatpush3.bf16.msra.mxu1 %v5569_v17 }
 0x34f   :  { %v6478_v22 = vadd.f32 %v548_v36, %v542_v27  ;;  %v643_v27 = vrot.slane %v6532_v33, %v6366_v12 }
 0x350   :  { %v577_v38 = vsel %vm444_vm4, %v6476_v37, 0.0 }
 0x351   :  { %578 = vadd.xlane.f32.xlu0 %v577_v38  ;;  %v574_v39 = vsel %vm444_vm4, %v6478_v22, 0.0 }
 0x352   :  { %575 = vadd.xlane.f32.xlu1 %v574_v39 }
 0x3ce   :  { %v567_v40 = vpop.xlane.xlu0 %566 }
 0x3cf   :  { %v581_v41 = vmul.f32 0.03125, %v567_v40  ;;  %v653_v40 = vrot.slane %v6532_v33, %v6371_v14 }
 0x3d1   :  { %v6485_v42 = vsub.f32 %v6442_v0, %v581_v41 }
 0x3d2   :  { %v564_v44 = vpop.xlane.xlu1 %563 }
 0x3d3   :  { %v580_v45 = vmul.f32 0.03125, %v564_v44  ;;  %v593_v47 = vmul.f32 %v6485_v42, %v6485_v42 }
 0x3d5   :  { %v6490_v48 = vsub.f32 %v6449_v7, %v580_v45  ;;  %v601_v49 = vsel %vm444_vm4, %v593_v47, 0.0 }
 0x3d6   :  { %602 = vadd.xlane.f32.xlu0 %v601_v49  ;;  %v573_v50 = vpop.xlane.xlu0 %572 }
 0x3d7   :  { %v583_v51 = vmul.f32 0.03125, %v573_v50  ;;  %v592_v52 = vmul.f32 %v6490_v48, %v6490_v48 }
 0x3d9   :  { %v6496_v53 = vsub.f32 %v6457_v19, %v583_v51  ;;  %v598_v54 = vsel %vm444_vm4, %v592_v52, 0.0 }
 0x3da   :  { %599 = vadd.xlane.f32.xlu1 %v598_v54  ;;  %v570_v55 = vpop.xlane.xlu1 %569 }
 0x3db   :  { %v582_v56 = vmul.f32 0.03125, %v570_v55  ;;  %v595_v57 = vmul.f32 %v6496_v53, %v6496_v53 }
 0x3dd   :  { %v6502_v58 = vsub.f32 %v6466_v16, %v582_v56  ;;  %v607_v59 = vsel %vm444_vm4, %v595_v57, 0.0 }
 0x3de   :  { %608 = vadd.xlane.f32.xlu0 %v607_v59  ;;  %v579_v60 = vpop.xlane.xlu0 %578 }
 0x3df   :  { %v585_v61 = vmul.f32 0.03125, %v579_v60  ;;  %v576_v62 = vpop.xlane.xlu1 %575  ;;  %v594_v63 = vmul.f32 %v6502_v58, %v6502_v58 }
 0x3e0   :  { %v584_v1 = vmul.f32 0.03125, %v576_v62 }
 0x3e1   :  { %v6508_v2 = vsub.f32 %v6476_v37, %v585_v61  ;;  %v604_v13 = vsel %vm444_vm4, %v594_v63, 0.0 }
 0x3e2   :  { %v6512_v3 = vsub.f32 %v6478_v22, %v584_v1  ;;  %605 = vadd.xlane.f32.xlu1 %v604_v13 }
 0x3e3   :  { %v597_v4 = vmul.f32 %v6508_v2, %v6508_v2 }
 0x3e4   :  { %v596_v5 = vmul.f32 %v6512_v3, %v6512_v3 }
 0x3e5   :  { %v613_v8 = vsel %vm444_vm4, %v597_v4, 0.0 }
 0x3e6   :  { %614 = vadd.xlane.f32.xlu0 %v613_v8  ;;  %v610_v6 = vsel %vm444_vm4, %v596_v5, 0.0 }
 0x3e7   :  { %611 = vadd.xlane.f32.xlu1 %v610_v6 }
 0x463   :  { %v603_v21 = vpop.xlane.xlu0 %602 }
 0x464   :  { %v617_v23 = vmul.f32 0.03125, %v603_v21 }
 0x466   :  { %v623_v24 = vadd.f32 1e-05, %v617_v23 }
 0x467   :  { %v600_v25 = vpop.xlane.xlu1 %599 }
 0x468   :  { %5887 = vrsqrt.f32 %v623_v24  ;;  %v616_v26 = vmul.f32 0.03125, %v600_v25  ;;  %v6178_v24 = vmov 0.0  }
 0x469   :  { %5109 = vmatprep.mubr.msk.f32.mxu0 %vm6177_vm5, %v6178_v24 }
 0x46a   :  { %v622_v30 = vadd.f32 1e-05, %v616_v26 }
 0x46b   :  { %v609_v31 = vpop.xlane.xlu0 %608 }
 0x46c   :  { %5889 = vrsqrt.f32 %v622_v30  ;;  %v619_v32 = vmul.f32 0.03125, %v609_v31 }
 0x46e   :  { %v625_v34 = vadd.f32 1e-05, %v619_v32 }
 0x46f   :  { %v606_v35 = vpop.xlane.xlu1 %605 }
 0x470   :  { %5891 = vrsqrt.f32 %v625_v34  ;;  %v618_v36 = vmul.f32 0.03125, %v606_v35 }
 0x472   :  { %v5888_v38 = vpop.eup %5887  ;;  %v624_v39 = vadd.f32 1e-05, %v618_v36 }
 0x473   :  { %v635_v41 = vmul.f32 %v5888_v38, %v6485_v42  ;;  %v615_v44 = vpop.xlane.xlu0 %614 }
 0x474   :  { %5893 = vrsqrt.f32 %v624_v39  ;;  %v621_v45 = vmul.f32 0.03125, %v615_v44  ;;  %v612_v47 = vpop.xlane.xlu1 %611 }
 0x475   :  { %v620_v49 = vmul.f32 0.03125, %v612_v47  ;;  %v645_v50 = vmul.f32 %v643_v27, %v635_v41 }
 0x476   :  { %v5890_v51 = vpop.eup %5889  ;;  %v627_v52 = vadd.f32 1e-05, %v621_v45 }
 0x477   :  { %v626_v54 = vadd.f32 1e-05, %v620_v49  ;;  %v634_v55 = vmul.f32 %v5890_v51, %v6490_v48  ;;  %v655_v56 = vadd.f32 %v653_v40, %v645_v50 }
 0x478   :  { %5895 = vrsqrt.f32 %v627_v52 }
 0x479   :  { %5897 = vrsqrt.f32 %v626_v54  ;;  %v644_v57 = vmul.f32 %v643_v27, %v634_v55  ;;  %v6635_v54 = vld [vmem:[%s7685_s30] sm:$0xff] }
 0x47a   :  { %v5892_v59 = vpop.eup %5891 }
 0x47b   :  { %v654_v60 = vadd.f32 %v653_v40, %v644_v57  ;;  %v637_v61 = vmul.f32 %v5892_v59, %v6496_v53 }
 0x47d   :  { %5079 = vmatprep.mubr.msk.f32.mxu1 %vm444_vm4, %v654_v60  ;;  %v647_v42 = vmul.f32 %v643_v27, %v637_v61  ;;  %v6641_v60 = vld [vmem:[%s7685_s30 + $0x8] sm:$0xff] }
 0x47e   :  { %v5894_v62 = vpop.eup %5893  ;;  %5080 = vmatmul.mubr.msk.f32.vlgmr.msra.gmra.mrb[2].mxu1 %vm444_vm4, %v655_v56 }
 0x47f   :  { %v636_v63 = vmul.f32 %v5894_v62, %v6502_v58  ;;  %v657_v1 = vadd.f32 %v653_v40, %v647_v42  ;;  %v6175_v58 = vmov 0.0|0.0  }
 0x480   :  { %5573 = vmatprep.subr.bf16.mxu1 %v6175_v58  ;;  %5577 = vmatprep.subr.bf16.mxu0 %v6175_v58 }
 0x481   :  { %v646_v13 = vmul.f32 %v643_v27, %v636_v63 }
 0x482   :  { %v5896_v4 = vpop.eup %5895 }
 0x483   :  { %v5898_v48 = vpop.eup %5897  ;;  %v656_v5 = vadd.f32 %v653_v40, %v646_v13  ;;  %v639_v8 = vmul.f32 %v5896_v4, %v6508_v2  ;;  %v4627_v2 = vld [vmem:[%s7656_s10] ss:$0 sm:$0xff] }
 0x484   :  { %v638_v6 = vmul.f32 %v5898_v48, %v6512_v3 }
 0x485   :  { %5082 = vmatprep.mubr.msk.f32.mxu1 %vm444_vm4, %v656_v5  ;;  %v649_v53 = vmul.f32 %v643_v27, %v639_v8  ;;  %v6649_v8 = vld [vmem:[%s7685_s30 + $0x18] sm:$0xff] }
 0x486   :  { %5083 = vmatmul.mubr.msk.f32.gmra.mrb[4].mxu1 %vm444_vm4, %v657_v1  ;;  %v648_v9 = vmul.f32 %v643_v27, %v638_v6 }
 0x487   :  { %v659_v10 = vadd.f32 %v653_v40, %v649_v53 }
 0x488   :  { %v658_v15 = vadd.f32 %v653_v40, %v648_v9 }
 0x48a   :  { %5085 = vmatprep.mubr.msk.f32.mxu1 %vm444_vm4, %v658_v15  ;;  %v6654_v15 = vld [vmem:[%s7685_s30 + $0x10] sm:$0xff] }
 0x48b   :  { %5086 = vmatmul.mubr.msk.f32.gmra.mrb[6].mxu1 %vm444_vm4, %v659_v10 }
 0x48c   :  { %5094 = vmatprep.mubr.msk.f32.mxu1 %vm6177_vm5, %v6178_v24 }
 0x551   :  { %v5081_v3 = vpop.f32.mrb[2].mxu1 }
 0x552   :  { %v6555_v18 = vadd.f32 %v5081_v3, %v4627_v2  ;;  %v753_v20 = vpop.f32.mrb[3].mxu1 }
 0x553   :  { %v6557_v17 = vadd.f32 %v4627_v2, %v753_v20  ;;  %v6660_v20 = vld [vmem:[%s7685_s30 + $0x20] sm:$0xff] }
 0x555   :  { %v6561_v21 = vpack.i.bf16 %v6555_v18, %v6557_v17 }
 0x557   :  { %5796 = vrot.lane.b32.xlu1 %v6561_v21, %s6176_s4 }
 0x559   :  { %v5084_v23 = vpop.f32.mrb[4].mxu1 }
 0x55a   :  { %v763_v25 = vpop.f32.mrb[5].mxu1  ;;  %v6575_v34 = vadd.f32 %v5084_v23, %v4627_v2 }
 0x55b   :  { %v6569_v26 = vadd.f32 %v4627_v2, %v763_v25 }
 0x55d   :  { %793 = vrot.lane.b32.xlu1 %v6569_v26, %s6176_s4 }
 0x55e   :  { %v5087_v30 = vpop.f32.mrb[6].mxu1 }
 0x55f   :  { %v6573_v31 = vadd.f32 %v5087_v30, %v4627_v2  ;;  %v773_v32 = vpop.f32.mrb[7].mxu1 }
 0x560   :  { %v6577_v35 = vadd.f32 %v4627_v2, %v773_v32 }
 0x561   :  { %895 = vrot.lane.b32.xlu1 %v6573_v31, %s6176_s4 }
 0x562   :  { %v6583_v36 = vpack.i.bf16 %v6577_v35, %v6575_v34 }
 0x564   :  { %5801 = vrot.lane.b32.xlu0 %v6583_v36, %s6176_s4 }
 0x5c9   :  { %v5797_v27 = vpop.permute.xlu1 %5796 }
 0x5ca   :  { %v5799_v38 = vunpack.i.h.bf16 %v5797_v27  ;;  %v5798_v39 = vunpack.i.l.bf16 %v5797_v27 }
 0x5cc   :  { %v5574_v41 = vpack.c.bf16 %v5799_v38, %v5798_v39 }
 0x5ce   :  { %5576 = vmatpush3.bf16.xpose.msk.msra.mxu1 %vm6589_vm7, %v5574_v41 }
 0x5cf   :  { %5092 = vmatprep.subr.mxu1 %v6178_v24  ;;  %v794_v44 = vpop.permute.xlu1 %793 }
 0x5d3   :  { %v896_v51 = vpop.permute.xlu1 %895 }
 0x5d6   :  { %v5802_v45 = vpop.permute.xlu0 %5801  ;;  %5093 = vmatpush3.xpose.msk.msra.mxu1 %vm795_vm6, %v794_v44  ;;  %v6684_v44 = vld [vmem:[%s7685_s30 + $0x28] sm:$0xff] }
 0x5d7   :  { %v5804_v47 = vunpack.i.h.bf16 %v5802_v45  ;;  %v5803_v49 = vunpack.i.l.bf16 %v5802_v45  ;;  %5761 = vmatprep.subr.bf16.mxu1 %v6175_v58 }
 0x5d9   :  { %v5578_v50 = vpack.c.bf16 %v5804_v47, %v5803_v49  ;;  %5095 = vmatmul.mubr.msk.f32.vlgmr.msra.gmra.mrb[8].mxu1 %vm795_vm6, %v6557_v17 }
 0x5da   :  { %5097 = vmatprep.mubr.msk.f32.mxu1 %vm6177_vm5, %v6178_v24 }
 0x5db   :  { %5580 = vmatpush3.bf16.xpose.msk.msra.mxu0 %vm6589_vm7, %v5578_v50  ;;  %5763 = vmatpush3.bf16.xpose.msk.msra.mxu1 %vm6589_vm7, %v5578_v50 }
 0x5dc   :  { %5107 = vmatprep.subr.mxu0 %v6178_v24  ;;  %5762 = vmatprep.subr.mxu1 %v6178_v24 }
 0x5dd   :  { %5098 = vmatmul.mubr.msk.f32.gmra.mrb[10].mxu1 %vm795_vm6, %v6555_v18 }
 0x5de   :  { %5100 = vmatprep.mubr.msk.f32.mxu1 %vm6177_vm5, %v6178_v24 }
 0x5e1   :  { %5101 = vmatmul.mubr.msk.f32.gmra.mrb[12].mxu1 %vm795_vm6, %v6569_v26 }
 0x5e2   :  { %5115 = vmatprep.mubr.msk.f32.mxu1 %vm6177_vm5, %v6178_v24 }
 0x5e3   :  { %5108 = vmatpush3.xpose.msk.msra.mxu0 %vm795_vm6, %v896_v51  ;;  %5764 = vmatpush3.xpose.msk.msra.mxu1 %vm795_vm6, %v896_v51 }
 0x5e4   :  { %5581 = vmatprep.subr.bf16.mxu1 %v6175_v58  ;;  %5584 = vmatprep.subr.bf16.mxu0 %v6175_v58 }
 0x5e6   :  { %5110 = vmatmul.mubr.msk.f32.vlgmr.msra.gmra.mrb[8].mxu0 %vm795_vm6, %v6575_v34  ;;  %5116 = vmatmul.mubr.msk.f32.vlgmr.msra.gmra.mrb[14].mxu1 %vm795_vm6, %v6573_v31 }
 0x5e7   :  { %5112 = vmatprep.mubr.msk.f32.mxu0 %vm6177_vm5, %v6178_v24  ;;  %5124 = vmatprep.mubr.msk.f32.mxu1 %vm6177_vm5, %v6178_v24 }
 0x5ea   :  { %5113 = vmatmul.mubr.msk.f32.gmra.mrb[10].mxu0 %vm795_vm6, %v6577_v35 }
 0x5eb   :  { %5139 = vmatprep.mubr.msk.f32.mxu0 %vm6177_vm5, %v6178_v24 }
 0x6ac   :  { %v874_v52 = vpop.f32.mrb[8].mxu1 }
 0x6ad   :  { %v989_v55 = vmul.f32 0.25, %v874_v52  ;;  %v5096_v56 = vpop.f32.mrb[9].mxu1 }
 0x6af   :  { %v995_v57 = vadd.f32 %v989_v55, %v6635_v54 }
 0x6b0   :  { %v879_v59 = vpop.f32.mrb[10].mxu1 }
 0x6b1   :  { %v990_v61 = vmul.f32 0.25, %v879_v59  ;;  %v5099_v42 = vpop.f32.mrb[11].mxu1  ;;  %v1002_v62 = vsel %vm1001_vm8, %v995_v57, -inf }
 0x6b2   :  { %1003 = vmax.xlane.f32.xlu0 %v1002_v62 }
 0x6b3   :  { %v996_v63 = vadd.f32 %v990_v61, %v6641_v60 }
 0x6b4   :  { %v884_v1 = vpop.f32.mrb[12].mxu1 }
 0x6b5   :  { %v5102_v13 = vpop.f32.mrb[13].mxu1  ;;  %v1005_v4 = vsel %vm1001_vm8, %v996_v63, -inf  ;;  %v991_v6 = vmul.f32 0.25, %v884_v1 }
 0x6b6   :  { %1006 = vmax.xlane.f32.xlu1 %v1005_v4 }
 0x6b7   :  { %v997_v32 = vadd.f32 %v991_v6, %v6654_v15 }
 0x6b9   :  { %v975_v48 = vpop.f32.mrb[8].mxu0  ;;  %v985_v5 = vpop.f32.mrb[14].mxu1  ;;  %v1008_v39 = vsel %vm1001_vm8, %v997_v32, -inf }
 0x6ba   :  { %v992_v53 = vmul.f32 0.25, %v975_v48  ;;  %v5111_v9 = vpop.f32.mrb[9].mxu0  ;;  %v5117_v10 = vpop.f32.mrb[15].mxu1  ;;  %v994_v41 = vmul.f32 0.25, %v985_v5 }
 0x6bc   :  { %v998_v2 = vadd.f32 %v992_v53, %v6649_v8  ;;  %v6687_v45 = vadd.f32 %v994_v41, %v6684_v44 }
 0x6bd   :  { %v980_v3 = vpop.f32.mrb[10].mxu0 }
 0x6be   :  { %v993_v23 = vmul.f32 0.25, %v980_v3  ;;  %v5114_v25 = vpop.f32.mrb[11].mxu0  ;;  %v1011_v30 = vsel %vm1001_vm8, %v998_v2, -inf  ;;  %v1017_v47 = vsel %vm1001_vm8, %v6687_v45, -inf }
 0x6bf   :  { %1012 = vmax.xlane.f32.xlu0 %v1011_v30 }
 0x6c0   :  { %v999_v27 = vadd.f32 %v993_v23, %v6660_v20 }
 0x6c2   :  { %v1014_v38 = vsel %vm1001_vm8, %v999_v27, -inf }
 0x6c3   :  { %1015 = vmax.xlane.f32.xlu1 %v1014_v38  ;;  %1009 = vmax.xlane.f32.xlu0 %v1008_v39 }
 0x6d4   :  { %5806 = vrot.lane.b32.xlu1 %v6561_v21, %s6179_s23 }
 0x6d8   :  { %1072 = vrot.lane.b32.xlu1 %v6569_v26, %s6179_s23 }
 0x6d9   :  { %5811 = vrot.lane.b32.xlu0 %v6583_v36, %s6179_s23 }
 0x6dc   :  { %1170 = vrot.lane.b32.xlu1 %v6573_v31, %s6179_s23 }
 0x6dd   :  { %5816 = vrot.lane.b32.xlu0 %v6561_v21, %s6180_s25 }
 0x6e0   :  { %5821 = vrot.lane.b32.xlu1 %v6583_v36, %s6180_s25 }
 0x6e4   :  { %1264 = vrot.lane.b32.xlu1 %v6557_v17, %s6181_s27 }
 0x6fc   :  { %1018 = vmax.xlane.f32.xlu0 %v1017_v47 }
 0x712   :  { %1274 = vrot.lane.b32.xlu0 %v6569_v26, %s6180_s25 }
 0x73f   :  { %v1004_v49 = vpop.xlane.xlu0 %1003 }
 0x740   :  { %v1020_v50 = vsub.f32 %v995_v57, %v1004_v49 }
 0x742   :  { %v1026_v51 = vmul.f32 1.442695, %v1020_v50 }
 0x743   :  { %v1007_v17 = vpop.xlane.xlu1 %1006 }
 0x744   :  { %5899 = vpow2.f32 %v1026_v51  ;;  %v1021_v52 = vsub.f32 %v996_v63, %v1007_v17 }
 0x746   :  { %v1028_v55 = vmul.f32 1.442695, %v1021_v52 }
 0x748   :  { %5901 = vpow2.f32 %v1028_v55 }
 0x74c   :  { %v1013_v56 = vpop.xlane.xlu0 %1012 }
 0x74d   :  { %v1023_v59 = vsub.f32 %v998_v2, %v1013_v56 }
 0x74e   :  { %v6693_v61 = vpop.eup %5899 }
 0x74f   :  { %v1032_v42 = vmul.f32 1.442695, %v1023_v59  ;;  %v1038_v62 = vsel %vm1001_vm8, %v6693_v61, 0.0 }
 0x750   :  { %v1016_v1 = vpop.xlane.xlu1 %1015  ;;  %v1010_v13 = vpop.xlane.xlu0 %1009  ;;  %1039 = vadd.xlane.f32.xlu1 %v1038_v62 }
 0x751   :  { %5903 = vpow2.f32 %v1032_v42  ;;  %v1024_v4 = vsub.f32 %v999_v27, %v1016_v1  ;;  %v1022_v57 = vsub.f32 %v997_v32, %v1010_v13 }
 0x752   :  { %v6697_v48 = vpop.eup %5901 }
 0x753   :  { %v1034_v5 = vmul.f32 1.442695, %v1024_v4  ;;  %v1030_v63 = vmul.f32 1.442695, %v1022_v57  ;;  %v1041_v6 = vsel %vm1001_vm8, %v6697_v48, 0.0 }
 0x754   :  { %v5807_v53 = vpop.permute.xlu1 %5806  ;;  %v5812_v9 = vpop.permute.xlu0 %5811  ;;  %1042 = vadd.xlane.f32.xlu0 %v1041_v6 }
 0x755   :  { %5905 = vpow2.f32 %v1034_v5  ;;  %v5809_v10 = vunpack.i.h.bf16 %v5807_v53  ;;  %v5808_v2 = vunpack.i.l.bf16 %v5807_v53  ;;  %v5814_v3 = vunpack.i.h.bf16 %v5812_v9 }
 0x756   :  { %5907 = vpow2.f32 %v1030_v63  ;;  %v5813_v23 = vunpack.i.l.bf16 %v5812_v9 }
 0x757   :  { %v5582_v25 = vpack.c.bf16 %v5809_v10, %v5808_v2 }
 0x758   :  { %v5585_v30 = vpack.c.bf16 %v5814_v3, %v5813_v23  ;;  %v1073_v27 = vpop.permute.xlu1 %1072  ;;  %v5817_v51 = vpop.permute.xlu0 %5816 }
 0x759   :  { %5583 = vmatpush3.bf16.msra.mxu1 %v5582_v25  ;;  %v5819_v13 = vunpack.i.h.bf16 %v5817_v51  ;;  %v5818_v4 = vunpack.i.l.bf16 %v5817_v51 }
 0x75a   :  { %5586 = vmatpush3.bf16.msra.mxu0 %v5585_v30  ;;  %5122 = vmatprep.subr.mxu1 %v6178_v24 }
 0x75b   :  { %v5904_v32 = vpop.eup %5903  ;;  %5137 = vmatprep.subr.mxu0 %v6178_v24  ;;  %v5588_v63 = vpack.c.bf16 %v5819_v13, %v5818_v4 }
 0x75c   :  { %v1171_v38 = vpop.permute.xlu1 %1170  ;;  %v1047_v39 = vsel %vm1001_vm8, %v5904_v32, 0.0 }
 0x75d   :  { %1048 = vadd.xlane.f32.xlu1 %v1047_v39  ;;  %5123 = vmatpush3.msra.mxu1 %v1073_v27 }
 0x75e   :  { %5138 = vmatpush3.msra.mxu0 %v1171_v38  ;;  %5587 = vmatprep.subr.bf16.mxu1 %v6175_v58 }
 0x75f   :  { %v5906_v41 = vpop.eup %5905  ;;  %5591 = vmatprep.subr.bf16.mxu0 %v6175_v58 }
 0x760   :  { %v5908_v47 = vpop.eup %5907  ;;  %v1050_v49 = vsel %vm1001_vm8, %v5906_v41, 0.0  ;;  %v5822_v59 = vpop.permute.xlu1 %5821 }
 0x761   :  { %1051 = vadd.xlane.f32.xlu1 %v1050_v49  ;;  %v1044_v50 = vsel %vm1001_vm8, %v5908_v47, 0.0  ;;  %v5823_v10 = vunpack.i.l.bf16 %v5822_v59 }
 0x762   :  { %1045 = vadd.xlane.f32.xlu0 %v1044_v50 }
 0x764   :  { %v1265_v42 = vpop.permute.xlu1 %1264 }
 0x772   :  { %1266 = vrot.lane.b32.xlu1 %v6555_v18, %s6181_s27 }
 0x776   :  { %1268 = vrot.lane.b32.xlu1 %v6569_v26, %s6181_s27 }
 0x778   :  { %1378 = vrot.lane.b32.xlu0 %v6573_v31, %s6180_s25 }
 0x77a   :  { %1372 = vrot.lane.b32.xlu1 %v6573_v31, %s6181_s27 }
 0x789   :  { %v1019_v17 = vpop.xlane.xlu0 %1018 }
 0x78a   :  { %v1025_v52 = vsub.f32 %v6687_v45, %v1019_v17 }
 0x78c   :  { %v1036_v55 = vmul.f32 1.442695, %v1025_v52 }
 0x78d   :  { %v1275_v62 = vpop.permute.xlu0 %1274 }
 0x78e   :  { %5909 = vpow2.f32 %v1036_v55 }
 0x798   :  { %v6717_v56 = vpop.eup %5909 }
 0x799   :  { %v1053_v18 = vsel %vm1001_vm8, %v6717_v56, 0.0 }
 0x79a   :  { %1054 = vadd.xlane.f32.xlu0 %v1053_v18 }
 0x7b0   :  { %1368 = vrot.lane.b32.xlu0 %v6575_v34, %s6181_s27 }
 0x7b4   :  { %1370 = vrot.lane.b32.xlu0 %v6577_v35, %s6181_s27 }
 0x7dd   :  { %v1040_v1 = vpop.xlane.xlu1 %1039 }
 0x7de   :  { %5911 = vrcp.f32 %v1040_v1 }
 0x7e1   :  { %v1043_v45 = vpop.xlane.xlu0 %1042 }
 0x7e2   :  { %5913 = vrcp.f32 %v1043_v45 }
 0x7e8   :  { %v5912_v57 = vpop.eup %5911 }
 0x7e9   :  { %v1062_v5 = vmul.f32 %v5912_v57, %v6693_v61  ;;  %v5824_v61 = vunpack.i.h.bf16 %v5822_v59 }
 0x7ea   :  { %v1049_v6 = vpop.xlane.xlu1 %1048 }
 0x7eb   :  { %5915 = vrcp.f32 %v1049_v6  ;;  %5125 = vmatmul.mubr.msk.f32.vlgmr.msra.gmra.mrb[16].mxu1 %vm1001_vm8, %v1062_v5 }
 0x7ec   :  { %v5914_v34 = vpop.eup %5913  ;;  %5590 = vmatpush3.bf16.xpose.msk.msra.mxu1 %vm6589_vm7, %v5588_v63  ;;  %5127 = vmatprep.mubr.msk.f32.mxu1 %vm6177_vm5, %v6178_v24 }
 0x7ed   :  { %v1063_v35 = vmul.f32 %v5914_v34, %v6697_v48  ;;  %5152 = vmatprep.subr.mxu1 %v6178_v24  ;;  %v5592_v48 = vpack.c.bf16 %v5824_v61, %v5823_v10 }
 0x7ee   :  { %v1052_v53 = vpop.xlane.xlu1 %1051 }
 0x7ef   :  { %5917 = vrcp.f32 %v1052_v53  ;;  %v1046_v9 = vpop.xlane.xlu0 %1045  ;;  %5128 = vmatmul.mubr.msk.f32.gmra.mrb[18].mxu1 %vm1001_vm8, %v1063_v35 }
 0x7f0   :  { %5919 = vrcp.f32 %v1046_v9  ;;  %5130 = vmatprep.mubr.msk.f32.mxu1 %vm6177_vm5, %v6178_v24 }
 0x7f2   :  { %v1267_v38 = vpop.permute.xlu1 %1266 }
 0x7f4   :  { %5153 = vmatpush3.xpose.msk.msra.mxu1 %vm795_vm6, %v1275_v62 }
 0x7f5   :  { %v5916_v2 = vpop.eup %5915  ;;  %5595 = vmatprep.subr.bf16.mxu1 %v6175_v58 }
 0x7f6   :  { %v1065_v3 = vmul.f32 %v5916_v2, %v5904_v32  ;;  %v1379_v32 = vpop.permute.xlu0 %1378  ;;  %v1269_v39 = vpop.permute.xlu1 %1268 }
 0x7f8   :  { %5140 = vmatmul.mubr.msk.f32.vlgmr.msra.gmra.mrb[12].mxu0 %vm1001_vm8, %v1065_v3 }
 0x7f9   :  { %v5918_v23 = vpop.eup %5917  ;;  %5594 = vmatpush3.bf16.xpose.msk.msra.mxu0 %vm6589_vm7, %v5592_v48  ;;  %5142 = vmatprep.mubr.msk.f32.mxu0 %vm6177_vm5, %v6178_v24 }
 0x7fa   :  { %v5920_v25 = vpop.eup %5919  ;;  %v1066_v30 = vmul.f32 %v5918_v23, %v5906_v41  ;;  %5167 = vmatprep.subr.mxu0 %v6178_v24  ;;  %v1373_v17 = vpop.permute.xlu1 %1372 }
 0x7fb   :  { %v1064_v27 = vmul.f32 %v5920_v25, %v5908_v47 }
 0x7fc   :  { %5143 = vmatmul.mubr.msk.f32.gmra.mrb[14].mxu0 %vm1001_vm8, %v1066_v30 }
 0x7fd   :  { %5131 = vmatmul.mubr.msk.f32.gmra.mrb[20].mxu1 %vm1001_vm8, %v1064_v27  ;;  %5145 = vmatprep.mubr.msk.f32.mxu0 %vm6177_vm5, %v6178_v24 }
 0x7fe   :  { %5154 = vmatprep.mubr.msk.f32.mxu1 %vm6177_vm5, %v6178_v24 }
 0x801   :  { %5155 = vmatmul.mubr.msk.f32.vlgmr.msra.gmra.mrb[22].mxu1 %vm795_vm6, %v1265_v42  ;;  %5168 = vmatpush3.xpose.msk.msra.mxu0 %vm795_vm6, %v1379_v32 }
 0x802   :  { %5157 = vmatprep.mubr.msk.f32.mxu1 %vm6177_vm5, %v6178_v24  ;;  %5598 = vmatprep.subr.bf16.mxu0 %v6175_v58 }
 0x805   :  { %5158 = vmatmul.mubr.msk.f32.gmra.mrb[24].mxu1 %vm795_vm6, %v1267_v38 }
 0x806   :  { %5160 = vmatprep.mubr.msk.f32.mxu1 %vm6177_vm5, %v6178_v24 }
 0x809   :  { %5161 = vmatmul.mubr.msk.f32.gmra.mrb[26].mxu1 %vm795_vm6, %v1269_v39 }
 0x80a   :  { %5184 = vmatprep.mubr.msk.f32.mxu1 %vm6177_vm5, %v6178_v24 }
 0x827   :  { %v1055_v41 = vpop.xlane.xlu0 %1054 }
 0x828   :  { %5921 = vrcp.f32 %v1055_v41 }
 0x82b   :  { %v1369_v50 = vpop.permute.xlu0 %1368 }
 0x82f   :  { %v1371_v51 = vpop.permute.xlu0 %1370 }
 0x832   :  { %v5922_v47 = vpop.eup %5921 }
 0x833   :  { %v1067_v49 = vmul.f32 %v5922_v47, %v6717_v56 }
 0x835   :  { %5146 = vmatmul.mubr.msk.f32.gmra.mrb[16].mxu0 %vm1001_vm8, %v1067_v49 }
 0x836   :  { %5169 = vmatprep.mubr.msk.f32.mxu0 %vm6177_vm5, %v6178_v24 }
 0x839   :  { %5170 = vmatmul.mubr.msk.f32.vlgmr.msra.gmra.mrb[18].mxu0 %vm795_vm6, %v1369_v50 }
 0x83a   :  { %5172 = vmatprep.mubr.msk.f32.mxu0 %vm6177_vm5, %v6178_v24 }
 0x83d   :  { %5173 = vmatmul.mubr.msk.f32.gmra.mrb[20].mxu0 %vm795_vm6, %v1371_v51 }
 0x83e   :  { %5175 = vmatprep.mubr.msk.f32.mxu0 %vm6177_vm5, %v6178_v24 }
 0x841   :  { %5176 = vmatmul.mubr.msk.f32.gmra.mrb[22].mxu0 %vm795_vm6, %v1373_v17 }
 0x842   :  { %5199 = vmatprep.mubr.msk.f32.mxu0 %vm6177_vm5, %v6178_v24 }
 0x8be   :  { %v6774_v52 = vpop.f32.mrb[16].mxu1 }
 0x8bf   :  { %v5126_v55 = vpop.f32.mrb[17].mxu1 }
 0x8c2   :  { %v6776_v56 = vpop.f32.mrb[18].mxu1 }
 0x8c3   :  { %v5129_v18 = vpop.f32.mrb[19].mxu1 }
 0x8cb   :  { %v6778_v59 = vpop.f32.mrb[12].mxu0 }
 0x8cc   :  { %v5141_v42 = vpop.f32.mrb[13].mxu0 }
 0x8cf   :  { %v6780_v62 = vpop.f32.mrb[14].mxu0 }
 0x8d0   :  { %v6782_v1 = vpop.f32.mrb[20].mxu1  ;;  %v5144_v45 = vpop.f32.mrb[15].mxu0 }
 0x8d1   :  { %v5132_v13 = vpop.f32.mrb[21].mxu1 }
 0x8d4   :  { %v1354_v4 = vpop.f32.mrb[22].mxu1 }
 0x8d5   :  { %v1472_v57 = vmul.f32 0.25, %v1354_v4  ;;  %v5156_v5 = vpop.f32.mrb[23].mxu1 }
 0x8d7   :  { %v1478_v63 = vadd.f32 %v1472_v57, %v6635_v54 }
 0x8d8   :  { %v1359_v6 = vpop.f32.mrb[24].mxu1 }
 0x8d9   :  { %v1473_v34 = vmul.f32 0.25, %v1359_v6  ;;  %v5159_v35 = vpop.f32.mrb[25].mxu1  ;;  %v1484_v53 = vsel %vm1001_vm8, %v1478_v63, -inf }
 0x8da   :  { %1485 = vmax.xlane.f32.xlu0 %v1484_v53 }
 0x8db   :  { %v1479_v9 = vadd.f32 %v1473_v34, %v6641_v60 }
 0x8dc   :  { %v1364_v61 = vpop.f32.mrb[26].mxu1 }
 0x8dd   :  { %v5162_v10 = vpop.f32.mrb[27].mxu1  ;;  %v1487_v2 = vsel %vm1001_vm8, %v1479_v9, -inf  ;;  %v1474_v25 = vmul.f32 0.25, %v1364_v61 }
 0x8de   :  { %1488 = vmax.xlane.f32.xlu1 %v1487_v2 }
 0x8df   :  { %v1480_v60 = vadd.f32 %v1474_v25, %v6654_v15 }
 0x8e1   :  { %v1490_v55 = vsel %vm1001_vm8, %v1480_v60, -inf }
 0x908   :  { %v6788_v3 = vpop.f32.mrb[16].mxu0 }
 0x909   :  { %v5147_v48 = vpop.f32.mrb[17].mxu0 }
 0x90c   :  { %v1458_v23 = vpop.f32.mrb[18].mxu0 }
 0x90d   :  { %v1475_v30 = vmul.f32 0.25, %v1458_v23  ;;  %v5171_v54 = vpop.f32.mrb[19].mxu0 }
 0x90f   :  { %v1481_v27 = vadd.f32 %v1475_v30, %v6649_v8 }
 0x910   :  { %v1463_v32 = vpop.f32.mrb[20].mxu0 }
 0x911   :  { %v1476_v38 = vmul.f32 0.25, %v1463_v32  ;;  %v5174_v39 = vpop.f32.mrb[21].mxu0  ;;  %v1493_v41 = vsel %vm1001_vm8, %v1481_v27, -inf }
 0x912   :  { %1494 = vmax.xlane.f32.xlu0 %v1493_v41 }
 0x913   :  { %v1482_v47 = vadd.f32 %v1476_v38, %v6660_v20 }
 0x914   :  { %v1468_v49 = vpop.f32.mrb[22].mxu0 }
 0x915   :  { %v1477_v50 = vmul.f32 0.25, %v1468_v49  ;;  %v5177_v51 = vpop.f32.mrb[23].mxu0  ;;  %v1496_v17 = vsel %vm1001_vm8, %v1482_v47, -inf }
 0x916   :  { %1497 = vmax.xlane.f32.xlu1 %v1496_v17  ;;  %1491 = vmax.xlane.f32.xlu0 %v1490_v55 }
 0x917   :  { %v1483_v8 = vadd.f32 %v1477_v50, %v6684_v44 }
 0x919   :  { %v1499_v18 = vsel %vm1001_vm8, %v1483_v8, -inf }
 0x91a   :  { %1500 = vmax.xlane.f32.xlu0 %v1499_v18 }
 0x927   :  { %5826 = vrot.lane.b32.xlu1 %v6561_v21, %s6182_s7 }
 0x967   :  { %v1486_v15 = vpop.xlane.xlu0 %1485 }
 0x968   :  { %v1502_v20 = vsub.f32 %v1478_v63, %v1486_v15 }
 0x96a   :  { %v1508_v42 = vmul.f32 1.442695, %v1502_v20 }
 0x96b   :  { %v1489_v45 = vpop.xlane.xlu1 %1488 }
 0x96c   :  { %5923 = vpow2.f32 %v1508_v42  ;;  %v1503_v13 = vsub.f32 %v1479_v9, %v1489_v45 }
 0x96e   :  { %v1510_v4 = vmul.f32 1.442695, %v1503_v13 }
 0x970   :  { %5925 = vpow2.f32 %v1510_v4 }
 0x976   :  { %v5924_v57 = vpop.eup %5923 }
 0x977   :  { %v1520_v5 = vsel %vm1001_vm8, %v5924_v57, 0.0 }
 0x978   :  { %1521 = vadd.xlane.f32.xlu1 %v1520_v5 }
 0x97a   :  { %v5926_v44 = vpop.eup %5925 }
 0x97b   :  { %v1523_v6 = vsel %vm1001_vm8, %v5926_v44, 0.0 }
 0x97c   :  { %1524 = vadd.xlane.f32.xlu0 %v1523_v6 }
 0x99f   :  { %v1495_v34 = vpop.xlane.xlu0 %1494 }
 0x9a0   :  { %v1505_v35 = vsub.f32 %v1481_v27, %v1495_v34 }
 0x9a2   :  { %v1514_v53 = vmul.f32 1.442695, %v1505_v35 }
 0x9a3   :  { %v1498_v21 = vpop.xlane.xlu1 %1497  ;;  %v1492_v61 = vpop.xlane.xlu0 %1491 }
 0x9a4   :  { %5927 = vpow2.f32 %v1514_v53  ;;  %v1506_v63 = vsub.f32 %v1482_v47, %v1498_v21  ;;  %v1504_v10 = vsub.f32 %v1480_v60, %v1492_v61 }
 0x9a6   :  { %v1516_v2 = vmul.f32 1.442695, %v1506_v63  ;;  %v1512_v9 = vmul.f32 1.442695, %v1504_v10 }
 0x9a7   :  { %v5827_v48 = vpop.permute.xlu1 %5826  ;;  %v1501_v23 = vpop.xlane.xlu0 %1500 }
 0x9a8   :  { %5929 = vpow2.f32 %v1516_v2  ;;  %v5829_v25 = vunpack.i.h.bf16 %v5827_v48  ;;  %v5828_v30 = vunpack.i.l.bf16 %v5827_v48  ;;  %v1507_v54 = vsub.f32 %v1483_v8, %v1501_v23  ;;  %v784_v2 = vld [vmem:[%s7657_s11 + $0x10] sm:$0xff]  ;;  %v782_v23 = vld [vmem:[%s7657_s11] sm:$0xff] }
 0x9a9   :  { %5931 = vpow2.f32 %v1512_v9  ;;  %v785_v9 = vld [vmem:[%s7657_s11 + $0x18] sm:$0xff] }
 0x9aa   :  { %v5596_v32 = vpack.c.bf16 %v5829_v25, %v5828_v30  ;;  %v1518_v38 = vmul.f32 1.442695, %v1507_v54  ;;  %v5601_v48 = vpack.c.bf16 %v785_v9, %v784_v2  ;;  %v783_v25 = vld [vmem:[%s7657_s11 + $0x8] sm:$0xff] }
 0x9ab   :  { %v5605_v30 = vpack.c.bf16 %v783_v25, %v782_v23 }
 0x9ac   :  { %5933 = vpow2.f32 %v1518_v38  ;;  %5597 = vmatpush3.bf16.msra.mxu1 %v5596_v32 }
 0x9ad   :  { %5182 = vmatprep.subr.mxu1 %v6178_v24 }
 0x9ae   :  { %v5928_v27 = vpop.eup %5927 }
 0x9af   :  { %v1529_v39 = vsel %vm1001_vm8, %v5928_v27, 0.0 }
 0x9b0   :  { %1530 = vadd.xlane.f32.xlu1 %v1529_v39 }
 0x9b2   :  { %v5930_v41 = vpop.eup %5929 }
 0x9b3   :  { %v5932_v60 = vpop.eup %5931  ;;  %v1532_v47 = vsel %vm1001_vm8, %v5930_v41, 0.0 }
 0x9b4   :  { %1533 = vadd.xlane.f32.xlu1 %v1532_v47  ;;  %v1526_v49 = vsel %vm1001_vm8, %v5932_v60, 0.0 }
 0x9b5   :  { %1527 = vadd.xlane.f32.xlu0 %v1526_v49 }
 0x9b6   :  { %v5934_v50 = vpop.eup %5933 }
 0x9b7   :  { %v1535_v51 = vsel %vm1001_vm8, %v5934_v50, 0.0 }
 0x9b9   :  { %1536 = vadd.xlane.f32.xlu0 %v1535_v51 }
 0x9c5   :  { %1554 = vrot.lane.b32.xlu1 %v6569_v26, %s6182_s7 }
 0x9c9   :  { %1652 = vrot.lane.b32.xlu1 %v6573_v31, %s6182_s7 }
 0x9cf   :  { %5831 = vrot.lane.b32.xlu0 %v6583_v36, %s6182_s7 }
 0xa05   :  { %v1522_v17 = vpop.xlane.xlu1 %1521 }
 0xa06   :  { %5935 = vrcp.f32 %v1522_v17 }
 0xa09   :  { %v1525_v55 = vpop.xlane.xlu0 %1524 }
 0xa0a   :  { %5937 = vrcp.f32 %v1525_v55  ;;  %v1981_v55 = vrot.slane %v6532_v33, %v526_v43 }
 0xa10   :  { %v5936_v15 = vpop.eup %5935 }
 0xa11   :  { %v1544_v42 = vmul.f32 %v5936_v15, %v5924_v57 }
 0xa14   :  { %v5938_v13 = vpop.eup %5937 }
 0xa15   :  { %v1545_v31 = vmul.f32 %v5938_v13, %v5926_v44 }
 0xa3d   :  { %v1531_v8 = vpop.xlane.xlu1 %1530 }
 0xa41   :  { %v1534_v18 = vpop.xlane.xlu1 %1533 }
 0xa42   :  { %v1528_v20 = vpop.xlane.xlu0 %1527 }
 0xa43   :  { %5939 = vrcp.f32 %v1528_v20 }
 0xa44   :  { %5941 = vrcp.f32 %v1531_v8 }
 0xa45   :  { %v1555_v45 = vpop.permute.xlu1 %1554  ;;  %5943 = vrcp.f32 %v1534_v18 }
 0xa46   :  { %v1537_v26 = vpop.xlane.xlu0 %1536  ;;  %5183 = vmatpush3.msra.mxu1 %v1555_v45 }
 0xa47   :  { %5185 = vmatmul.mubr.msk.f32.vlgmr.msra.gmra.mrb[28].mxu1 %vm1001_vm8, %v1544_v42  ;;  %5945 = vrcp.f32 %v1537_v26  ;;  %5602 = vmatprep.subr.bf16.mxu1 %v5601_v48 }
 0xa48   :  { %5187 = vmatprep.mubr.msk.f32.mxu1 %vm6177_vm5, %v6178_v24  ;;  %5604 = vmatpush3.bf16.msra.mxu1 %v5601_v48 }
 0xa49   :  { %v1653_v44 = vpop.permute.xlu1 %1652  ;;  %5606 = vmatprep.subr.bf16.mxu1 %v5605_v30 }
 0xa4a   :  { %v5832_v36 = vpop.permute.xlu0 %5831 }
 0xa4b   :  { %v5834_v4 = vunpack.i.h.bf16 %v5832_v36  ;;  %v5833_v5 = vunpack.i.l.bf16 %v5832_v36  ;;  %5188 = vmatmul.mubr.msk.f32.gmra.mrb[30].mxu1 %vm1001_vm8, %v1545_v31 }
 0xa4c   :  { %5190 = vmatprep.mubr.msk.f32.mxu1 %vm6177_vm5, %v6178_v24 }
 0xa4d   :  { %v5940_v57 = vpop.eup %5939  ;;  %v5599_v6 = vpack.c.bf16 %v5834_v4, %v5833_v5 }
 0xa4e   :  { %v1546_v34 = vmul.f32 %v5940_v57, %v5932_v60  ;;  %v5942_v35 = vpop.eup %5941 }
 0xa4f   :  { %5600 = vmatpush3.bf16.msra.mxu0 %v5599_v6  ;;  %v1547_v53 = vmul.f32 %v5942_v35, %v5928_v27  ;;  %v5944_v21 = vpop.eup %5943 }
 0xa50   :  { %5191 = vmatmul.mubr.msk.f32.gmra.mrb[32].mxu1 %vm1001_vm8, %v1546_v34  ;;  %5197 = vmatprep.subr.mxu0 %v6178_v24  ;;  %v1548_v61 = vmul.f32 %v5944_v21, %v5930_v41 }
 0xa51   :  { %v5946_v63 = vpop.eup %5945 }
 0xa52   :  { %v1549_v10 = vmul.f32 %v5946_v63, %v5934_v50 }
 0xa53   :  { %5198 = vmatpush3.msra.mxu0 %v1653_v44 }
 0xa54   :  { %5200 = vmatmul.mubr.msk.f32.vlgmr.msra.gmra.mrb[24].mxu0 %vm1001_vm8, %v1547_v53 }
 0xa55   :  { %5202 = vmatprep.mubr.msk.f32.mxu0 %vm6177_vm5, %v6178_v24 }
 0xa58   :  { %5203 = vmatmul.mubr.msk.f32.gmra.mrb[26].mxu0 %vm1001_vm8, %v1548_v61 }
 0xa59   :  { %5205 = vmatprep.mubr.msk.f32.mxu0 %vm6177_vm5, %v6178_v24 }
 0xa5c   :  { %5206 = vmatmul.mubr.msk.f32.gmra.mrb[28].mxu0 %vm1001_vm8, %v1549_v10 }
 0xb1a   :  { %v1634_v54 = vpop.f32.mrb[28].mxu1 }
 0xb1b   :  { %v5186_v32 = vpop.f32.mrb[29].mxu1  ;;  %5212 = vmatprep.mubr.msk.f32.mxu1 %vm795_vm6, %v1634_v54 }
 0xb1e   :  { %v1639_v38 = vpop.f32.mrb[30].mxu1 }
 0xb1f   :  { %v5189_v27 = vpop.f32.mrb[31].mxu1  ;;  %5213 = vmatmul.mubr.msk.f32.vlgmr.msra.gmra.mrb[34].mxu1 %vm795_vm6, %v1639_v38 }
 0xb20   :  { %5608 = vmatpush3.bf16.msra.mxu1 %v5605_v30 }
 0xb23   :  { %v1644_v39 = vpop.f32.mrb[32].mxu1 }
 0xb24   :  { %v5192_v41 = vpop.f32.mrb[33].mxu1  ;;  %5215 = vmatprep.mubr.msk.f32.mxu1 %vm795_vm6, %v1644_v39 }
 0xb27   :  { %v1732_v60 = vpop.f32.mrb[24].mxu0 }
 0xb28   :  { %v5201_v47 = vpop.f32.mrb[25].mxu0  ;;  %5216 = vmatmul.mubr.msk.f32.gmra.mrb[36].mxu1 %vm795_vm6, %v1732_v60 }
 0xb2b   :  { %v1737_v49 = vpop.f32.mrb[26].mxu0 }
 0xb2c   :  { %v5204_v50 = vpop.f32.mrb[27].mxu0  ;;  %5218 = vmatprep.mubr.msk.f32.mxu1 %vm795_vm6, %v1737_v49 }
 0xb2f   :  { %v1742_v51 = vpop.f32.mrb[28].mxu0 }
 0xb30   :  { %v5207_v17 = vpop.f32.mrb[29].mxu0  ;;  %5219 = vmatmul.mubr.msk.f32.gmra.mrb[38].mxu1 %vm795_vm6, %v1742_v51 }
 0xb31   :  { %5225 = vmatprep.mubr.msk.f32.mxu1 %vm795_vm6, %v6774_v52 }
 0xb34   :  { %5226 = vmatmul.mubr.msk.f32.vlgmr.msra.gmra.mrb[34].mxu1 %vm795_vm6, %v6776_v56 }
 0xb35   :  { %5228 = vmatprep.mubr.msk.f32.mxu1 %vm795_vm6, %v6782_v1 }
 0xb38   :  { %5229 = vmatmul.mubr.msk.f32.gmra.mrb[36].mxu1 %vm795_vm6, %v6778_v59 }
 0xb39   :  { %5231 = vmatprep.mubr.msk.f32.mxu1 %vm795_vm6, %v6780_v62 }
 0xb3c   :  { %5232 = vmatmul.mubr.msk.f32.gmra.mrb[38].mxu1 %vm795_vm6, %v6788_v3 }
 0xc07   :  { %v5227_v52 = vpop.f32.mrb[34].mxu1 }
 0xc08   :  { %v1973_v8 = vadd.f32 %v5227_v52, %v6442_v0  ;;  %v1943_v56 = vpop.f32.mrb[35].mxu1  ;;  %v2087_v52 = vld [vmem:[%s7658_s12 + $0x8] sm:$0xff] }
 0xc09   :  { %v1972_v18 = vadd.f32 %v1943_v56, %v6449_v7  ;;  %v2088_v56 = vld [vmem:[%s7658_s12 + $0x10] sm:$0xff] }
 0xc0a   :  { %v6863_v1 = vadd.f32 %v1981_v55, %v1973_v8 }
 0xc0b   :  { %v6865_v15 = vadd.f32 %v1981_v55, %v1972_v18  ;;  %v5230_v59 = vpop.f32.mrb[36].mxu1  ;;  %v2089_v18 = vld [vmem:[%s7658_s12 + $0x18] sm:$0xff] }
 0xc0c   :  { %v1953_v20 = vpop.f32.mrb[37].mxu1  ;;  %v1991_v62 = vsel %vm444_vm4, %v6863_v1, 0.0  ;;  %v1975_v3 = vadd.f32 %v5230_v59, %v6457_v19  ;;  %v5613_v59 = vpack.c.bf16 %v2089_v18, %v2088_v56 }
 0xc0d   :  { %v1974_v42 = vadd.f32 %v1953_v20, %v6466_v16  ;;  %1992 = vadd.xlane.f32.xlu1 %v1991_v62  ;;  %v1988_v43 = vsel %vm444_vm4, %v6865_v15, 0.0  ;;  %v2262_v20 = vld [vmem:[%s7660_s14] sm:$0xff]  ;;  %v2263_v62 = vld [vmem:[%s7660_s14 + $0x8] sm:$0xff] }
 0xc0e   :  { %1989 = vadd.xlane.f32.xlu0 %v1988_v43  ;;  %v6875_v45 = vadd.f32 %v1981_v55, %v1975_v3  ;;  %v5617_v3 = vpack.c.bf16 %v2263_v62, %v2262_v20 }
 0xc0f   :  { %v6873_v0 = vadd.f32 %v1981_v55, %v1974_v42  ;;  %v5233_v7 = vpop.f32.mrb[38].mxu1 }
 0xc10   :  { %v1963_v33 = vpop.f32.mrb[39].mxu1  ;;  %v1977_v13 = vadd.f32 %v5233_v7, %v6476_v37  ;;  %v1997_v36 = vsel %vm444_vm4, %v6875_v45, 0.0 }
 0xc11   :  { %v1976_v26 = vadd.f32 %v1963_v33, %v6478_v22  ;;  %v1994_v19 = vsel %vm444_vm4, %v6873_v0, 0.0 }
 0xc12   :  { %1995 = vadd.xlane.f32.xlu0 %v1994_v19  ;;  %v6883_v31 = vadd.f32 %v1981_v55, %v1977_v13 }
 0xc13   :  { %v6881_v16 = vadd.f32 %v1981_v55, %v1976_v26  ;;  %v2086_v55 = vld [vmem:[%s7658_s12] sm:$0xff] }
 0xc14   :  { %v2003_v37 = vsel %vm444_vm4, %v6883_v31, 0.0  ;;  %v5609_v8 = vpack.c.bf16 %v2087_v52, %v2086_v55 }
 0xc15   :  { %v2000_v4 = vsel %vm444_vm4, %v6881_v16, 0.0 }
 0xc16   :  { %1998 = vadd.xlane.f32.xlu0 %v1997_v36  ;;  %2001 = vadd.xlane.f32.xlu1 %v2000_v4 }
 0xc17   :  { %5610 = vmatprep.subr.bf16.mxu0 %v5609_v8 }
 0xc18   :  { %5612 = vmatpush3.bf16.msra.mxu0 %v5609_v8 }
 0xc19   :  { %5614 = vmatprep.subr.bf16.mxu0 %v5613_v59 }
 0xc1a   :  { %2004 = vadd.xlane.f32.xlu0 %v2003_v37 }
 0xc1c   :  { %5616 = vmatpush3.bf16.msra.mxu0 %v5613_v59 }
 0xc1d   :  { %5618 = vmatprep.subr.bf16.mxu0 %v5617_v3 }
 0xc9a   :  { %v1993_v22 = vpop.xlane.xlu1 %1992 }
 0xc9b   :  { %v2007_v5 = vmul.f32 0.03125, %v1993_v22  ;;  %v1990_v57 = vpop.xlane.xlu0 %1989 }
 0xc9c   :  { %v2006_v6 = vmul.f32 0.03125, %v1990_v57 }
 0xc9d   :  { %v6892_v34 = vsub.f32 %v6863_v1, %v2007_v5 }
 0xc9e   :  { %v6895_v35 = vsub.f32 %v6865_v15, %v2006_v6 }
 0xc9f   :  { %v1996_v53 = vpop.xlane.xlu0 %1995  ;;  %v2019_v44 = vmul.f32 %v6892_v34, %v6892_v34 }
 0xca0   :  { %v2008_v21 = vmul.f32 0.03125, %v1996_v53  ;;  %v2018_v61 = vmul.f32 %v6895_v35, %v6895_v35 }
 0xca1   :  { %v2027_v63 = vsel %vm444_vm4, %v2019_v44, 0.0 }
 0xca2   :  { %v6903_v10 = vsub.f32 %v6873_v0, %v2008_v21  ;;  %2028 = vadd.xlane.f32.xlu0 %v2027_v63  ;;  %v2024_v2 = vsel %vm444_vm4, %v2018_v61, 0.0  ;;  %v6945_v21 = vld [vmem:[#allocation7 + $0x8] sm:$0xff] }
 0xca3   :  { %v1999_v9 = vpop.xlane.xlu0 %1998  ;;  %2025 = vadd.xlane.f32.xlu1 %v2024_v2  ;;  %v2002_v48 = vpop.xlane.xlu1 %2001  ;;  %v2069_v61 = vrot.slane %v6945_v21, %v6378_v28 }
 0xca4   :  { %v2009_v23 = vmul.f32 0.03125, %v1999_v9  ;;  %v2010_v25 = vmul.f32 0.03125, %v2002_v48  ;;  %v2020_v30 = vmul.f32 %v6903_v10, %v6903_v10 }
 0xca6   :  { %v6909_v54 = vsub.f32 %v6875_v45, %v2009_v23  ;;  %v6912_v32 = vsub.f32 %v6881_v16, %v2010_v25  ;;  %v2030_v38 = vsel %vm444_vm4, %v2020_v30, 0.0  ;;  %v2079_v25 = vrot.slane %v6945_v21, %v6381_v29 }
 0xca7   :  { %v2005_v27 = vpop.xlane.xlu0 %2004  ;;  %2031 = vadd.xlane.f32.xlu1 %v2030_v38 }
 0xca8   :  { %v2011_v39 = vmul.f32 0.03125, %v2005_v27  ;;  %v2021_v41 = vmul.f32 %v6909_v54, %v6909_v54  ;;  %v2022_v60 = vmul.f32 %v6912_v32, %v6912_v32 }
 0xcaa   :  { %v6920_v47 = vsub.f32 %v6883_v31, %v2011_v39  ;;  %v2033_v49 = vsel %vm444_vm4, %v2021_v41, 0.0  ;;  %v2036_v50 = vsel %vm444_vm4, %v2022_v60, 0.0 }
 0xcab   :  { %2034 = vadd.xlane.f32.xlu0 %v2033_v49  ;;  %2037 = vadd.xlane.f32.xlu1 %v2036_v50 }
 0xcac   :  { %v2023_v51 = vmul.f32 %v6920_v47, %v6920_v47 }
 0xcae   :  { %v2039_v17 = vsel %vm444_vm4, %v2023_v51, 0.0 }
 0xcaf   :  { %2040 = vadd.xlane.f32.xlu0 %v2039_v17 }
 0xd2f   :  { %v2029_v42 = vpop.xlane.xlu0 %2028 }
 0xd30   :  { %v2043_v43 = vmul.f32 0.03125, %v2029_v42  ;;  %v2026_v7 = vpop.xlane.xlu1 %2025  ;;  %v2267_v42 = vld [vmem:[%s7660_s14 + $0x28] sm:$0xff] }
 0xd31   :  { %v2042_v33 = vmul.f32 0.03125, %v2026_v7  ;;  %v2268_v7 = vld [vmem:[%s7660_s14 + $0x30] sm:$0xff] }
 0xd32   :  { %v2049_v13 = vadd.f32 1e-05, %v2043_v43 }
 0xd33   :  { %v2048_v26 = vadd.f32 1e-05, %v2042_v33  ;;  %v2269_v33 = vld [vmem:[%s7660_s14 + $0x38] sm:$0xff] }
 0xd34   :  { %5947 = vrsqrt.f32 %v2049_v13  ;;  %v2032_v19 = vpop.xlane.xlu1 %2031  ;;  %v5629_v13 = vpack.c.bf16 %v2269_v33, %v2268_v7 }
 0xd35   :  { %5949 = vrsqrt.f32 %v2048_v26  ;;  %v2044_v36 = vmul.f32 0.03125, %v2032_v19  ;;  %v2270_v26 = vld [vmem:[%s7660_s14 + $0x40] sm:$0xff]  ;;  %v2271_v19 = vld [vmem:[%s7660_s14 + $0x48] sm:$0xff] }
 0xd37   :  { %v2050_v4 = vadd.f32 1e-05, %v2044_v36  ;;  %v5633_v36 = vpack.c.bf16 %v2271_v19, %v2270_v26 }
 0xd38   :  { %v2035_v37 = vpop.xlane.xlu0 %2034  ;;  %v2038_v22 = vpop.xlane.xlu1 %2037 }
 0xd39   :  { %5951 = vrsqrt.f32 %v2050_v4  ;;  %v2045_v5 = vmul.f32 0.03125, %v2035_v37  ;;  %v2046_v57 = vmul.f32 0.03125, %v2038_v22  ;;  %v2272_v4 = vld [vmem:[%s7660_s14 + $0x50] sm:$0xff]  ;;  %v2273_v37 = vld [vmem:[%s7660_s14 + $0x58] sm:$0xff] }
 0xd3a   :  { %v5637_v22 = vpack.c.bf16 %v2273_v37, %v2272_v4 }
 0xd3b   :  { %v2051_v6 = vadd.f32 1e-05, %v2045_v5  ;;  %v2052_v53 = vadd.f32 1e-05, %v2046_v57  ;;  %v2274_v5 = vld [vmem:[%s7660_s14 + $0x60] sm:$0xff]  ;;  %v2275_v57 = vld [vmem:[%s7660_s14 + $0x68] sm:$0xff] }
 0xd3c   :  { %v2041_v44 = vpop.xlane.xlu0 %2040 }
 0xd3d   :  { %5953 = vrsqrt.f32 %v2051_v6  ;;  %v2047_v63 = vmul.f32 0.03125, %v2041_v44  ;;  %v5641_v6 = vpack.c.bf16 %v2275_v57, %v2274_v5  ;;  %v2277_v44 = vld [vmem:[%s7660_s14 + $0x78] sm:$0xff] }
 0xd3e   :  { %v5948_v2 = vpop.eup %5947  ;;  %5955 = vrsqrt.f32 %v2052_v53  ;;  %v2276_v53 = vld [vmem:[%s7660_s14 + $0x70] sm:$0xff] }
 0xd3f   :  { %v5950_v9 = vpop.eup %5949  ;;  %v2061_v48 = vmul.f32 %v5948_v2, %v6892_v34  ;;  %v2053_v23 = vadd.f32 1e-05, %v2047_v63  ;;  %v4682_v63 = vld [vmem:[%s7659_s13] ss:$0 sm:$0xff] }
 0xd40   :  { %v2060_v30 = vmul.f32 %v5950_v9, %v6895_v35 }
 0xd41   :  { %v2071_v38 = vmul.f32 %v2069_v61, %v2061_v48  ;;  %5957 = vrsqrt.f32 %v2053_v23 }
 0xd42   :  { %v2070_v27 = vmul.f32 %v2069_v61, %v2060_v30 }
 0xd43   :  { %v5952_v39 = vpop.eup %5951  ;;  %v2081_v49 = vadd.f32 %v2079_v25, %v2071_v38 }
 0xd44   :  { %v2080_v41 = vadd.f32 %v2079_v25, %v2070_v27  ;;  %v2062_v60 = vmul.f32 %v5952_v39, %v6903_v10 }
 0xd46   :  { %5242 = vmatprep.mubr.msk.f32.mxu0 %vm444_vm4, %v2080_v41  ;;  %v2072_v50 = vmul.f32 %v2069_v61, %v2062_v60 }
 0xd47   :  { %v5954_v51 = vpop.eup %5953  ;;  %5243 = vmatmul.mubr.msk.f32.vlgmr.msra.gmra.mrb[30].mxu0 %vm444_vm4, %v2081_v49 }
 0xd48   :  { %v5956_v34 = vpop.eup %5955  ;;  %v2082_v17 = vadd.f32 %v2079_v25, %v2072_v50  ;;  %v2063_v55 = vmul.f32 %v5954_v51, %v6909_v54  ;;  %5620 = vmatpush3.bf16.msra.mxu0 %v5617_v3  ;;  %v2264_v54 = vld [vmem:[%s7660_s14 + $0x10] sm:$0xff] }
 0xd49   :  { %v2064_v35 = vmul.f32 %v5956_v34, %v6912_v32  ;;  %v2265_v32 = vld [vmem:[%s7660_s14 + $0x18] sm:$0xff] }
 0xd4a   :  { %5245 = vmatprep.mubr.msk.f32.mxu0 %vm444_vm4, %v2082_v17  ;;  %v2073_v52 = vmul.f32 %v2069_v61, %v2063_v55  ;;  %v5621_v3 = vpack.c.bf16 %v2265_v32, %v2264_v54 }
 0xd4b   :  { %v5958_v8 = vpop.eup %5957  ;;  %v2074_v56 = vmul.f32 %v2069_v61, %v2064_v35 }
 0xd4c   :  { %v2083_v10 = vadd.f32 %v2079_v25, %v2073_v52  ;;  %v2065_v18 = vmul.f32 %v5958_v8, %v6920_v47  ;;  %5622 = vmatprep.subr.bf16.mxu0 %v5621_v3  ;;  %v2266_v47 = vld [vmem:[%s7660_s14 + $0x20] sm:$0xff] }
 0xd4d   :  { %v2084_v59 = vadd.f32 %v2079_v25, %v2074_v56  ;;  %5624 = vmatpush3.bf16.msra.mxu0 %v5621_v3  ;;  %v5625_v43 = vpack.c.bf16 %v2267_v42, %v2266_v47 }
 0xd4e   :  { %5246 = vmatmul.mubr.msk.f32.gmra.mrb[32].mxu0 %vm444_vm4, %v2083_v10  ;;  %v2075_v20 = vmul.f32 %v2069_v61, %v2065_v18  ;;  %v5645_v61 = vpack.c.bf16 %v2277_v44, %v2276_v53 }
 0xd4f   :  { %5248 = vmatprep.mubr.msk.f32.mxu0 %vm444_vm4, %v2084_v59  ;;  %5626 = vmatprep.subr.bf16.mxu0 %v5625_v43 }
 0xd50   :  { %v2085_v62 = vadd.f32 %v2079_v25, %v2075_v20 }
 0xd51   :  { %5628 = vmatpush3.bf16.msra.mxu0 %v5625_v43 }
 0xd52   :  { %5249 = vmatmul.mubr.msk.f32.gmra.mrb[34].mxu0 %vm444_vm4, %v2085_v62  ;;  %5630 = vmatprep.subr.bf16.mxu0 %v5629_v13 }
 0xd55   :  { %5632 = vmatpush3.bf16.msra.mxu0 %v5629_v13 }
 0xd56   :  { %5634 = vmatprep.subr.bf16.mxu0 %v5633_v36 }
 0xd59   :  { %5636 = vmatpush3.bf16.msra.mxu0 %v5633_v36 }
 0xd5a   :  { %5638 = vmatprep.subr.bf16.mxu0 %v5637_v22 }
 0xd5d   :  { %5640 = vmatpush3.bf16.msra.mxu0 %v5637_v22 }
 0xd5e   :  { %5642 = vmatprep.subr.bf16.mxu0 %v5641_v6 }
 0xd61   :  { %5644 = vmatpush3.bf16.msra.mxu0 %v5641_v6 }
 0xd62   :  { %5646 = vmatprep.subr.bf16.mxu0 %v5645_v61 }
 0xd65   :  { %5648 = vmatpush3.bf16.msra.mxu0 %v5645_v61 }
 0xd66   :  { %5661 = vmatprep.subr.bf16.mxu0 %v6175_v58 }
 0xe1a   :  { %v5244_v2 = vpop.f32.mrb[30].mxu0 }
 0xe1b   :  { %v2185_v9 = vadd.f32 %v5244_v2, %v4682_v63  ;;  %v2179_v48 = vpop.f32.mrb[31].mxu0 }
 0xe1c   :  { %v2180_v23 = vadd.f32 %v4682_v63, %v2179_v48 }
 0xe1d   :  { %v2215_v25 = vmul.f32 %v2185_v9, %v2185_v9 }
 0xe1e   :  { %v2214_v30 = vmul.f32 %v2180_v23, %v2180_v23  ;;  %v2208_v44 = vmul.f32 0.5, %v2180_v23 }
 0xe1f   :  { %v2221_v38 = vmul.f32 %v2215_v25, %v2185_v9 }
 0xe20   :  { %v2220_v27 = vmul.f32 %v2214_v30, %v2180_v23 }
 0xe21   :  { %v2227_v39 = vmul.f32 0.044715, %v2221_v38  ;;  %v5247_v41 = vpop.f32.mrb[32].mxu0 }
 0xe22   :  { %v2226_v60 = vmul.f32 0.044715, %v2220_v27  ;;  %v2195_v49 = vadd.f32 %v5247_v41, %v4682_v63  ;;  %v2189_v50 = vpop.f32.mrb[33].mxu0 }
 0xe23   :  { %v2233_v51 = vadd.f32 %v2227_v39, %v2185_v9  ;;  %v2190_v34 = vadd.f32 %v4682_v63, %v2189_v50 }
 0xe24   :  { %v2232_v17 = vadd.f32 %v2226_v60, %v2180_v23  ;;  %v2217_v55 = vmul.f32 %v2195_v49, %v2195_v49  ;;  %v2211_v41 = vmul.f32 0.5, %v2195_v49 }
 0xe25   :  { %v2239_v35 = vmul.f32 0.7978846, %v2233_v51  ;;  %v2216_v52 = vmul.f32 %v2190_v34, %v2190_v34  ;;  %v5250_v8 = vpop.f32.mrb[34].mxu0  ;;  %v2210_v27 = vmul.f32 0.5, %v2190_v34 }
 0xe26   :  { %v2238_v56 = vmul.f32 0.7978846, %v2232_v17  ;;  %v2223_v10 = vmul.f32 %v2217_v55, %v2195_v49  ;;  %v2205_v18 = vadd.f32 %v5250_v8, %v4682_v63  ;;  %v2199_v59 = vpop.f32.mrb[35].mxu0 }
 0xe27   :  { %5959 = vtanh.f32 %v2239_v35  ;;  %v2222_v20 = vmul.f32 %v2216_v52, %v2190_v34  ;;  %v2200_v62 = vadd.f32 %v4682_v63, %v2199_v59  ;;  %v2209_v63 = vmul.f32 0.5, %v2185_v9 }
 0xe28   :  { %v2229_v54 = vmul.f32 0.044715, %v2223_v10  ;;  %v2219_v32 = vmul.f32 %v2205_v18, %v2205_v18  ;;  %5961 = vtanh.f32 %v2238_v56  ;;  %v2213_v9 = vmul.f32 0.5, %v2205_v18 }
 0xe29   :  { %v2228_v3 = vmul.f32 0.044715, %v2222_v20  ;;  %v2218_v47 = vmul.f32 %v2200_v62, %v2200_v62  ;;  %v2212_v23 = vmul.f32 0.5, %v2200_v62 }
 0xe2a   :  { %v2235_v42 = vadd.f32 %v2229_v54, %v2195_v49  ;;  %v2225_v43 = vmul.f32 %v2219_v32, %v2205_v18  ;;  %v2382_v49 = vrot.slane %v6945_v21, %v536_v46 }
 0xe2b   :  { %v2234_v7 = vadd.f32 %v2228_v3, %v2190_v34  ;;  %v2224_v33 = vmul.f32 %v2218_v47, %v2200_v62 }
 0xe2c   :  { %v2241_v13 = vmul.f32 0.7978846, %v2235_v42  ;;  %v2231_v26 = vmul.f32 0.044715, %v2225_v43 }
 0xe2d   :  { %v2240_v19 = vmul.f32 0.7978846, %v2234_v7  ;;  %v2230_v36 = vmul.f32 0.044715, %v2224_v33 }
 0xe2e   :  { %v2237_v4 = vadd.f32 %v2231_v26, %v2205_v18  ;;  %5963 = vtanh.f32 %v2241_v13 }
 0xe2f   :  { %v2236_v37 = vadd.f32 %v2230_v36, %v2200_v62  ;;  %5965 = vtanh.f32 %v2240_v19 }
 0xe30   :  { %v2243_v22 = vmul.f32 0.7978846, %v2237_v4 }
 0xe31   :  { %v5960_v5 = vpop.eup %5959  ;;  %v2242_v57 = vmul.f32 0.7978846, %v2236_v37 }
 0xe32   :  { %v5962_v6 = vpop.eup %5961  ;;  %v2251_v53 = vadd.f32 1.0, %v5960_v5  ;;  %5967 = vtanh.f32 %v2243_v22 }
 0xe33   :  { %v2250_v61 = vadd.f32 1.0, %v5962_v6  ;;  %5969 = vtanh.f32 %v2242_v57 }
 0xe34   :  { %v2257_v48 = vmul.f32 %v2251_v53, %v2209_v63 }
 0xe35   :  { %v2256_v2 = vmul.f32 %v2250_v61, %v2208_v44 }
 0xe37   :  { %5283 = vmatprep.mubr.f32.mxu0 %v2256_v2 }
 0xe38   :  { %v5964_v25 = vpop.eup %5963  ;;  %5284 = vmatmul.mubr.f32.vlgmr.msra.gmra.mrb[36].mxu0 %v2257_v48 }
 0xe39   :  { %v5966_v30 = vpop.eup %5965  ;;  %v2253_v38 = vadd.f32 1.0, %v5964_v25 }
 0xe3a   :  { %v2252_v39 = vadd.f32 1.0, %v5966_v30 }
 0xe3b   :  { %v2259_v17 = vmul.f32 %v2253_v38, %v2211_v41 }
 0xe3c   :  { %v5968_v60 = vpop.eup %5967  ;;  %v2258_v50 = vmul.f32 %v2252_v39, %v2210_v27 }
 0xe3d   :  { %v5970_v51 = vpop.eup %5969  ;;  %v2255_v55 = vadd.f32 1.0, %v5968_v60 }
 0xe3e   :  { %5286 = vmatprep.mubr.f32.mxu0 %v2258_v50  ;;  %v2254_v35 = vadd.f32 1.0, %v5970_v51 }
 0xe3f   :  { %5287 = vmatmul.mubr.f32.gmra.mrb[38].mxu0 %v2259_v17  ;;  %v2261_v8 = vmul.f32 %v2255_v55, %v2213_v9 }
 0xe40   :  { %v2260_v52 = vmul.f32 %v2254_v35, %v2212_v23 }
 0xe42   :  { %5289 = vmatprep.mubr.f32.mxu0 %v2260_v52 }
 0xe43   :  { %5290 = vmatmul.mubr.f32.gmra.mrb[40].mxu0 %v2261_v8 }
 0xe44   :  { %5330 = vmatprep.mubr.msk.f32.mxu0 %vm6177_vm5, %v6178_v24 }
 0xf0b   :  { %v5285_v34 = vpop.f32.mrb[36].mxu0 }
 0xf0c   :  { %v2374_v56 = vadd.f32 %v5285_v34, %v6863_v1  ;;  %v2344_v10 = vpop.f32.mrb[37].mxu0  ;;  %v4690_v34 = vld [vmem:[%s7655_s9 + $0x28] sm:$0xff] }
 0xf0d   :  { %v2373_v59 = vadd.f32 %v2344_v10, %v6865_v15  ;;  %v4691_v10 = vld [vmem:[%s7655_s9 + $0x30] sm:$0xff] }
 0xf0e   :  { %v7016_v20 = vadd.f32 %v2382_v49, %v2374_v56 }
 0xf0f   :  { %v7018_v18 = vadd.f32 %v2382_v49, %v2373_v59  ;;  %v4692_v59 = vld [vmem:[%s7655_s9 + $0x38] sm:$0xff] }
 0xf10   :  { %v2392_v62 = vsel %vm444_vm4, %v7016_v20, 0.0 }
 0xf11   :  { %2393 = vadd.xlane.f32.xlu0 %v2392_v62  ;;  %v2389_v54 = vsel %vm444_vm4, %v7018_v18, 0.0  ;;  %v5653_v62 = vpack.c.bf16 %v4692_v59, %v4691_v10 }
 0xf12   :  { %2390 = vadd.xlane.f32.xlu1 %v2389_v54  ;;  %v5288_v32 = vpop.f32.mrb[38].mxu0 }
 0xf13   :  { %v2376_v46 = vadd.f32 %v5288_v32, %v6875_v45  ;;  %v2354_v3 = vpop.f32.mrb[39].mxu0 }
 0xf14   :  { %v2375_v1 = vadd.f32 %v2354_v3, %v6873_v0 }
 0xf15   :  { %v7026_v47 = vadd.f32 %v2382_v49, %v2376_v46 }
 0xf16   :  { %v7028_v15 = vadd.f32 %v2382_v49, %v2375_v1  ;;  %v5291_v42 = vpop.f32.mrb[40].mxu0 }
 0xf17   :  { %v2378_v43 = vadd.f32 %v5291_v42, %v6883_v31  ;;  %v2364_v7 = vpop.f32.mrb[41].mxu0  ;;  %v2398_v33 = vsel %vm444_vm4, %v7026_v47, 0.0 }
 0xf18   :  { %v2377_v13 = vadd.f32 %v2364_v7, %v6881_v16  ;;  %2399 = vadd.xlane.f32.xlu0 %v2398_v33  ;;  %v2395_v45 = vsel %vm444_vm4, %v7028_v15, 0.0 }
 0xf19   :  { %v7036_v26 = vadd.f32 %v2382_v49, %v2378_v43  ;;  %2396 = vadd.xlane.f32.xlu1 %v2395_v45  ;;  %v2469_v45 = vsub.s32 6, %v6363_v11 }
 0xf1a   :  { %v7038_v0 = vadd.f32 %v2382_v49, %v2377_v13  ;;  %v4689_v49 = vld [vmem:[%s7655_s9 + $0x20] sm:$0xff] }
 0xf1b   :  { %v2404_v19 = vsel %vm444_vm4, %v7036_v26, 0.0  ;;  %v5649_v56 = vpack.c.bf16 %v4690_v34, %v4689_v49 }
 0xf1c   :  { %2405 = vadd.xlane.f32.xlu0 %v2404_v19  ;;  %v2401_v31 = vsel %vm444_vm4, %v7038_v0, 0.0 }
 0xf1d   :  { %2402 = vadd.xlane.f32.xlu1 %v2401_v31  ;;  %5650 = vmatprep.subr.bf16.mxu1 %v5649_v56 }
 0xf1e   :  { %5652 = vmatpush3.bf16.msra.mxu1 %v5649_v56 }
 0xf1f   :  { %5654 = vmatprep.subr.bf16.mxu1 %v5653_v62 }
 0xf22   :  { %5656 = vmatpush3.bf16.msra.mxu1 %v5653_v62 }
 0xf23   :  { %5657 = vmatprep.subr.bf16.mxu1 %v6175_v58 }
 0xf9e   :  { %v2394_v36 = vpop.xlane.xlu0 %2393 }
 0xf9f   :  { %v2408_v4 = vmul.f32 0.03125, %v2394_v36  ;;  %v2391_v16 = vpop.xlane.xlu1 %2390 }
 0xfa0   :  { %v2407_v37 = vmul.f32 0.03125, %v2391_v16 }
 0xfa1   :  { %v7045_v22 = vsub.f32 %v7016_v20, %v2408_v4 }
 0xfa2   :  { %v7048_v5 = vsub.f32 %v7018_v18, %v2407_v37  ;;  %v2479_v37 = vsub.s32 7, %v6363_v11 }
 0xfa3   :  { %v2420_v57 = vmul.f32 %v7045_v22, %v7045_v22 }
 0xfa4   :  { %v2419_v6 = vmul.f32 %v7048_v5, %v7048_v5 }
 0xfa5   :  { %v2400_v53 = vpop.xlane.xlu0 %2399  ;;  %v2428_v44 = vsel %vm444_vm4, %v2420_v57, 0.0 }
 0xfa6   :  { %v2410_v61 = vmul.f32 0.03125, %v2400_v53  ;;  %v2397_v63 = vpop.xlane.xlu1 %2396  ;;  %2429 = vadd.xlane.f32.xlu0 %v2428_v44  ;;  %v2425_v2 = vsel %vm444_vm4, %v2419_v6, 0.0  ;;  %v2470_v6 = vrot.slane %v6945_v21, %v2469_v45 }
 0xfa7   :  { %v2409_v48 = vmul.f32 0.03125, %v2397_v63  ;;  %2426 = vadd.xlane.f32.xlu1 %v2425_v2 }
 0xfa8   :  { %v7057_v25 = vsub.f32 %v7026_v47, %v2410_v61 }
 0xfa9   :  { %v7060_v30 = vsub.f32 %v7028_v15, %v2409_v48  ;;  %v2406_v38 = vpop.xlane.xlu0 %2405  ;;  %v2480_v48 = vrot.slane %v6945_v21, %v2479_v37 }
 0xfaa   :  { %v2412_v27 = vmul.f32 0.03125, %v2406_v38  ;;  %v2403_v39 = vpop.xlane.xlu1 %2402  ;;  %v2422_v41 = vmul.f32 %v7057_v25, %v7057_v25 }
 0xfab   :  { %v2411_v60 = vmul.f32 0.03125, %v2403_v39  ;;  %v2421_v50 = vmul.f32 %v7060_v30, %v7060_v30 }
 0xfac   :  { %v7067_v51 = vsub.f32 %v7036_v26, %v2412_v27  ;;  %v2434_v17 = vsel %vm444_vm4, %v2422_v41, 0.0 }
 0xfad   :  { %v7071_v55 = vsub.f32 %v7038_v0, %v2411_v60  ;;  %2435 = vadd.xlane.f32.xlu0 %v2434_v17  ;;  %v2431_v23 = vsel %vm444_vm4, %v2421_v50, 0.0 }
 0xfae   :  { %2432 = vadd.xlane.f32.xlu1 %v2431_v23  ;;  %v2424_v35 = vmul.f32 %v7067_v51, %v7067_v51 }
 0xfaf   :  { %v2423_v9 = vmul.f32 %v7071_v55, %v7071_v55 }
 0xfb0   :  { %v2440_v52 = vsel %vm444_vm4, %v2424_v35, 0.0 }
 0xfb1   :  { %2441 = vadd.xlane.f32.xlu0 %v2440_v52  ;;  %v2437_v8 = vsel %vm444_vm4, %v2423_v9, 0.0 }
 0xfb2   :  { %2438 = vadd.xlane.f32.xlu1 %v2437_v8 }
0x1033   :  { %v2430_v54 = vpop.xlane.xlu0 %2429 }
0x1034   :  { %v2444_v32 = vmul.f32 0.03125, %v2430_v54  ;;  %v2427_v46 = vpop.xlane.xlu1 %2426 }
0x1035   :  { %v2443_v3 = vmul.f32 0.03125, %v2427_v46 }
0x1036   :  { %v2450_v1 = vadd.f32 1e-05, %v2444_v32 }
0x1037   :  { %v2449_v42 = vadd.f32 1e-05, %v2443_v3 }
0x1038   :  { %5971 = vrsqrt.f32 %v2450_v1 }
0x1039   :  { %5973 = vrsqrt.f32 %v2449_v42 }
0x103a   :  { %v2436_v43 = vpop.xlane.xlu0 %2435 }
0x103b   :  { %v2446_v7 = vmul.f32 0.03125, %v2436_v43  ;;  %v2433_v33 = vpop.xlane.xlu1 %2432 }
0x103c   :  { %v2445_v13 = vmul.f32 0.03125, %v2433_v33 }
0x103d   :  { %v2452_v19 = vadd.f32 1e-05, %v2446_v7 }
0x103e   :  { %v2451_v31 = vadd.f32 1e-05, %v2445_v13  ;;  %v2442_v36 = vpop.xlane.xlu0 %2441 }
0x103f   :  { %5975 = vrsqrt.f32 %v2452_v19  ;;  %v2448_v4 = vmul.f32 0.03125, %v2442_v36  ;;  %v2439_v16 = vpop.xlane.xlu1 %2438 }
0x1040   :  { %5977 = vrsqrt.f32 %v2451_v31  ;;  %v2447_v57 = vmul.f32 0.03125, %v2439_v16 }
0x1041   :  { %v2454_v53 = vadd.f32 1e-05, %v2448_v4 }
0x1042   :  { %v5972_v44 = vpop.eup %5971  ;;  %v2453_v61 = vadd.f32 1e-05, %v2447_v57 }
0x1043   :  { %v5974_v63 = vpop.eup %5973  ;;  %v2462_v2 = vmul.f32 %v5972_v44, %v7045_v22  ;;  %5979 = vrsqrt.f32 %v2454_v53 }
0x1044   :  { %5981 = vrsqrt.f32 %v2453_v61  ;;  %v2461_v38 = vmul.f32 %v5974_v63, %v7048_v5 }
0x1045   :  { %v2472_v27 = vmul.f32 %v2470_v6, %v2462_v2 }
0x1046   :  { %v2471_v39 = vmul.f32 %v2470_v6, %v2461_v38 }
0x1047   :  { %v2482_v50 = vadd.f32 %v2480_v48, %v2472_v27  ;;  %v7183_v27 = vld [vmem:[%s7685_s30] sm:$0xff] }
0x1048   :  { %v2481_v41 = vadd.f32 %v2480_v48, %v2471_v39 }
0x1049   :  { %v5976_v60 = vpop.eup %5975 }
0x104a   :  { %v5978_v17 = vpop.eup %5977  ;;  %5300 = vmatprep.mubr.msk.f32.mxu1 %vm444_vm4, %v2481_v41  ;;  %v2464_v23 = vmul.f32 %v5976_v60, %v7057_v25 }
0x104b   :  { %5301 = vmatmul.mubr.msk.f32.vlgmr.msra.gmra.mrb[40].mxu1 %vm444_vm4, %v2482_v50  ;;  %v2463_v22 = vmul.f32 %v5978_v17, %v7060_v30  ;;  %v4693_v30 = vld [vmem:[%s7656_s10 + $0x1] ss:$0 sm:$0xff] }
0x104c   :  { %v2474_v35 = vmul.f32 %v2470_v6, %v2464_v23  ;;  %v7190_v23 = vld [vmem:[%s7685_s30 + $0x8] sm:$0xff] }
0x104d   :  { %v5980_v9 = vpop.eup %5979  ;;  %v2473_v21 = vmul.f32 %v2470_v6, %v2463_v22 }
0x104e   :  { %v5982_v52 = vpop.eup %5981  ;;  %v2466_v5 = vmul.f32 %v5980_v9, %v7067_v51  ;;  %v2484_v34 = vadd.f32 %v2480_v48, %v2474_v35 }
0x104f   :  { %v2483_v8 = vadd.f32 %v2480_v48, %v2473_v21  ;;  %v2465_v49 = vmul.f32 %v5982_v52, %v7071_v55 }
0x1050   :  { %v2476_v56 = vmul.f32 %v2470_v6, %v2466_v5 }
0x1051   :  { %5303 = vmatprep.mubr.msk.f32.mxu1 %vm444_vm4, %v2483_v8  ;;  %v2475_v10 = vmul.f32 %v2470_v6, %v2465_v49 }
0x1052   :  { %5304 = vmatmul.mubr.msk.f32.gmra.mrb[42].mxu1 %vm444_vm4, %v2484_v34  ;;  %v2486_v59 = vadd.f32 %v2480_v48, %v2476_v56  ;;  %v7197_v34 = vld [vmem:[%s7685_s30 + $0x18] sm:$0xff] }
0x1053   :  { %v2485_v25 = vadd.f32 %v2480_v48, %v2475_v10 }
0x1055   :  { %5306 = vmatprep.mubr.msk.f32.mxu1 %vm444_vm4, %v2485_v25 }
0x1056   :  { %5307 = vmatmul.mubr.msk.f32.gmra.mrb[44].mxu1 %vm444_vm4, %v2486_v59 }
0x1057   :  { %5315 = vmatprep.mubr.msk.f32.mxu1 %vm6177_vm5, %v6178_v24 }
0x111e   :  { %v5302_v51 = vpop.f32.mrb[40].mxu1 }
0x111f   :  { %v7118_v55 = vadd.f32 %v5302_v51, %v4693_v30  ;;  %v2581_v62 = vpop.f32.mrb[41].mxu1  ;;  %v7204_v51 = vld [vmem:[%s7685_s30 + $0x10] sm:$0xff] }
0x1120   :  { %v7120_v54 = vadd.f32 %v4693_v30, %v2581_v62 }
0x1122   :  { %v7124_v32 = vpack.i.bf16 %v7118_v55, %v7120_v54 }
0x1124   :  { %5836 = vrot.lane.b32.xlu1 %v7124_v32, %s6176_s4 }
0x1125   :  { %v5305_v46 = vpop.f32.mrb[42].mxu1 }
0x1126   :  { %v2591_v3 = vpop.f32.mrb[43].mxu1  ;;  %v7134_v33 = vadd.f32 %v5305_v46, %v4693_v30  ;;  %v7210_v46 = vld [vmem:[%s7685_s30 + $0x20] sm:$0xff] }
0x1127   :  { %v7128_v1 = vadd.f32 %v4693_v30, %v2591_v3 }
0x1129   :  { %2622 = vrot.lane.b32.xlu1 %v7128_v1, %s6176_s4  ;;  %v5308_v42 = vpop.f32.mrb[44].mxu1 }
0x112a   :  { %v7132_v43 = vadd.f32 %v5308_v42, %v4693_v30  ;;  %v2601_v7 = vpop.f32.mrb[45].mxu1 }
0x112b   :  { %v7136_v13 = vadd.f32 %v4693_v30, %v2601_v7 }
0x112d   :  { %2723 = vrot.lane.b32.xlu1 %v7132_v43, %s6176_s4  ;;  %v7142_v19 = vpack.i.bf16 %v7136_v13, %v7134_v33 }
0x112f   :  { %5841 = vrot.lane.b32.xlu0 %v7142_v19, %s6176_s4 }
0x1196   :  { %v5837_v31 = vpop.permute.xlu1 %5836 }
0x1197   :  { %v5839_v36 = vunpack.i.h.bf16 %v5837_v31  ;;  %v5838_v4 = vunpack.i.l.bf16 %v5837_v31 }
0x1199   :  { %v5658_v16 = vpack.c.bf16 %v5839_v36, %v5838_v4 }
0x119b   :  { %5660 = vmatpush3.bf16.xpose.msk.msra.mxu1 %vm6589_vm7, %v5658_v16  ;;  %v2623_v6 = vpop.permute.xlu1 %2622  ;;  %v7232_v16 = vld [vmem:[%s7685_s30 + $0x28] sm:$0xff] }
0x119c   :  { %5313 = vmatprep.subr.mxu1 %v6178_v24 }
0x119f   :  { %v2724_v63 = vpop.permute.xlu1 %2723 }
0x11a1   :  { %v5842_v57 = vpop.permute.xlu0 %5841 }
0x11a2   :  { %v5844_v53 = vunpack.i.h.bf16 %v5842_v57  ;;  %v5843_v44 = vunpack.i.l.bf16 %v5842_v57 }
0x11a3   :  { %5314 = vmatpush3.xpose.msk.msra.mxu1 %vm795_vm6, %v2623_v6 }
0x11a4   :  { %v5662_v61 = vpack.c.bf16 %v5844_v53, %v5843_v44  ;;  %5665 = vmatprep.subr.bf16.mxu1 %v6175_v58 }
0x11a6   :  { %5316 = vmatmul.mubr.msk.f32.vlgmr.msra.gmra.mrb[46].mxu1 %vm795_vm6, %v7120_v54  ;;  %5664 = vmatpush3.bf16.xpose.msk.msra.mxu0 %vm6589_vm7, %v5662_v61 }
0x11a7   :  { %5318 = vmatprep.mubr.msk.f32.mxu1 %vm6177_vm5, %v6178_v24  ;;  %5328 = vmatprep.subr.mxu0 %v6178_v24 }
0x11aa   :  { %5319 = vmatmul.mubr.msk.f32.gmra.mrb[48].mxu1 %vm795_vm6, %v7118_v55 }
0x11ab   :  { %5321 = vmatprep.mubr.msk.f32.mxu1 %vm6177_vm5, %v6178_v24 }
0x11ae   :  { %5322 = vmatmul.mubr.msk.f32.gmra.mrb[50].mxu1 %vm795_vm6, %v7128_v1  ;;  %5329 = vmatpush3.xpose.msk.msra.mxu0 %vm795_vm6, %v2724_v63 }
0x11af   :  { %5668 = vmatprep.subr.bf16.mxu0 %v6175_v58  ;;  %5345 = vmatprep.mubr.msk.f32.mxu1 %vm6177_vm5, %v6178_v24 }
0x11b1   :  { %5331 = vmatmul.mubr.msk.f32.vlgmr.msra.gmra.mrb[42].mxu0 %vm795_vm6, %v7134_v33 }
0x11b2   :  { %5333 = vmatprep.mubr.msk.f32.mxu0 %vm6177_vm5, %v6178_v24 }
0x11b5   :  { %5334 = vmatmul.mubr.msk.f32.gmra.mrb[44].mxu0 %vm795_vm6, %v7136_v13 }
0x11b6   :  { %5336 = vmatprep.mubr.msk.f32.mxu0 %vm6177_vm5, %v6178_v24 }
0x11b9   :  { %5337 = vmatmul.mubr.msk.f32.gmra.mrb[46].mxu0 %vm795_vm6, %v7132_v43 }
0x11ba   :  { %5360 = vmatprep.mubr.msk.f32.mxu0 %vm6177_vm5, %v6178_v24 }
0x1279   :  { %v2702_v2 = vpop.f32.mrb[46].mxu1 }
0x127a   :  { %v2817_v48 = vmul.f32 0.25, %v2702_v2  ;;  %v5317_v38 = vpop.f32.mrb[47].mxu1 }
0x127c   :  { %v2823_v39 = vadd.f32 %v7183_v27, %v2817_v48 }
0x127d   :  { %v2707_v41 = vpop.f32.mrb[48].mxu1 }
0x127e   :  { %v2818_v60 = vmul.f32 0.25, %v2707_v41  ;;  %v5320_v50 = vpop.f32.mrb[49].mxu1  ;;  %v2829_v17 = vsel %vm1001_vm8, %v2823_v39, -inf }
0x127f   :  { %2830 = vmax.xlane.f32.xlu0 %v2829_v17 }
0x1280   :  { %v2824_v22 = vadd.f32 %v7190_v23, %v2818_v60 }
0x1281   :  { %v2712_v35 = vpop.f32.mrb[50].mxu1 }
0x1282   :  { %v5323_v9 = vpop.f32.mrb[51].mxu1  ;;  %v2832_v21 = vsel %vm1001_vm8, %v2824_v22, -inf  ;;  %v2819_v5 = vmul.f32 0.25, %v2712_v35 }
0x1283   :  { %2833 = vmax.xlane.f32.xlu1 %v2832_v21 }
0x1284   :  { %v2803_v52 = vpop.f32.mrb[42].mxu0  ;;  %v2825_v62 = vadd.f32 %v7204_v51, %v2819_v5 }
0x1285   :  { %v2820_v8 = vmul.f32 0.25, %v2803_v52  ;;  %v5332_v49 = vpop.f32.mrb[43].mxu0 }
0x1286   :  { %v2835_v36 = vsel %vm1001_vm8, %v2825_v62, -inf }
0x1287   :  { %v2826_v56 = vadd.f32 %v7197_v34, %v2820_v8 }
0x1288   :  { %v2808_v10 = vpop.f32.mrb[44].mxu0 }
0x1289   :  { %v2821_v25 = vmul.f32 0.25, %v2808_v10  ;;  %v5335_v59 = vpop.f32.mrb[45].mxu0  ;;  %v2838_v30 = vsel %vm1001_vm8, %v2826_v56, -inf }
0x128a   :  { %2839 = vmax.xlane.f32.xlu0 %v2838_v30 }
0x128b   :  { %v2827_v3 = vadd.f32 %v7210_v46, %v2821_v25 }
0x128c   :  { %v2813_v42 = vpop.f32.mrb[46].mxu0 }
0x128d   :  { %v5338_v7 = vpop.f32.mrb[47].mxu0  ;;  %v2841_v31 = vsel %vm1001_vm8, %v2827_v3, -inf  ;;  %v2822_v4 = vmul.f32 0.25, %v2813_v42 }
0x128e   :  { %2842 = vmax.xlane.f32.xlu1 %v2841_v31  ;;  %2836 = vmax.xlane.f32.xlu0 %v2835_v36 }
0x128f   :  { %v7235_v57 = vadd.f32 %v7232_v16, %v2822_v4 }
0x1291   :  { %v2844_v6 = vsel %vm1001_vm8, %v7235_v57, -inf }
0x129f   :  { %5846 = vrot.lane.b32.xlu1 %v7124_v32, %s6179_s23 }
0x12a3   :  { %2899 = vrot.lane.b32.xlu1 %v7128_v1, %s6179_s23 }
0x12a4   :  { %5851 = vrot.lane.b32.xlu0 %v7142_v19, %s6179_s23 }
0x12a7   :  { %2997 = vrot.lane.b32.xlu1 %v7132_v43, %s6179_s23 }
0x12a8   :  { %5856 = vrot.lane.b32.xlu0 %v7124_v32, %s6180_s25 }
0x12ab   :  { %5861 = vrot.lane.b32.xlu1 %v7142_v19, %s6180_s25 }
0x12af   :  { %3091 = vrot.lane.b32.xlu1 %v7120_v54, %s6181_s27 }
0x12c7   :  { %2845 = vmax.xlane.f32.xlu0 %v2844_v6 }
0x12dd   :  { %3101 = vrot.lane.b32.xlu0 %v7128_v1, %s6180_s25 }
0x130c   :  { %v2831_v53 = vpop.xlane.xlu0 %2830 }
0x130d   :  { %v2847_v44 = vsub.f32 %v2823_v39, %v2831_v53 }
0x130f   :  { %v2853_v61 = vmul.f32 1.442695, %v2847_v44 }
0x1310   :  { %v2834_v54 = vpop.xlane.xlu1 %2833 }
0x1311   :  { %5983 = vpow2.f32 %v2853_v61  ;;  %v2848_v63 = vsub.f32 %v2824_v22, %v2834_v54 }
0x1313   :  { %v2855_v2 = vmul.f32 1.442695, %v2848_v63 }
0x1315   :  { %5985 = vpow2.f32 %v2855_v2 }
0x1317   :  { %v2840_v48 = vpop.xlane.xlu0 %2839 }
0x1318   :  { %v2850_v38 = vsub.f32 %v2826_v56, %v2840_v48 }
0x131a   :  { %v2859_v41 = vmul.f32 1.442695, %v2850_v38 }
0x131b   :  { %v7241_v60 = vpop.eup %5983  ;;  %v2843_v50 = vpop.xlane.xlu1 %2842 }
0x131c   :  { %v2837_v17 = vpop.xlane.xlu0 %2836  ;;  %5987 = vpow2.f32 %v2859_v41  ;;  %v2851_v35 = vsub.f32 %v2827_v3, %v2843_v50  ;;  %v2865_v21 = vsel %vm1001_vm8, %v7241_v60, 0.0 }
0x131d   :  { %v2849_v9 = vsub.f32 %v2825_v62, %v2837_v17  ;;  %2866 = vadd.xlane.f32.xlu1 %v2865_v21 }
0x131e   :  { %v2861_v39 = vmul.f32 1.442695, %v2851_v35 }
0x131f   :  { %v2857_v52 = vmul.f32 1.442695, %v2849_v9  ;;  %v7245_v5 = vpop.eup %5985  ;;  %v5847_v22 = vpop.permute.xlu1 %5846 }
0x1320   :  { %v5852_v8 = vpop.permute.xlu0 %5851  ;;  %5989 = vpow2.f32 %v2861_v39  ;;  %v5849_v49 = vunpack.i.h.bf16 %v5847_v22  ;;  %v5848_v56 = vunpack.i.l.bf16 %v5847_v22  ;;  %v2868_v59 = vsel %vm1001_vm8, %v7245_v5, 0.0 }
0x1321   :  { %v5854_v10 = vunpack.i.h.bf16 %v5852_v8  ;;  %5991 = vpow2.f32 %v2857_v52  ;;  %v5853_v25 = vunpack.i.l.bf16 %v5852_v8  ;;  %2869 = vadd.xlane.f32.xlu0 %v2868_v59 }
0x1322   :  { %v5666_v30 = vpack.c.bf16 %v5849_v49, %v5848_v56 }
0x1323   :  { %v5669_v62 = vpack.c.bf16 %v5854_v10, %v5853_v25  ;;  %v2900_v3 = vpop.permute.xlu1 %2899 }
0x1324   :  { %5667 = vmatpush3.bf16.msra.mxu1 %v5666_v30  ;;  %v5857_v44 = vpop.permute.xlu0 %5856 }
0x1325   :  { %5670 = vmatpush3.bf16.msra.mxu0 %v5669_v62  ;;  %5343 = vmatprep.subr.mxu1 %v6178_v24  ;;  %v5859_v17 = vunpack.i.h.bf16 %v5857_v44  ;;  %v5858_v35 = vunpack.i.l.bf16 %v5857_v44 }
0x1326   :  { %v5988_v42 = vpop.eup %5987  ;;  %5358 = vmatprep.subr.mxu0 %v6178_v24 }
0x1327   :  { %v2998_v7 = vpop.permute.xlu1 %2997  ;;  %v2874_v31 = vsel %vm1001_vm8, %v5988_v42, 0.0  ;;  %v5672_v52 = vpack.c.bf16 %v5859_v17, %v5858_v35 }
0x1328   :  { %2875 = vadd.xlane.f32.xlu1 %v2874_v31  ;;  %5344 = vmatpush3.msra.mxu1 %v2900_v3 }
0x1329   :  { %5359 = vmatpush3.msra.mxu0 %v2998_v7  ;;  %5671 = vmatprep.subr.bf16.mxu1 %v6175_v58 }
0x132a   :  { %v5990_v36 = vpop.eup %5989  ;;  %5675 = vmatprep.subr.bf16.mxu0 %v6175_v58 }
0x132b   :  { %v5992_v4 = vpop.eup %5991  ;;  %v2877_v6 = vsel %vm1001_vm8, %v5990_v36, 0.0  ;;  %v5862_v48 = vpop.permute.xlu1 %5861 }
0x132c   :  { %2878 = vadd.xlane.f32.xlu1 %v2877_v6  ;;  %v2871_v53 = vsel %vm1001_vm8, %v5992_v4, 0.0  ;;  %v5863_v49 = vunpack.i.l.bf16 %v5862_v48 }
0x132d   :  { %2872 = vadd.xlane.f32.xlu0 %v2871_v53 }
0x132f   :  { %v3092_v38 = vpop.permute.xlu1 %3091 }
0x133d   :  { %3093 = vrot.lane.b32.xlu1 %v7118_v55, %s6181_s27 }
0x1341   :  { %3095 = vrot.lane.b32.xlu1 %v7128_v1, %s6181_s27 }
0x1343   :  { %3205 = vrot.lane.b32.xlu0 %v7132_v43, %s6180_s25 }
0x1345   :  { %3199 = vrot.lane.b32.xlu1 %v7132_v43, %s6181_s27 }
0x1354   :  { %v2846_v61 = vpop.xlane.xlu0 %2845 }
0x1355   :  { %v2852_v54 = vsub.f32 %v7235_v57, %v2846_v61 }
0x1357   :  { %v2863_v63 = vmul.f32 1.442695, %v2852_v54 }
0x1358   :  { %v3102_v50 = vpop.permute.xlu0 %3101 }
0x1359   :  { %5993 = vpow2.f32 %v2863_v63 }
0x1363   :  { %v7265_v2 = vpop.eup %5993 }
0x1364   :  { %v2880_v55 = vsel %vm1001_vm8, %v7265_v2, 0.0 }
0x1365   :  { %2881 = vadd.xlane.f32.xlu0 %v2880_v55 }
0x137b   :  { %3195 = vrot.lane.b32.xlu0 %v7134_v33, %s6181_s27 }
0x137f   :  { %3197 = vrot.lane.b32.xlu0 %v7136_v13, %s6181_s27 }
0x13aa   :  { %v2867_v41 = vpop.xlane.xlu1 %2866 }
0x13ab   :  { %5995 = vrcp.f32 %v2867_v41 }
0x13ae   :  { %v2870_v57 = vpop.xlane.xlu0 %2869 }
0x13af   :  { %5997 = vrcp.f32 %v2870_v57 }
0x13b5   :  { %v5996_v9 = vpop.eup %5995  ;;  %v2876_v21 = vpop.xlane.xlu1 %2875 }
0x13b6   :  { %v2889_v39 = vmul.f32 %v5996_v9, %v7241_v60  ;;  %5999 = vrcp.f32 %v2876_v21  ;;  %v5864_v60 = vunpack.i.h.bf16 %v5862_v48 }
0x13b8   :  { %5346 = vmatmul.mubr.msk.f32.vlgmr.msra.gmra.mrb[52].mxu1 %vm1001_vm8, %v2889_v39  ;;  %v5676_v25 = vpack.c.bf16 %v5864_v60, %v5863_v49 }
0x13b9   :  { %5674 = vmatpush3.bf16.xpose.msk.msra.mxu1 %vm6589_vm7, %v5672_v52  ;;  %v2879_v33 = vpop.xlane.xlu1 %2878  ;;  %5348 = vmatprep.mubr.msk.f32.mxu1 %vm6177_vm5, %v6178_v24  ;;  %v5998_v13 = vpop.eup %5997 }
0x13ba   :  { %6001 = vrcp.f32 %v2879_v33  ;;  %v2873_v22 = vpop.xlane.xlu0 %2872  ;;  %5373 = vmatprep.subr.mxu1 %v6178_v24  ;;  %v2890_v8 = vmul.f32 %v5998_v13, %v7245_v5 }
0x13bb   :  { %6003 = vrcp.f32 %v2873_v22 }
0x13bc   :  { %5349 = vmatmul.mubr.msk.f32.gmra.mrb[54].mxu1 %vm1001_vm8, %v2890_v8 }
0x13bd   :  { %5351 = vmatprep.mubr.msk.f32.mxu1 %vm6177_vm5, %v6178_v24  ;;  %v3094_v3 = vpop.permute.xlu1 %3093 }
0x13be   :  { %v3206_v40 = vpop.permute.xlu0 %3205 }
0x13c0   :  { %v6000_v56 = vpop.eup %5999 }
0x13c1   :  { %v2892_v10 = vmul.f32 %v6000_v56, %v5988_v42  ;;  %5374 = vmatpush3.xpose.msk.msra.mxu1 %vm795_vm6, %v3102_v50  ;;  %v3096_v42 = vpop.permute.xlu1 %3095 }
0x13c2   :  { %5679 = vmatprep.subr.bf16.mxu1 %v6175_v58 }
0x13c3   :  { %5361 = vmatmul.mubr.msk.f32.vlgmr.msra.gmra.mrb[48].mxu0 %vm1001_vm8, %v2892_v10 }
0x13c4   :  { %v6002_v59 = vpop.eup %6001  ;;  %5678 = vmatpush3.bf16.xpose.msk.msra.mxu0 %vm6589_vm7, %v5676_v25  ;;  %5363 = vmatprep.mubr.msk.f32.mxu0 %vm6177_vm5, %v6178_v24 }
0x13c5   :  { %v6004_v5 = vpop.eup %6003  ;;  %v2893_v30 = vmul.f32 %v6002_v59, %v5990_v36  ;;  %5388 = vmatprep.subr.mxu0 %v6178_v24  ;;  %v3200_v6 = vpop.permute.xlu1 %3199 }
0x13c6   :  { %v2891_v62 = vmul.f32 %v6004_v5, %v5992_v4 }
0x13c7   :  { %5364 = vmatmul.mubr.msk.f32.gmra.mrb[50].mxu0 %vm1001_vm8, %v2893_v30 }
0x13c8   :  { %5352 = vmatmul.mubr.msk.f32.gmra.mrb[56].mxu1 %vm1001_vm8, %v2891_v62  ;;  %5366 = vmatprep.mubr.msk.f32.mxu0 %vm6177_vm5, %v6178_v24 }
0x13c9   :  { %5375 = vmatprep.mubr.msk.f32.mxu1 %vm6177_vm5, %v6178_v24 }
0x13cc   :  { %5376 = vmatmul.mubr.msk.f32.vlgmr.msra.gmra.mrb[58].mxu1 %vm795_vm6, %v3092_v38  ;;  %5389 = vmatpush3.xpose.msk.msra.mxu0 %vm795_vm6, %v3206_v40 }
0x13cd   :  { %5378 = vmatprep.mubr.msk.f32.mxu1 %vm6177_vm5, %v6178_v24  ;;  %5682 = vmatprep.subr.bf16.mxu0 %v6175_v58 }
0x13d0   :  { %5379 = vmatmul.mubr.msk.f32.gmra.mrb[60].mxu1 %vm795_vm6, %v3094_v3 }
0x13d1   :  { %5381 = vmatprep.mubr.msk.f32.mxu1 %vm6177_vm5, %v6178_v24 }
0x13d4   :  { %5382 = vmatmul.mubr.msk.f32.gmra.mrb[62].mxu1 %vm795_vm6, %v3096_v42 }
0x13d5   :  { %5405 = vmatprep.mubr.msk.f32.mxu1 %vm6177_vm5, %v6178_v24 }
0x13f2   :  { %v2882_v7 = vpop.xlane.xlu0 %2881 }
0x13f3   :  { %6005 = vrcp.f32 %v2882_v7 }
0x13f6   :  { %v3196_v4 = vpop.permute.xlu0 %3195 }
0x13fa   :  { %v3198_v58 = vpop.permute.xlu0 %3197 }
0x13fd   :  { %v6006_v31 = vpop.eup %6005 }
0x13fe   :  { %v2894_v36 = vmul.f32 %v6006_v31, %v7265_v2 }
0x1400   :  { %5367 = vmatmul.mubr.msk.f32.gmra.mrb[52].mxu0 %vm1001_vm8, %v2894_v36 }
0x1401   :  { %5390 = vmatprep.mubr.msk.f32.mxu0 %vm6177_vm5, %v6178_v24 }
0x1404   :  { %5391 = vmatmul.mubr.msk.f32.vlgmr.msra.gmra.mrb[54].mxu0 %vm795_vm6, %v3196_v4 }
0x1405   :  { %5393 = vmatprep.mubr.msk.f32.mxu0 %vm6177_vm5, %v6178_v24 }
0x1408   :  { %5394 = vmatmul.mubr.msk.f32.gmra.mrb[56].mxu0 %vm795_vm6, %v3198_v58 }
0x1409   :  { %5396 = vmatprep.mubr.msk.f32.mxu0 %vm6177_vm5, %v6178_v24 }
0x140c   :  { %5397 = vmatmul.mubr.msk.f32.gmra.mrb[58].mxu0 %vm795_vm6, %v3200_v6 }
0x140d   :  { %5420 = vmatprep.mubr.msk.f32.mxu0 %vm6177_vm5, %v6178_v24 }
0x148b   :  { %v7322_v53 = vpop.f32.mrb[52].mxu1 }
0x148c   :  { %v5347_v44 = vpop.f32.mrb[53].mxu1 }
0x148f   :  { %v7324_v61 = vpop.f32.mrb[54].mxu1 }
0x1490   :  { %v5350_v54 = vpop.f32.mrb[55].mxu1 }
0x1496   :  { %v7326_v63 = vpop.f32.mrb[48].mxu0 }
0x1497   :  { %v5362_v2 = vpop.f32.mrb[49].mxu0 }
0x149a   :  { %v7328_v55 = vpop.f32.mrb[50].mxu0 }
0x149b   :  { %v7330_v48 = vpop.f32.mrb[56].mxu1  ;;  %v5365_v38 = vpop.f32.mrb[51].mxu0 }
0x149c   :  { %v5353_v41 = vpop.f32.mrb[57].mxu1 }
0x149f   :  { %v3181_v50 = vpop.f32.mrb[58].mxu1 }
0x14a0   :  { %v3299_v57 = vmul.f32 0.25, %v3181_v50  ;;  %v5377_v17 = vpop.f32.mrb[59].mxu1 }
0x14a2   :  { %v3305_v35 = vadd.f32 %v7183_v27, %v3299_v57 }
0x14a3   :  { %v3186_v9 = vpop.f32.mrb[60].mxu1 }
0x14a4   :  { %v3300_v21 = vmul.f32 0.25, %v3186_v9  ;;  %v5380_v39 = vpop.f32.mrb[61].mxu1  ;;  %v3311_v52 = vsel %vm1001_vm8, %v3305_v35, -inf }
0x14a5   :  { %3312 = vmax.xlane.f32.xlu0 %v3311_v52 }
0x14a6   :  { %v3306_v33 = vadd.f32 %v7190_v23, %v3300_v21 }
0x14a7   :  { %v3191_v13 = vpop.f32.mrb[62].mxu1 }
0x14a8   :  { %v5383_v22 = vpop.f32.mrb[63].mxu1  ;;  %v3314_v8 = vsel %vm1001_vm8, %v3306_v33, -inf  ;;  %v3301_v10 = vmul.f32 0.25, %v3191_v13 }
0x14a9   :  { %3315 = vmax.xlane.f32.xlu1 %v3314_v8 }
0x14aa   :  { %v3307_v30 = vadd.f32 %v7204_v51, %v3301_v10 }
0x14ac   :  { %v3317_v4 = vsel %vm1001_vm8, %v3307_v30, -inf }
0x14d3   :  { %v7336_v60 = vpop.f32.mrb[52].mxu0 }
0x14d4   :  { %v5368_v49 = vpop.f32.mrb[53].mxu0 }
0x14d7   :  { %v3285_v56 = vpop.f32.mrb[54].mxu0 }
0x14d8   :  { %v3302_v25 = vmul.f32 0.25, %v3285_v56  ;;  %v5392_v27 = vpop.f32.mrb[55].mxu0 }
0x14da   :  { %v3308_v59 = vadd.f32 %v7197_v34, %v3302_v25 }
0x14db   :  { %v3290_v5 = vpop.f32.mrb[56].mxu0 }
0x14dc   :  { %v3303_v62 = vmul.f32 0.25, %v3290_v5  ;;  %v5395_v40 = vpop.f32.mrb[57].mxu0  ;;  %v3320_v23 = vsel %vm1001_vm8, %v3308_v59, -inf }
0x14dd   :  { %3321 = vmax.xlane.f32.xlu0 %v3320_v23 }
0x14de   :  { %v3309_v3 = vadd.f32 %v7210_v46, %v3303_v62 }
0x14df   :  { %v3295_v42 = vpop.f32.mrb[58].mxu0 }
0x14e0   :  { %v3304_v7 = vmul.f32 0.25, %v3295_v42  ;;  %v5398_v31 = vpop.f32.mrb[59].mxu0  ;;  %v3323_v36 = vsel %vm1001_vm8, %v3309_v3, -inf }
0x14e1   :  { %3324 = vmax.xlane.f32.xlu1 %v3323_v36  ;;  %3318 = vmax.xlane.f32.xlu0 %v3317_v4 }
0x14e2   :  { %v3310_v34 = vadd.f32 %v7232_v16, %v3304_v7 }
0x14e4   :  { %v3326_v51 = vsel %vm1001_vm8, %v3310_v34, -inf }
0x14e5   :  { %3327 = vmax.xlane.f32.xlu0 %v3326_v51 }
0x14f2   :  { %5866 = vrot.lane.b32.xlu1 %v7124_v32, %s6182_s7 }
0x1532   :  { %v3313_v58 = vpop.xlane.xlu0 %3312 }
0x1533   :  { %v3329_v6 = vsub.f32 %v3305_v35, %v3313_v58 }
0x1535   :  { %v3335_v46 = vmul.f32 1.442695, %v3329_v6 }
0x1536   :  { %v3316_v44 = vpop.xlane.xlu1 %3315 }
0x1537   :  { %6007 = vpow2.f32 %v3335_v46  ;;  %v3330_v54 = vsub.f32 %v3306_v33, %v3316_v44 }
0x1539   :  { %v3337_v2 = vmul.f32 1.442695, %v3330_v54 }
0x153b   :  { %6009 = vpow2.f32 %v3337_v2 }
0x1541   :  { %v6008_v38 = vpop.eup %6007 }
0x1542   :  { %v3347_v41 = vsel %vm1001_vm8, %v6008_v38, 0.0 }
0x1543   :  { %3348 = vadd.xlane.f32.xlu1 %v3347_v41 }
0x1545   :  { %v6010_v50 = vpop.eup %6009 }
0x1546   :  { %v3350_v16 = vsel %vm1001_vm8, %v6010_v50, 0.0 }
0x1547   :  { %3351 = vadd.xlane.f32.xlu0 %v3350_v16 }
0x156a   :  { %v3322_v57 = vpop.xlane.xlu0 %3321 }
0x156b   :  { %v3332_v17 = vsub.f32 %v3308_v59, %v3322_v57 }
0x156d   :  { %v3341_v9 = vmul.f32 1.442695, %v3332_v17 }
0x156e   :  { %v3325_v32 = vpop.xlane.xlu1 %3324  ;;  %v3319_v21 = vpop.xlane.xlu0 %3318 }
0x156f   :  { %6011 = vpow2.f32 %v3341_v9  ;;  %v3333_v35 = vsub.f32 %v3309_v3, %v3325_v32  ;;  %v3331_v39 = vsub.f32 %v3307_v30, %v3319_v21  ;;  %v4702_v21 = vld [vmem:[%s7657_s11 + $0x30] sm:$0xff] }
0x1571   :  { %v3343_v52 = vmul.f32 1.442695, %v3333_v35  ;;  %v3339_v33 = vmul.f32 1.442695, %v3331_v39  ;;  %v4703_v35 = vld [vmem:[%s7657_s11 + $0x38] sm:$0xff] }
0x1572   :  { %v5867_v13 = vpop.permute.xlu1 %5866  ;;  %v3328_v22 = vpop.xlane.xlu0 %3327  ;;  %v5685_v39 = vpack.c.bf16 %v4703_v35, %v4702_v21 }
0x1573   :  { %6013 = vpow2.f32 %v3343_v52  ;;  %v5869_v8 = vunpack.i.h.bf16 %v5867_v13  ;;  %v5868_v49 = vunpack.i.l.bf16 %v5867_v13  ;;  %v3334_v56 = vsub.f32 %v3310_v34, %v3328_v22  ;;  %v4700_v52 = vld [vmem:[%s7657_s11 + $0x20] sm:$0xff] }
0x1574   :  { %6015 = vpow2.f32 %v3339_v33 }
0x1575   :  { %v5680_v10 = vpack.c.bf16 %v5869_v8, %v5868_v49  ;;  %v3345_v25 = vmul.f32 1.442695, %v3334_v56 }
0x1577   :  { %6017 = vpow2.f32 %v3345_v25  ;;  %5681 = vmatpush3.bf16.msra.mxu1 %v5680_v10 }
0x1578   :  { %5403 = vmatprep.subr.mxu1 %v6178_v24 }
0x1579   :  { %v6012_v27 = vpop.eup %6011 }
0x157a   :  { %v3356_v59 = vsel %vm1001_vm8, %v6012_v27, 0.0 }
0x157b   :  { %3357 = vadd.xlane.f32.xlu1 %v3356_v59 }
0x157d   :  { %v6014_v5 = vpop.eup %6013 }
0x157e   :  { %v6016_v30 = vpop.eup %6015  ;;  %v3359_v62 = vsel %vm1001_vm8, %v6014_v5, 0.0 }
0x157f   :  { %3360 = vadd.xlane.f32.xlu1 %v3359_v62  ;;  %v3353_v40 = vsel %vm1001_vm8, %v6016_v30, 0.0 }
0x1580   :  { %3354 = vadd.xlane.f32.xlu0 %v3353_v40  ;;  %v7406_v40 = vld [vmem:[#allocation7 + $0x10] sm:$0xf] }
0x1581   :  { %v6018_v23 = vpop.eup %6017 }
0x1582   :  { %v3362_v3 = vsel %vm1001_vm8, %v6018_v23, 0.0 }
0x1584   :  { %3363 = vadd.xlane.f32.xlu0 %v3362_v3 }
0x1590   :  { %3381 = vrot.lane.b32.xlu1 %v7128_v1, %s6182_s7 }
0x1594   :  { %3479 = vrot.lane.b32.xlu1 %v7132_v43, %s6182_s7 }
0x159a   :  { %5871 = vrot.lane.b32.xlu0 %v7142_v19, %s6182_s7 }
0x15d0   :  { %v3349_v42 = vpop.xlane.xlu1 %3348 }
0x15d1   :  { %6019 = vrcp.f32 %v3349_v42 }
0x15d4   :  { %v3352_v7 = vpop.xlane.xlu0 %3351 }
0x15d5   :  { %6021 = vrcp.f32 %v3352_v7 }
0x15db   :  { %v6020_v4 = vpop.eup %6019 }
0x15dc   :  { %v3371_v51 = vmul.f32 %v6020_v4, %v6008_v38 }
0x15df   :  { %v6022_v6 = vpop.eup %6021 }
0x15e0   :  { %v3372_v43 = vmul.f32 %v6022_v6, %v6010_v50 }
0x1608   :  { %v3358_v31 = vpop.xlane.xlu1 %3357 }
0x160c   :  { %v3361_v36 = vpop.xlane.xlu1 %3360 }
0x160d   :  { %v3355_v34 = vpop.xlane.xlu0 %3354 }
0x160e   :  { %6023 = vrcp.f32 %v3355_v34 }
0x160f   :  { %6025 = vrcp.f32 %v3358_v31 }
0x1610   :  { %v3382_v58 = vpop.permute.xlu1 %3381  ;;  %6027 = vrcp.f32 %v3361_v36 }
0x1611   :  { %v3364_v1 = vpop.xlane.xlu0 %3363  ;;  %5404 = vmatpush3.msra.mxu1 %v3382_v58 }
0x1612   :  { %5406 = vmatmul.mubr.msk.f32.vlgmr.msra.gmra.mrb[64].mxu1 %vm1001_vm8, %v3371_v51  ;;  %6029 = vrcp.f32 %v3364_v1  ;;  %5686 = vmatprep.subr.bf16.mxu1 %v5685_v39 }
0x1613   :  { %5408 = vmatprep.mubr.msk.f32.mxu1 %vm6177_vm5, %v6178_v24  ;;  %5688 = vmatpush3.bf16.msra.mxu1 %v5685_v39 }
0x1614   :  { %v3480_v50 = vpop.permute.xlu1 %3479 }
0x1615   :  { %v5872_v19 = vpop.permute.xlu0 %5871 }
0x1616   :  { %v5874_v46 = vunpack.i.h.bf16 %v5872_v19  ;;  %v5873_v44 = vunpack.i.l.bf16 %v5872_v19  ;;  %5409 = vmatmul.mubr.msk.f32.gmra.mrb[66].mxu1 %vm1001_vm8, %v3372_v43 }
0x1617   :  { %5411 = vmatprep.mubr.msk.f32.mxu1 %vm6177_vm5, %v6178_v24 }
0x1618   :  { %v6024_v54 = vpop.eup %6023  ;;  %v5683_v2 = vpack.c.bf16 %v5874_v46, %v5873_v44 }
0x1619   :  { %v3373_v38 = vmul.f32 %v6024_v54, %v6016_v30  ;;  %v6026_v41 = vpop.eup %6025 }
0x161a   :  { %5684 = vmatpush3.bf16.msra.mxu0 %v5683_v2  ;;  %v3374_v16 = vmul.f32 %v6026_v41, %v6012_v27  ;;  %v6028_v57 = vpop.eup %6027 }
0x161b   :  { %5412 = vmatmul.mubr.msk.f32.gmra.mrb[68].mxu1 %vm1001_vm8, %v3373_v38  ;;  %5418 = vmatprep.subr.mxu0 %v6178_v24  ;;  %v3375_v17 = vmul.f32 %v6028_v57, %v6014_v5 }
0x161c   :  { %v6030_v9 = vpop.eup %6029 }
0x161d   :  { %v3376_v32 = vmul.f32 %v6030_v9, %v6018_v23 }
0x161e   :  { %5419 = vmatpush3.msra.mxu0 %v3480_v50 }
0x161f   :  { %5421 = vmatmul.mubr.msk.f32.vlgmr.msra.gmra.mrb[60].mxu0 %vm1001_vm8, %v3374_v16 }
0x1620   :  { %5423 = vmatprep.mubr.msk.f32.mxu0 %vm6177_vm5, %v6178_v24 }
0x1623   :  { %5424 = vmatmul.mubr.msk.f32.gmra.mrb[62].mxu0 %vm1001_vm8, %v3375_v17 }
0x1624   :  { %5426 = vmatprep.mubr.msk.f32.mxu0 %vm6177_vm5, %v6178_v24  ;;  %v4701_v24 = vld [vmem:[%s7657_s11 + $0x28] sm:$0xff] }
0x1625   :  { %v5689_v33 = vpack.c.bf16 %v4701_v24, %v4700_v52 }
0x1627   :  { %5427 = vmatmul.mubr.msk.f32.gmra.mrb[64].mxu0 %vm1001_vm8, %v3376_v32  ;;  %5690 = vmatprep.subr.bf16.mxu1 %v5689_v33 }
0x16e5   :  { %v3461_v13 = vpop.f32.mrb[64].mxu1 }
0x16e6   :  { %v5407_v22 = vpop.f32.mrb[65].mxu1  ;;  %5433 = vmatprep.mubr.msk.f32.mxu1 %vm795_vm6, %v3461_v13 }
0x16e9   :  { %v3466_v8 = vpop.f32.mrb[66].mxu1 }
0x16ea   :  { %v5410_v49 = vpop.f32.mrb[67].mxu1  ;;  %5434 = vmatmul.mubr.msk.f32.vlgmr.msra.gmra.mrb[70].mxu1 %vm795_vm6, %v3466_v8 }
0x16eb   :  { %5692 = vmatpush3.bf16.msra.mxu1 %v5689_v33 }
0x16ee   :  { %v3471_v56 = vpop.f32.mrb[68].mxu1 }
0x16ef   :  { %v5413_v10 = vpop.f32.mrb[69].mxu1  ;;  %5436 = vmatprep.mubr.msk.f32.mxu1 %vm795_vm6, %v3471_v56 }
0x16f2   :  { %v3559_v25 = vpop.f32.mrb[60].mxu0 }
0x16f3   :  { %v5422_v27 = vpop.f32.mrb[61].mxu0  ;;  %5437 = vmatmul.mubr.msk.f32.gmra.mrb[72].mxu1 %vm795_vm6, %v3559_v25 }
0x16f6   :  { %v3564_v59 = vpop.f32.mrb[62].mxu0 }
0x16f7   :  { %v5425_v5 = vpop.f32.mrb[63].mxu0  ;;  %5439 = vmatprep.mubr.msk.f32.mxu1 %vm795_vm6, %v3564_v59 }
0x16fa   :  { %v3569_v30 = vpop.f32.mrb[64].mxu0 }
0x16fb   :  { %v5428_v62 = vpop.f32.mrb[65].mxu0  ;;  %5440 = vmatmul.mubr.msk.f32.gmra.mrb[74].mxu1 %vm795_vm6, %v3569_v30  ;;  %v4752_v30 = vld [vmem:[%s7658_s12 + $0x20] sm:$0xff] }
0x16fc   :  { %5446 = vmatprep.mubr.msk.f32.mxu1 %vm795_vm6, %v7322_v53  ;;  %v3808_v53 = vrot.slane %v7406_v40, %v6378_v28  ;;  %v4753_v62 = vld [vmem:[%s7658_s12 + $0x28] sm:$0xff] }
0x16ff   :  { %5447 = vmatmul.mubr.msk.f32.vlgmr.msra.gmra.mrb[70].mxu1 %vm795_vm6, %v7324_v61 }
0x1700   :  { %5449 = vmatprep.mubr.msk.f32.mxu1 %vm795_vm6, %v7330_v48 }
0x1703   :  { %5450 = vmatmul.mubr.msk.f32.gmra.mrb[72].mxu1 %vm795_vm6, %v7326_v63 }
0x1704   :  { %5452 = vmatprep.mubr.msk.f32.mxu1 %vm795_vm6, %v7328_v55 }
0x1707   :  { %5453 = vmatmul.mubr.msk.f32.gmra.mrb[74].mxu1 %vm795_vm6, %v7336_v60 }
0x17d2   :  { %v5448_v23 = vpop.f32.mrb[70].mxu1 }
0x17d3   :  { %v3800_v61 = vadd.f32 %v5448_v23, %v7016_v20  ;;  %v3770_v3 = vpop.f32.mrb[71].mxu1  ;;  %v4754_v23 = vld [vmem:[%s7658_s12 + $0x30] sm:$0xff] }
0x17d4   :  { %v3799_v48 = vadd.f32 %v3770_v3, %v7018_v18 }
0x17d5   :  { %v7412_v42 = vadd.f32 %v3808_v53, %v3800_v61  ;;  %v4755_v61 = vld [vmem:[%s7658_s12 + $0x38] sm:$0xff] }
0x17d6   :  { %v7414_v63 = vadd.f32 %v3808_v53, %v3799_v48  ;;  %v5451_v7 = vpop.f32.mrb[72].mxu1  ;;  %v5697_v3 = vpack.c.bf16 %v4755_v61, %v4754_v23  ;;  %v4763_v48 = vld [vmem:[%s7660_s14 + $0x80] sm:$0xff]  ;;  %v4768_v61 = vld [vmem:[%s7660_s14 + $0xa8] sm:$0xff] }
0x17d7   :  { %v3780_v55 = vpop.f32.mrb[73].mxu1  ;;  %v3818_v60 = vsel %vm444_vm4, %v7412_v42, 0.0  ;;  %v3802_v31 = vadd.f32 %v5451_v7, %v7026_v47  ;;  %v4764_v7 = vld [vmem:[%s7660_s14 + $0x88] sm:$0xff] }
0x17d8   :  { %v3801_v36 = vadd.f32 %v3780_v55, %v7028_v15  ;;  %3819 = vadd.xlane.f32.xlu1 %v3818_v60  ;;  %v3815_v28 = vsel %vm444_vm4, %v7414_v63, 0.0  ;;  %v5701_v55 = vpack.c.bf16 %v4764_v7, %v4763_v48  ;;  %v4769_v48 = vld [vmem:[%s7660_s14 + $0xb0] sm:$0xff]  ;;  %v4770_v7 = vld [vmem:[%s7660_s14 + $0xb8] sm:$0xff] }
0x17d9   :  { %3816 = vadd.xlane.f32.xlu0 %v3815_v28  ;;  %v7424_v34 = vadd.f32 %v3808_v53, %v3802_v31 }
0x17da   :  { %v7422_v20 = vadd.f32 %v3808_v53, %v3801_v36  ;;  %v5454_v18 = vpop.f32.mrb[74].mxu1 }
0x17db   :  { %v3790_v4 = vpop.f32.mrb[75].mxu1  ;;  %v3804_v51 = vadd.f32 %v5454_v18, %v7036_v26  ;;  %v3824_v1 = vsel %vm444_vm4, %v7424_v34, 0.0 }
0x17dc   :  { %v3803_v58 = vadd.f32 %v3790_v4, %v7038_v0  ;;  %v3821_v47 = vsel %vm444_vm4, %v7422_v20, 0.0 }
0x17dd   :  { %3822 = vadd.xlane.f32.xlu0 %v3821_v47  ;;  %v7432_v6 = vadd.f32 %v3808_v53, %v3804_v51 }
0x17de   :  { %v7430_v15 = vadd.f32 %v3808_v53, %v3803_v58  ;;  %v5693_v53 = vpack.c.bf16 %v4753_v62, %v4752_v30 }
0x17df   :  { %v3830_v26 = vsel %vm444_vm4, %v7432_v6, 0.0 }
0x17e0   :  { %v3827_v43 = vsel %vm444_vm4, %v7430_v15, 0.0  ;;  %5694 = vmatprep.subr.bf16.mxu0 %v5693_v53 }
0x17e1   :  { %3825 = vadd.xlane.f32.xlu0 %v3824_v1  ;;  %3828 = vadd.xlane.f32.xlu1 %v3827_v43 }
0x17e2   :  { %5696 = vmatpush3.bf16.msra.mxu0 %v5693_v53 }
0x17e3   :  { %5698 = vmatprep.subr.bf16.mxu0 %v5697_v3 }
0x17e5   :  { %3831 = vadd.xlane.f32.xlu0 %v3830_v26 }
0x17e6   :  { %5700 = vmatpush3.bf16.msra.mxu0 %v5697_v3 }
0x17e7   :  { %5702 = vmatprep.subr.bf16.mxu0 %v5701_v55 }
0x1865   :  { %v3820_v0 = vpop.xlane.xlu1 %3819 }
0x1866   :  { %v3834_v19 = vmul.f32 0.03125, %v3820_v0  ;;  %v3817_v46 = vpop.xlane.xlu0 %3816 }
0x1867   :  { %v3833_v44 = vmul.f32 0.03125, %v3817_v46 }
0x1868   :  { %v7441_v54 = vsub.f32 %v7412_v42, %v3834_v19 }
0x1869   :  { %v7444_v2 = vsub.f32 %v7414_v63, %v3833_v44 }
0x186a   :  { %v3823_v38 = vpop.xlane.xlu0 %3822  ;;  %v3846_v41 = vmul.f32 %v7441_v54, %v7441_v54 }
0x186b   :  { %v3835_v16 = vmul.f32 0.03125, %v3823_v38  ;;  %v3845_v50 = vmul.f32 %v7444_v2, %v7444_v2  ;;  %v3896_v38 = vrot.slane %v7406_v40, %v6366_v12 }
0x186c   :  { %v3854_v57 = vsel %vm444_vm4, %v3846_v41, 0.0 }
0x186d   :  { %v7452_v17 = vsub.f32 %v7422_v20, %v3835_v16  ;;  %3855 = vadd.xlane.f32.xlu0 %v3854_v57  ;;  %v3851_v9 = vsel %vm444_vm4, %v3845_v50, 0.0  ;;  %v3906_v57 = vrot.slane %v7406_v40, %v6371_v14 }
0x186e   :  { %v3826_v32 = vpop.xlane.xlu0 %3825  ;;  %3852 = vadd.xlane.f32.xlu1 %v3851_v9  ;;  %v3829_v21 = vpop.xlane.xlu1 %3828 }
0x186f   :  { %v3836_v35 = vmul.f32 0.03125, %v3826_v32  ;;  %v3837_v39 = vmul.f32 0.03125, %v3829_v21  ;;  %v3847_v52 = vmul.f32 %v7452_v17, %v7452_v17 }
0x1871   :  { %v7458_v24 = vsub.f32 %v7424_v34, %v3836_v35  ;;  %v7461_v33 = vsub.f32 %v7430_v15, %v3837_v39  ;;  %v3857_v13 = vsel %vm444_vm4, %v3847_v52, 0.0 }
0x1872   :  { %v3832_v22 = vpop.xlane.xlu0 %3831  ;;  %3858 = vadd.xlane.f32.xlu1 %v3857_v13 }
0x1873   :  { %v3838_v8 = vmul.f32 0.03125, %v3832_v22  ;;  %v3848_v49 = vmul.f32 %v7458_v24, %v7458_v24  ;;  %v3849_v56 = vmul.f32 %v7461_v33, %v7461_v33 }
0x1875   :  { %v7469_v10 = vsub.f32 %v7432_v6, %v3838_v8  ;;  %v3860_v25 = vsel %vm444_vm4, %v3848_v49, 0.0  ;;  %v3863_v27 = vsel %vm444_vm4, %v3849_v56, 0.0 }
0x1876   :  { %3861 = vadd.xlane.f32.xlu0 %v3860_v25  ;;  %3864 = vadd.xlane.f32.xlu1 %v3863_v27 }
0x1877   :  { %v3850_v59 = vmul.f32 %v7469_v10, %v7469_v10 }
0x1879   :  { %v3866_v5 = vsel %vm444_vm4, %v3850_v59, 0.0 }
0x187a   :  { %3867 = vadd.xlane.f32.xlu0 %v3866_v5 }
0x18fa   :  { %v3856_v60 = vpop.xlane.xlu0 %3855 }
0x18fb   :  { %v3870_v31 = vmul.f32 0.03125, %v3856_v60  ;;  %v3853_v36 = vpop.xlane.xlu1 %3852  ;;  %v4771_v60 = vld [vmem:[%s7660_s14 + $0xc0] sm:$0xff] }
0x18fc   :  { %v3869_v28 = vmul.f32 0.03125, %v3853_v36 }
0x18fd   :  { %v3876_v18 = vadd.f32 1e-05, %v3870_v31  ;;  %v4772_v31 = vld [vmem:[%s7660_s14 + $0xc8] sm:$0xff] }
0x18fe   :  { %v3875_v4 = vadd.f32 1e-05, %v3869_v28  ;;  %v5717_v36 = vpack.c.bf16 %v4772_v31, %v4771_v60  ;;  %v4773_v28 = vld [vmem:[%s7660_s14 + $0xd0] sm:$0xff] }
0x18ff   :  { %6031 = vrsqrt.f32 %v3876_v18  ;;  %v3859_v51 = vpop.xlane.xlu1 %3858  ;;  %v4774_v18 = vld [vmem:[%s7660_s14 + $0xd8] sm:$0xff] }
0x1900   :  { %6033 = vrsqrt.f32 %v3875_v4  ;;  %v3871_v58 = vmul.f32 0.03125, %v3859_v51  ;;  %v5721_v4 = vpack.c.bf16 %v4774_v18, %v4773_v28  ;;  %v4775_v51 = vld [vmem:[%s7660_s14 + $0xe0] sm:$0xff] }
0x1902   :  { %v3877_v47 = vadd.f32 1e-05, %v3871_v58  ;;  %v4776_v58 = vld [vmem:[%s7660_s14 + $0xe8] sm:$0xff] }
0x1903   :  { %v3862_v1 = vpop.xlane.xlu0 %3861  ;;  %v3865_v43 = vpop.xlane.xlu1 %3864 }
0x1904   :  { %6035 = vrsqrt.f32 %v3877_v47  ;;  %v3872_v26 = vmul.f32 0.03125, %v3862_v1  ;;  %v3873_v0 = vmul.f32 0.03125, %v3865_v43  ;;  %v5725_v47 = vpack.c.bf16 %v4776_v58, %v4775_v51  ;;  %v4777_v1 = vld [vmem:[%s7660_s14 + $0xf0] sm:$0xff]  ;;  %v4778_v43 = vld [vmem:[%s7660_s14 + $0xf8] sm:$0xff] }
0x1906   :  { %v3878_v19 = vadd.f32 1e-05, %v3872_v26  ;;  %v3879_v46 = vadd.f32 1e-05, %v3873_v0  ;;  %v5729_v26 = vpack.c.bf16 %v4778_v43, %v4777_v1  ;;  %v4756_v0 = vld [vmem:[%s7659_s13 + $0x1] ss:$0 sm:$0xff] }
0x1907   :  { %v3868_v44 = vpop.xlane.xlu0 %3867 }
0x1908   :  { %6037 = vrsqrt.f32 %v3878_v19  ;;  %v3874_v41 = vmul.f32 0.03125, %v3868_v44 }
0x1909   :  { %v6032_v16 = vpop.eup %6031  ;;  %6039 = vrsqrt.f32 %v3879_v46 }
0x190a   :  { %v6034_v50 = vpop.eup %6033  ;;  %v3888_v9 = vmul.f32 %v6032_v16, %v7441_v54  ;;  %v3880_v32 = vadd.f32 1e-05, %v3874_v41 }
0x190b   :  { %v3887_v21 = vmul.f32 %v6034_v50, %v7444_v2 }
0x190c   :  { %v3898_v35 = vmul.f32 %v3896_v38, %v3888_v9  ;;  %6041 = vrsqrt.f32 %v3880_v32 }
0x190d   :  { %v3897_v39 = vmul.f32 %v3896_v38, %v3887_v21 }
0x190e   :  { %v6036_v52 = vpop.eup %6035  ;;  %v3908_v13 = vadd.f32 %v3906_v57, %v3898_v35 }
0x190f   :  { %v3907_v22 = vadd.f32 %v3906_v57, %v3897_v39  ;;  %v3889_v12 = vmul.f32 %v6036_v52, %v7452_v17 }
0x1911   :  { %5463 = vmatprep.mubr.msk.f32.mxu0 %vm444_vm4, %v3907_v22  ;;  %v3899_v8 = vmul.f32 %v3896_v38, %v3889_v12 }
0x1912   :  { %v6038_v49 = vpop.eup %6037  ;;  %5464 = vmatmul.mubr.msk.f32.vlgmr.msra.gmra.mrb[66].mxu0 %vm444_vm4, %v3908_v13 }
0x1913   :  { %v6040_v14 = vpop.eup %6039  ;;  %v3909_v56 = vadd.f32 %v3906_v57, %v3899_v8  ;;  %v3890_v54 = vmul.f32 %v6038_v49, %v7458_v24  ;;  %5704 = vmatpush3.bf16.msra.mxu0 %v5701_v55  ;;  %v4765_v24 = vld [vmem:[%s7660_s14 + $0x90] sm:$0xff]  ;;  %v5713_v55 = vpack.c.bf16 %v4770_v7, %v4769_v48 }
0x1914   :  { %v3891_v2 = vmul.f32 %v6040_v14, %v7461_v33  ;;  %v4766_v33 = vld [vmem:[%s7660_s14 + $0x98] sm:$0xff] }
0x1915   :  { %5466 = vmatprep.mubr.msk.f32.mxu0 %vm444_vm4, %v3909_v56  ;;  %v3900_v25 = vmul.f32 %v3896_v38, %v3890_v54  ;;  %v5705_v23 = vpack.c.bf16 %v4766_v33, %v4765_v24 }
0x1916   :  { %v6042_v27 = vpop.eup %6041  ;;  %v3901_v59 = vmul.f32 %v3896_v38, %v3891_v2 }
0x1917   :  { %v3910_v5 = vadd.f32 %v3906_v57, %v3900_v25  ;;  %v3892_v17 = vmul.f32 %v6042_v27, %v7469_v10  ;;  %5706 = vmatprep.subr.bf16.mxu0 %v5705_v23  ;;  %v4767_v10 = vld [vmem:[%s7660_s14 + $0xa0] sm:$0xff] }
0x1918   :  { %v3911_v30 = vadd.f32 %v3906_v57, %v3901_v59  ;;  %5708 = vmatpush3.bf16.msra.mxu0 %v5705_v23  ;;  %v5709_v3 = vpack.c.bf16 %v4768_v61, %v4767_v10 }
0x1919   :  { %5467 = vmatmul.mubr.msk.f32.gmra.mrb[68].mxu0 %vm444_vm4, %v3910_v5  ;;  %v3902_v62 = vmul.f32 %v3896_v38, %v3892_v17 }
0x191a   :  { %5469 = vmatprep.mubr.msk.f32.mxu0 %vm444_vm4, %v3911_v30  ;;  %5710 = vmatprep.subr.bf16.mxu0 %v5709_v3 }
0x191b   :  { %v3912_v53 = vadd.f32 %v3906_v57, %v3902_v62 }
0x191c   :  { %5712 = vmatpush3.bf16.msra.mxu0 %v5709_v3 }
0x191d   :  { %5470 = vmatmul.mubr.msk.f32.gmra.mrb[70].mxu0 %vm444_vm4, %v3912_v53  ;;  %5714 = vmatprep.subr.bf16.mxu0 %v5713_v55 }
0x1920   :  { %5716 = vmatpush3.bf16.msra.mxu0 %v5713_v55 }
0x1921   :  { %5718 = vmatprep.subr.bf16.mxu0 %v5717_v36 }
0x1924   :  { %5720 = vmatpush3.bf16.msra.mxu0 %v5717_v36 }
0x1925   :  { %5722 = vmatprep.subr.bf16.mxu0 %v5721_v4 }
0x1928   :  { %5724 = vmatpush3.bf16.msra.mxu0 %v5721_v4 }
0x1929   :  { %5726 = vmatprep.subr.bf16.mxu0 %v5725_v47 }
0x192c   :  { %5728 = vmatpush3.bf16.msra.mxu0 %v5725_v47 }
0x192d   :  { %5730 = vmatprep.subr.bf16.mxu0 %v5729_v26 }
0x1930   :  { %5732 = vmatpush3.bf16.msra.mxu0 %v5729_v26 }
0x19e5   :  { %v5465_v19 = vpop.f32.mrb[66].mxu0 }
0x19e6   :  { %v4013_v46 = vadd.f32 %v5465_v19, %v4756_v0  ;;  %v4007_v44 = vpop.f32.mrb[67].mxu0 }
0x19e7   :  { %v4008_v38 = vadd.f32 %v4756_v0, %v4007_v44 }
0x19e8   :  { %v4043_v41 = vmul.f32 %v4013_v46, %v4013_v46  ;;  %v4037_v58 = vmul.f32 0.5, %v4013_v46 }
0x19e9   :  { %v4042_v16 = vmul.f32 %v4008_v38, %v4008_v38  ;;  %v4036_v4 = vmul.f32 0.5, %v4008_v38 }
0x19ea   :  { %v4049_v50 = vmul.f32 %v4043_v41, %v4013_v46 }
0x19eb   :  { %v4048_v57 = vmul.f32 %v4042_v16, %v4008_v38 }
0x19ec   :  { %v4055_v9 = vmul.f32 0.044715, %v4049_v50  ;;  %v5468_v32 = vpop.f32.mrb[68].mxu0 }
0x19ed   :  { %v4054_v21 = vmul.f32 0.044715, %v4048_v57  ;;  %v4023_v35 = vadd.f32 %v5468_v32, %v4756_v0  ;;  %v4017_v39 = vpop.f32.mrb[69].mxu0 }
0x19ee   :  { %v4061_v52 = vadd.f32 %v4055_v9, %v4013_v46  ;;  %v4018_v13 = vadd.f32 %v4756_v0, %v4017_v39 }
0x19ef   :  { %v4060_v22 = vadd.f32 %v4054_v21, %v4008_v38  ;;  %v4045_v12 = vmul.f32 %v4023_v35, %v4023_v35  ;;  %v4039_v41 = vmul.f32 0.5, %v4023_v35 }
0x19f0   :  { %v4067_v8 = vmul.f32 0.7978846, %v4061_v52  ;;  %v4044_v49 = vmul.f32 %v4018_v13, %v4018_v13  ;;  %v5471_v14 = vpop.f32.mrb[70].mxu0  ;;  %v4038_v19 = vmul.f32 0.5, %v4018_v13 }
0x19f1   :  { %v4066_v56 = vmul.f32 0.7978846, %v4060_v22  ;;  %v4051_v54 = vmul.f32 %v4045_v12, %v4023_v35  ;;  %v4033_v2 = vadd.f32 %v5471_v14, %v4756_v0  ;;  %v4027_v25 = vpop.f32.mrb[71].mxu0  ;;  %v4211_v22 = vrot.slane %v7406_v40, %v6381_v29 }
0x19f2   :  { %6043 = vtanh.f32 %v4067_v8  ;;  %v4050_v27 = vmul.f32 %v4044_v49, %v4018_v13  ;;  %v4028_v59 = vadd.f32 %v4756_v0, %v4027_v25 }
0x19f3   :  { %v4057_v5 = vmul.f32 0.044715, %v4051_v54  ;;  %v4047_v17 = vmul.f32 %v4033_v2, %v4033_v2  ;;  %6045 = vtanh.f32 %v4066_v56  ;;  %v4041_v46 = vmul.f32 0.5, %v4033_v2 }
0x19f4   :  { %v4056_v30 = vmul.f32 0.044715, %v4050_v27  ;;  %v4046_v62 = vmul.f32 %v4028_v59, %v4028_v59  ;;  %v4040_v38 = vmul.f32 0.5, %v4028_v59 }
0x19f5   :  { %v4063_v53 = vadd.f32 %v4057_v5, %v4023_v35  ;;  %v4053_v24 = vmul.f32 %v4047_v17, %v4033_v2 }
0x19f6   :  { %v4062_v33 = vadd.f32 %v4056_v30, %v4018_v13  ;;  %v4052_v23 = vmul.f32 %v4046_v62, %v4028_v59 }
0x19f7   :  { %v4069_v10 = vmul.f32 0.7978846, %v4063_v53  ;;  %v4059_v61 = vmul.f32 0.044715, %v4053_v24 }
0x19f8   :  { %v4068_v3 = vmul.f32 0.7978846, %v4062_v33  ;;  %v4058_v48 = vmul.f32 0.044715, %v4052_v23 }
0x19f9   :  { %v4065_v7 = vadd.f32 %v4059_v61, %v4033_v2  ;;  %6047 = vtanh.f32 %v4069_v10 }
0x19fa   :  { %v4064_v55 = vadd.f32 %v4058_v48, %v4028_v59  ;;  %6049 = vtanh.f32 %v4068_v3 }
0x19fb   :  { %v4071_v60 = vmul.f32 0.7978846, %v4065_v7 }
0x19fc   :  { %v6044_v31 = vpop.eup %6043  ;;  %v4070_v36 = vmul.f32 0.7978846, %v4064_v55 }
0x19fd   :  { %v6046_v28 = vpop.eup %6045  ;;  %v4079_v18 = vadd.f32 1.0, %v6044_v31  ;;  %6051 = vtanh.f32 %v4071_v60 }
0x19fe   :  { %v4078_v51 = vadd.f32 1.0, %v6046_v28  ;;  %6053 = vtanh.f32 %v4070_v36 }
0x19ff   :  { %v4085_v1 = vmul.f32 %v4079_v18, %v4037_v58 }
0x1a00   :  { %v4084_v47 = vmul.f32 %v4078_v51, %v4036_v4 }
0x1a02   :  { %5504 = vmatprep.mubr.f32.mxu0 %v4084_v47 }
0x1a03   :  { %v6048_v43 = vpop.eup %6047  ;;  %5505 = vmatmul.mubr.f32.vlgmr.msra.gmra.mrb[72].mxu0 %v4085_v1 }
0x1a04   :  { %v6050_v26 = vpop.eup %6049  ;;  %v4081_v0 = vadd.f32 1.0, %v6048_v43 }
0x1a05   :  { %v4080_v44 = vadd.f32 1.0, %v6050_v26 }
0x1a06   :  { %v4087_v9 = vmul.f32 %v4081_v0, %v4039_v41 }
0x1a07   :  { %v6052_v16 = vpop.eup %6051  ;;  %v4086_v50 = vmul.f32 %v4080_v44, %v4038_v19 }
0x1a08   :  { %v6054_v57 = vpop.eup %6053  ;;  %v4083_v32 = vadd.f32 1.0, %v6052_v16 }
0x1a09   :  { %5507 = vmatprep.mubr.f32.mxu0 %v4086_v50  ;;  %v4082_v21 = vadd.f32 1.0, %v6054_v57 }
0x1a0a   :  { %5508 = vmatmul.mubr.f32.gmra.mrb[74].mxu0 %v4087_v9  ;;  %v4089_v52 = vmul.f32 %v4083_v32, %v4041_v46  ;;  %v4316_v32 = vld [vmem:[%s7665_s19] sm:$0xff] }
0x1a0b   :  { %v4088_v39 = vmul.f32 %v4082_v21, %v4040_v38  ;;  %5525 = vmatprep.mubr.msk.f32.mxu1 %vm330_vm3, %v4316_v32 }
0x1a0d   :  { %5510 = vmatprep.mubr.f32.mxu0 %v4088_v39 }
0x1a0e   :  { %5511 = vmatmul.mubr.f32.gmra.mrb[76].mxu0 %v4089_v52 }
0x1ad6   :  { %v5506_v13 = vpop.f32.mrb[72].mxu0 }
0x1ad7   :  { %v4203_v35 = vadd.f32 %v5506_v13, %v7412_v42  ;;  %v4173_v12 = vpop.f32.mrb[73].mxu0 }
0x1ad8   :  { %v4202_v8 = vadd.f32 %v4173_v12, %v7414_v63 }
0x1ad9   :  { %v4213_v49 = vadd.f32 %v4211_v22, %v4203_v35 }
0x1ada   :  { %v4212_v14 = vadd.f32 %v4211_v22, %v4202_v8 }
0x1adb   :  { %v4221_v56 = vsel %vm444_vm4, %v4213_v49, 0.0 }
0x1adc   :  { %4222 = vadd.xlane.f32.xlu0 %v4221_v56  ;;  %v4218_v54 = vsel %vm444_vm4, %v4212_v14, 0.0 }
0x1add   :  { %4219 = vadd.xlane.f32.xlu1 %v4218_v54  ;;  %v5509_v2 = vpop.f32.mrb[74].mxu0 }
0x1ade   :  { %v4205_v25 = vadd.f32 %v5509_v2, %v7424_v34  ;;  %v4183_v27 = vpop.f32.mrb[75].mxu0 }
0x1adf   :  { %v4204_v29 = vadd.f32 %v4183_v27, %v7422_v20 }
0x1ae0   :  { %v4215_v40 = vadd.f32 %v4211_v22, %v4205_v25 }
0x1ae1   :  { %v4214_v59 = vadd.f32 %v4211_v22, %v4204_v29  ;;  %v5512_v42 = vpop.f32.mrb[76].mxu0  ;;  %v6074_v29 = vld [vmem:[#allocation7] sm:$0xff] }
0x1ae2   :  { %v4207_v5 = vadd.f32 %v5512_v42, %v7432_v6  ;;  %v4193_v63 = vpop.f32.mrb[77].mxu0  ;;  %v4227_v17 = vsel %vm444_vm4, %v4215_v40, 0.0 }
0x1ae3   :  { %v4206_v30 = vadd.f32 %v4193_v63, %v7430_v15  ;;  %4228 = vadd.xlane.f32.xlu0 %v4227_v17  ;;  %v4224_v62 = vsel %vm444_vm4, %v4214_v59, 0.0  ;;  %v4309_v17 = vrot.slane %v6074_v29, %v2479_v37 }
0x1ae4   :  { %v4217_v53 = vadd.f32 %v4211_v22, %v4207_v5  ;;  %4225 = vadd.xlane.f32.xlu1 %v4224_v62 }
0x1ae5   :  { %v4216_v24 = vadd.f32 %v4211_v22, %v4206_v30 }
0x1ae6   :  { %v4233_v34 = vsel %vm444_vm4, %v4217_v53, 0.0 }
0x1ae7   :  { %4234 = vadd.xlane.f32.xlu0 %v4233_v34  ;;  %v4230_v20 = vsel %vm444_vm4, %v4216_v24, 0.0 }
0x1ae8   :  { %4231 = vadd.xlane.f32.xlu1 %v4230_v20 }
0x1b69   :  { %v4223_v33 = vpop.xlane.xlu0 %4222 }
0x1b6a   :  { %v4237_v23 = vmul.f32 0.03125, %v4223_v33  ;;  %v4220_v6 = vpop.xlane.xlu1 %4219 }
0x1b6b   :  { %v4236_v10 = vmul.f32 0.03125, %v4220_v6 }
0x1b6c   :  { %v4243_v61 = vsub.f32 %v4213_v49, %v4237_v23 }
0x1b6d   :  { %v7569_v3 = vsub.f32 %v4212_v14, %v4236_v10 }
0x1b6e   :  { %v4249_v15 = vmul.f32 %v4243_v61, %v4243_v61 }
0x1b6f   :  { %v4248_v48 = vmul.f32 %v7569_v3, %v7569_v3 }
0x1b70   :  { %v4229_v7 = vpop.xlane.xlu0 %4228  ;;  %v4257_v55 = vsel %vm444_vm4, %v4249_v15, 0.0 }
0x1b71   :  { %v4239_v60 = vmul.f32 0.03125, %v4229_v7  ;;  %v4226_v31 = vpop.xlane.xlu1 %4225  ;;  %4258 = vadd.xlane.f32.xlu0 %v4257_v55  ;;  %v4254_v36 = vsel %vm444_vm4, %v4248_v48, 0.0 }
0x1b72   :  { %v4238_v28 = vmul.f32 0.03125, %v4226_v31  ;;  %4255 = vadd.xlane.f32.xlu1 %v4254_v36 }
0x1b73   :  { %v4245_v18 = vsub.f32 %v4215_v40, %v4239_v60  ;;  %v4299_v40 = vrot.slane %v6074_v29, %v2469_v45 }
0x1b74   :  { %v4244_v4 = vsub.f32 %v4214_v59, %v4238_v28  ;;  %v4235_v51 = vpop.xlane.xlu0 %4234  ;;  %v4421_v28 = vld [vmem:[%s7662_s16] sm:$0xff] }
0x1b75   :  { %v4241_v58 = vmul.f32 0.03125, %v4235_v51  ;;  %v4232_v47 = vpop.xlane.xlu1 %4231  ;;  %v4251_v1 = vmul.f32 %v4245_v18, %v4245_v18 }
0x1b76   :  { %v4240_v43 = vmul.f32 0.03125, %v4232_v47  ;;  %v4250_v26 = vmul.f32 %v4244_v4, %v4244_v4  ;;  %v4423_v47 = vld [vmem:[%s7662_s16 + $0x10] sm:$0xff] }
0x1b77   :  { %v4247_v0 = vsub.f32 %v4217_v53, %v4241_v58  ;;  %v4263_v19 = vsel %vm444_vm4, %v4251_v1, 0.0  ;;  %v4424_v1 = vld [vmem:[%s7662_s16 + $0x18] sm:$0xff] }
0x1b78   :  { %v4246_v44 = vsub.f32 %v4216_v24, %v4240_v43  ;;  %4264 = vadd.xlane.f32.xlu0 %v4263_v19  ;;  %v4260_v41 = vsel %vm444_vm4, %v4250_v26, 0.0  ;;  %v4317_v43 = vld [vmem:[%s7665_s19 + $0x8] sm:$0xff]  ;;  %v4318_v26 = vld [vmem:[%s7665_s19 + $0x10] sm:$0xff]  ;;  %v4319_v19 = vld [vmem:[%s7665_s19 + $0x18] sm:$0xff] }
0x1b79   :  { %4261 = vadd.xlane.f32.xlu1 %v4260_v41  ;;  %v4253_v16 = vmul.f32 %v4247_v0, %v4247_v0  ;;  %v4418_v41 = vld [vmem:[%s7661_s15 + $0x8] sm:$0xff] }
0x1b7a   :  { %v4252_v50 = vmul.f32 %v4246_v44, %v4246_v44 }
0x1b7b   :  { %v4269_v57 = vsel %vm444_vm4, %v4253_v16, 0.0 }
0x1b7c   :  { %4270 = vadd.xlane.f32.xlu0 %v4269_v57  ;;  %v4266_v9 = vsel %vm444_vm4, %v4252_v50, 0.0  ;;  %v4419_v50 = vld [vmem:[%s7661_s15 + $0x10] sm:$0xff]  ;;  %v4420_v57 = vld [vmem:[%s7661_s15 + $0x18] sm:$0xff] }
0x1b7d   :  { %4267 = vadd.xlane.f32.xlu1 %v4266_v9 }
0x1bfe   :  { %v4259_v38 = vpop.xlane.xlu0 %4258 }
0x1bff   :  { %v4273_v21 = vmul.f32 0.03125, %v4259_v38  ;;  %v4256_v46 = vpop.xlane.xlu1 %4255  ;;  %v5757_v38 = vpack.c.bf16 %v4420_v57, %v4419_v50 }
0x1c00   :  { %v4272_v39 = vmul.f32 0.03125, %v4256_v46 }
0x1c01   :  { %v4279_v52 = vadd.f32 1e-05, %v4273_v21 }
0x1c02   :  { %v4278_v22 = vadd.f32 1e-05, %v4272_v39  ;;  %v4787_v39 = vld [vmem:[%s7663_s17] ss:$0 sm:$0xff] }
0x1c03   :  { %6055 = vrsqrt.f32 %v4279_v52 }
0x1c04   :  { %6057 = vrsqrt.f32 %v4278_v22 }
0x1c05   :  { %v4265_v13 = vpop.xlane.xlu0 %4264 }
0x1c06   :  { %v4275_v35 = vmul.f32 0.03125, %v4265_v13  ;;  %v4262_v12 = vpop.xlane.xlu1 %4261 }
0x1c07   :  { %v4274_v8 = vmul.f32 0.03125, %v4262_v12 }
0x1c08   :  { %v4281_v49 = vadd.f32 1e-05, %v4275_v35 }
0x1c09   :  { %v4280_v14 = vadd.f32 1e-05, %v4274_v8  ;;  %v4271_v56 = vpop.xlane.xlu0 %4270 }
0x1c0a   :  { %6059 = vrsqrt.f32 %v4281_v49  ;;  %v4277_v54 = vmul.f32 0.03125, %v4271_v56  ;;  %v4268_v2 = vpop.xlane.xlu1 %4267 }
0x1c0b   :  { %6061 = vrsqrt.f32 %v4280_v14  ;;  %v4276_v25 = vmul.f32 0.03125, %v4268_v2 }
0x1c0c   :  { %v4283_v27 = vadd.f32 1e-05, %v4277_v54 }
0x1c0d   :  { %v6056_v59 = vpop.eup %6055  ;;  %v4282_v42 = vadd.f32 1e-05, %v4276_v25 }
0x1c0e   :  { %v6058_v5 = vpop.eup %6057  ;;  %6063 = vrsqrt.f32 %v4283_v27  ;;  %v4291_v63 = vmul.f32 %v6056_v59, %v4243_v61 }
0x1c0f   :  { %6065 = vrsqrt.f32 %v4282_v42  ;;  %v4290_v30 = vmul.f32 %v6058_v5, %v7569_v3 }
0x1c10   :  { %v4301_v62 = vmul.f32 %v4299_v40, %v4291_v63 }
0x1c11   :  { %v4300_v53 = vmul.f32 %v4299_v40, %v4290_v30 }
0x1c12   :  { %v4311_v24 = vadd.f32 %v4309_v17, %v4301_v62 }
0x1c13   :  { %v4310_v34 = vadd.f32 %v4309_v17, %v4300_v53 }
0x1c14   :  { %v6060_v20 = vpop.eup %6059 }
0x1c15   :  { %v6062_v33 = vpop.eup %6061  ;;  %v5733_v23 = vpack.c.bf16 %v4311_v24, %v4310_v34  ;;  %v4293_v6 = vmul.f32 %v6060_v20, %v4245_v18  ;;  %v4422_v18 = vld [vmem:[%s7662_s16 + $0x8] sm:$0xff] }
0x1c16   :  { %v4292_v45 = vmul.f32 %v6062_v33, %v4244_v4  ;;  %v5745_v58 = vpack.c.bf16 %v4422_v18, %v4421_v28 }
0x1c17   :  { %5734 = vmatprep.subr.bf16.mxu1 %v5733_v23  ;;  %v4303_v10 = vmul.f32 %v4299_v40, %v4293_v6 }
0x1c18   :  { %v6064_v15 = vpop.eup %6063  ;;  %5736 = vmatpush3.bf16.msra.mxu1 %v5733_v23  ;;  %v4302_v61 = vmul.f32 %v4299_v40, %v4292_v45 }
0x1c19   :  { %v6066_v48 = vpop.eup %6065  ;;  %v4313_v11 = vadd.f32 %v4309_v17, %v4303_v10  ;;  %v4295_v37 = vmul.f32 %v6064_v15, %v4247_v0  ;;  %v5749_v0 = vpack.c.bf16 %v4424_v1, %v4423_v47 }
0x1c1a   :  { %v4312_v7 = vadd.f32 %v4309_v17, %v4302_v61  ;;  %v4294_v55 = vmul.f32 %v6066_v48, %v4246_v44  ;;  %v4417_v44 = vld [vmem:[%s7661_s15] sm:$0xff]  ;;  %s6183_s15 = smov [#allocation8]  }
0x1c1b   :  { %v4305_v3 = vmul.f32 %v4299_v40, %v4295_v37  ;;  %v5753_v16 = vpack.c.bf16 %v4418_v41, %v4417_v44  ;;  %s4603_s27 = sshll.u32 %s6183_s15, 4  ;;  %s4604_s27 = int_to_ptr.vmem [resolvable:$true] %s4603_s27 }
0x1c1c   :  { %v5737_v60 = vpack.c.bf16 %v4313_v11, %v4312_v7  ;;  %v4304_v31 = vmul.f32 %v4299_v40, %v4294_v55  ;;  %s6141_s13 = scalar_lea.vmem %s4604_s27, 256  ;;  %p6146_p11 = scmp.lt.s32.totalorder %s4604_s27, %s4604_s27 }
0x1c1d   :  { %v4315_v36 = vadd.f32 %v4309_v17, %v4305_v3  ;;  %p6142_p10 = scmp.ne.s32.totalorder %s4604_s27, %s6141_s13  ;;  %p6147_p12 = scmp.lt.s32.totalorder %s6141_s13, %s6141_s13 }
0x1c1e   :  { %5738 = vmatprep.subr.bf16.mxu1 %v5737_v60  ;;  %v4314_v4 = vadd.f32 %v4309_v17, %v4304_v31 }
0x1c1f   :  { %5740 = vmatpush3.bf16.msra.mxu1 %v5737_v60  ;;  %p6148_p13 = por %p6147_p12, %p6146_p11 }
0x1c20   :  { %v5741_v51 = vpack.c.bf16 %v4315_v36, %v4314_v4 }
0x1c21   :  { %p6149_p0 = pnand %p6148_p13, %p6142_p10 }
0x1c22   :  { %5742 = vmatprep.subr.bf16.mxu1 %v5741_v51 }
0x1c23   :  { %5744 = vmatpush3.bf16.msra.mxu1 %v5741_v51 }
0x1c24   :  { %5746 = vmatprep.subr.bf16.mxu1 %v5745_v58 }
0x1c26   :  { %5526 = vmatmul.mubr.msk.f32.vlgmr.msra.gmra.mrb[76].mxu1 %vm330_vm3, %v4317_v43 }
0x1c27   :  { %5528 = vmatprep.mubr.msk.f32.mxu1 %vm330_vm3, %v4318_v26  ;;  %5748 = vmatpush3.bf16.msra.mxu1 %v5745_v58 }
0x1c28   :  { %5750 = vmatprep.subr.bf16.mxu1 %v5749_v0 }
0x1c2a   :  { %5529 = vmatmul.mubr.msk.f32.gmra.mrb[78].mxu1 %vm330_vm3, %v4319_v19 }
0x1c2b   :  { %5752 = vmatpush3.bf16.msra.mxu1 %v5749_v0 }
0x1c2c   :  { %5754 = vmatprep.subr.bf16.mxu1 %v5753_v16 }
0x1cf9   :  { %v5527_v9 = vpop.f32.mrb[76].mxu1 }
0x1cfa   :  { %v4398_v32 = vpop.f32.mrb[77].mxu1 }
0x1cfb   :  { %5539 = vmatprep.mubr.msk.f32.mxu1 %vm444_vm4, %v4398_v32 }
0x1cfc   :  { %5540 = vmatmul.mubr.msk.f32.vlgmr.msra.gmra.mrb[80].mxu1 %vm444_vm4, %v5527_v9 }
0x1cfd   :  { %5756 = vmatpush3.bf16.msra.mxu1 %v5753_v16  ;;  %v5530_v21 = vpop.f32.mrb[78].mxu1 }
0x1cfe   :  { %5758 = vmatprep.subr.bf16.mxu1 %v5757_v38  ;;  %v4408_v46 = vpop.f32.mrb[79].mxu1 }
0x1cff   :  { %5550 = vmatprep.mubr.msk.f32.mxu1 %vm444_vm4, %v4408_v46 }
0x1d01   :  { %5760 = vmatpush3.bf16.msra.mxu1 %v5757_v38 }
0x1d04   :  { %5551 = vmatmul.mubr.msk.f32.vlgmr.msra.gmra.mrb[80].mxu1 %vm444_vm4, %v5530_v21 }
0x1dd7   :  { %v5552_v52 = vpop.f32.mrb[80].mxu1 }
0x1dd8   :  { %v4595_v22 = vadd.f32 %v5552_v52, %v4787_v39  ;;  %v4578_v13 = vpop.f32.mrb[81].mxu1 }
0x1dd9   :  { %v4594_v35 = vadd.f32 %v4787_v39, %v4578_v13 }
0x1dda   :  { %4597 = vst [vmem:[#allocation8 + $0x8] sm:$0xff] %v4595_v22 }
0x1ddb   :  { %4596 = vst [vmem:[#allocation8] sm:$0xff] %v4594_v35 }
0x1ddc   :  { %6152 = shalt.err (!%p6149_p0)
}
0x1ddd   :  { %s7686_s26 = sld [smem:[#allocation17_spill]] }
0x1de3   :  { %s6153_s17 = scalar_lea.hbm %s7686_s26, 256 }
0x1de4   :  { %p6154_p1 = scmp.ne.s32.totalorder %s7686_s26, %s6153_s17  ;;  %p6157_p2 = scmp.lt.u32.totalorder %s6153_s17, %s7686_s26 }
0x1de6   :  { %p6159_p3 = pnand %p6157_p2, %p6154_p1 }
0x1de8   :  { %6162 = shalt.err (!%p6159_p3)
}
0x1de9   :  { %4609 = dma.vmem_to_hbm [thread:$0]  %s4604_s27, 256, %s7686_s26, [#allocation4], %s6171_s0, %s6171_s0, %s6172_s21  }
0x1dea   :  { %6167 = dma.done.wait [#allocation4], 256  }
0x1deb   :  { %6168 = vsyncadd [#allocation4], 4294967040 }
0x1dec   :  { %4613 = vsyncpa [#allocation3], 1 }
0x1ded   :  { %4614 = vsyncpa [#allocation6], 1 }
0x1dee   :  { %4615 = vsyncpa [#allocation4], 1 }

</bundles_post_ra>
